<compile_context>
chip_gen: v7x
topology: tpu7x:2x2x1
jax: 0.10.0
libtpu: 0.0.40
codegen_flags: <defaults>
</compile_context>

<pallas_src>
import numpy as np
import jax
import jax.numpy as jnp
from jax.experimental import pallas as pl
from jax.experimental.pallas import tpu as pltpu


# ----------------------------------------------------------------------------
# Host-side helpers: 1-D bilinear (align_corners=True) interpolation matrices
# ----------------------------------------------------------------------------
def _interp_matrix_1d(in_size, out_size):
    """PyTorch bilinear, align_corners=True, as an (out_size, in_size) matrix."""
    A = np.zeros((out_size, in_size), np.float32)
    if out_size == 1:
        A[0, 0] = 1.0
        return A
    scale = (in_size - 1) / (out_size - 1)
    for o in range(out_size):
        src = o * scale
        i0 = min(int(np.floor(src)), in_size - 1)
        i1 = min(i0 + 1, in_size - 1)
        frac = src - i0
        A[o, i0] += 1.0 - frac
        A[o, i1] += frac
    return A


# ----------------------------------------------------------------------------
# Fused PredictHeatmap kernel (one grid step = one head x one image)
# ----------------------------------------------------------------------------
def _predict_heatmap_kernel(x_ref, w1_ref, b1_ref, w2_ref, b2_ref,
                            ah_ref, awt_ref, o_ref, y1p_ref, y2_ref):
    # x_ref : (Cin, H, W)       input image, channels on sublanes
    # w1_ref: (Cin, Cin)        1x1 conv weights, BN1 scale folded in
    # b1_ref: (Cin, 1)          folded BN1 shift (f32)
    # w2_ref: (9, Cout, Cin)    3x3 conv weights, BN2 scale folded in
    # b2_ref: (Cout, 1)         folded BN2 shift (f32)
    # ah_ref: (Ho, H)           H-direction bilinear matrix (f32)
    # awt_ref:(W, Wo)           W-direction bilinear matrix, transposed (f32)
    # o_ref : (Cout, Ho, Wo)    output heatmaps (NCHW block, no transpose)
    # y1p_ref: (H+2, Cin, W+2)  zero-padded y1 scratch (compute dtype)
    # y2_ref : (H, Cout, W)     conv2 output scratch (f32)
    Cin = x_ref.shape[0]
    H = x_ref.shape[1]
    W = x_ref.shape[2]
    Cout = o_ref.shape[0]
    cdt = y1p_ref.dtype

    # ---------------- stage 1: 1x1 conv (+folded BN) + ReLU -----------------
    # One (Cin,Cin)@(Cin,W) matmul per image row; the result is written into a
    # zero-padded VMEM scratch so stage 2 can slice its 9 shifted taps
    # in-kernel (no HBM tap materialization, no HBM round trip of y1).
    zrow = jnp.zeros((Cin, W + 2), cdt)
    y1p_ref[0] = zrow
    y1p_ref[H + 1] = zrow
    zcol = jnp.zeros((Cin, 1), jnp.float32)
    for h in range(H):
        y = jnp.dot(w1_ref[...], x_ref[:, h, :],
                    preferred_element_type=jnp.float32)          # (Cin, W)
        y = jnp.maximum(y + b1_ref[...], 0.0)                    # BN + ReLU
        y1p_ref[h + 1] = jnp.concatenate([zcol, y, zcol],
                                         axis=1).astype(cdt)

    # --------------- stage 2: 3x3 conv, pad=1 (+folded BN) ------------------
    # 9 shifted-tap (Cout,Cin)@(Cin,W) matmuls per output row, taps sliced
    # directly from the padded VMEM scratch; f32 accumulation.
    for h in range(H):
        acc = jnp.zeros((Cout, W), jnp.float32)
        for dy in range(3):
            row = y1p_ref[h + dy]                                # (Cin, W+2)
            for dx in range(3):
                acc = acc + jnp.dot(w2_ref[dy * 3 + dx], row[:, dx:dx + W],
                                    preferred_element_type=jnp.float32)
        y2_ref[h] = acc + b2_ref[...]

    # ------- stage 3: bilinear resize (align_corners=True), separable -------
    # Per output channel: (Ho,H) @ (H,W) @ (W,Wo).  Each (Ho,Wo) result is a
    # dense store straight into the NCHW output block (lane-dense for real Wo).
    for c in range(Cout):
        t = jnp.dot(ah_ref[...], y2_ref[:, c, :],
                    preferred_element_type=jnp.float32)          # (Ho, W)
        o_ref[c] = jnp.dot(t, awt_ref[...],
                           preferred_element_type=jnp.float32
                           ).astype(o_ref.dtype)


def predict_heatmap_batched(x, w1f, b1, w2f, b2, out_shape, *,
                            compute_dtype=jnp.bfloat16,
                            vmem_limit_bytes=64 * 1024 * 1024):
    """All heads at once.

    x   : (G, N, Cin, H, W)   stacked inputs, one head (stage*unit) per G
    w1f : (G, Cin, Cin)       1x1 conv weights with BN1 scale folded
    b1  : (G, Cin, 1)
    w2f : (G, 9, Cout, Cin)   3x3 conv weights with BN2 scale folded
    b2  : (G, Cout, 1)
    returns (G, N, Cout, Ho, Wo) float32 heatmaps (NCHW per head/image).
    """
    G, N, Cin, H, W = x.shape
    Cout = w2f.shape[2]
    Ho, Wo = out_shape
    ah = jnp.asarray(_interp_matrix_1d(H, Ho))          # (Ho, H)  f32
    awt = jnp.asarray(_interp_matrix_1d(W, Wo).T)       # (W, Wo)  f32

    return pl.pallas_call(
        _predict_heatmap_kernel,
        grid=(G, N),
        in_specs=[
            pl.BlockSpec((None, None, Cin, H, W), lambda g, n: (g, n, 0, 0, 0)),
            pl.BlockSpec((None, Cin, Cin), lambda g, n: (g, 0, 0)),
            pl.BlockSpec((None, Cin, 1), lambda g, n: (g, 0, 0)),
            pl.BlockSpec((None, 9, Cout, Cin), lambda g, n: (g, 0, 0, 0)),
            pl.BlockSpec((None, Cout, 1), lambda g, n: (g, 0, 0)),
            pl.BlockSpec((Ho, H), lambda g, n: (0, 0)),
            pl.BlockSpec((W, Wo), lambda g, n: (0, 0)),
        ],
        out_specs=pl.BlockSpec((None, None, Cout, Ho, Wo),
                               lambda g, n: (g, n, 0, 0, 0)),
        out_shape=jax.ShapeDtypeStruct((G, N, Cout, Ho, Wo), jnp.float32),
        scratch_shapes=[
            pltpu.VMEM((H + 2, Cin, W + 2), compute_dtype),   # padded y1
            pltpu.VMEM((H, Cout, W), jnp.float32),            # conv2 output
        ],
        compiler_params=pltpu.CompilerParams(
            dimension_semantics=("parallel", "parallel"),
            vmem_limit_bytes=vmem_limit_bytes,
        ),
    )(x.astype(compute_dtype),
      w1f.astype(compute_dtype), b1.astype(jnp.float32),
      w2f.astype(compute_dtype), b2.astype(jnp.float32),
      ah, awt)


def predict_heatmap(x_nchw, params, out_shape, compute_dtype=jnp.bfloat16):
    """PredictHeatmap.forward (use_prm=False) for a single head."""
    out = predict_heatmap_batched(
        x_nchw[None], params["w1f"][None], params["b1"][None],
        params["w2f"][None], params["b2"][None], out_shape,
        compute_dtype=compute_dtype)
    return out[0]


# ----------------------------------------------------------------------------
# Parameter init (BN folded into conv weights / per-channel shift)
# ----------------------------------------------------------------------------
def init_predict_params(key, unit_channels, out_channels, eps=1e-5):
    C, K = unit_channels, out_channels
    ks = jax.random.split(key, 10)
    # conv1 (1x1, no bias) + BN1
    w1 = 0.05 * jax.random.normal(ks[0], (C, C), jnp.float32)       # [out, in]
    g1 = 1.0 + 0.1 * jax.random.normal(ks[1], (C,), jnp.float32)
    be1 = 0.05 * jax.random.normal(ks[2], (C,), jnp.float32)
    m1 = 0.1 * jax.random.normal(ks[3], (C,), jnp.float32)
    v1 = 1.0 + 0.1 * jnp.abs(jax.random.normal(ks[4], (C,), jnp.float32))
    s1 = g1 / jnp.sqrt(v1 + eps)
    w1f = w1 * s1[:, None]                     # fold BN scale into weights
    b1 = (be1 - m1 * s1)[:, None]              # (C, 1)

    # conv2 (3x3, no bias) + BN2
    w2 = 0.05 * jax.random.normal(ks[5], (3, 3, C, K), jnp.float32)  # HWIO
    g2 = 1.0 + 0.1 * jax.random.normal(ks[6], (K,), jnp.float32)
    be2 = 0.05 * jax.random.normal(ks[7], (K,), jnp.float32)
    m2 = 0.1 * jax.random.normal(ks[8], (K,), jnp.float32)
    v2 = 1.0 + 0.1 * jnp.abs(jax.random.normal(ks[9], (K,), jnp.float32))
    s2 = g2 / jnp.sqrt(v2 + eps)
    w2f = jnp.transpose(w2 * s2, (0, 1, 3, 2)).reshape(9, K, C)      # (9,K,C)
    b2 = (be2 - m2 * s2)[:, None]              # (K, 1)
    return dict(w1f=w1f, b1=b1, w2f=w2f, b2=b2)


# ----------------------------------------------------------------------------
# TopDownMSMUHead: one PredictHeatmap per stage x unit, batched into one call
# ----------------------------------------------------------------------------
class TopDownMSMUHeadPallas:
    """TopDownMSMUHead.forward with a single batched Pallas kernel
    (use_prm=False, the module default)."""

    def __init__(self, key, out_shape, unit_channels=256, out_channels=17,
                 num_stages=4, num_units=4, compute_dtype=jnp.bfloat16):
        self.out_shape = tuple(out_shape)
        self.unit_channels = unit_channels
        self.out_channels = out_channels
        self.num_stages = num_stages
        self.num_units = num_units
        self.compute_dtype = compute_dtype
        keys = jax.random.split(key, num_stages * num_units)
        self.params = [init_predict_params(k, unit_channels, out_channels)
                       for k in keys]
        # Stack per-head folded weights once at init so every stage*unit head
        # runs inside one pallas_call (head index = grid axis selecting the
        # weight block via index_map).
        self.w1f = jnp.stack([p["w1f"] for p in self.params])
        self.b1 = jnp.stack([p["b1"] for p in self.params])
        self.w2f = jnp.stack([p["w2f"] for p in self.params])
        self.b2 = jnp.stack([p["b2"] for p in self.params])

    def __call__(self, x):
        assert isinstance(x, list) and len(x) == self.num_stages
        assert isinstance(x[0], list) and len(x[0]) == self.num_units
        assert x[0][0].shape[1] == self.unit_channels
        xs = jnp.stack([x[i][j] for i in range(self.num_stages)
                        for j in range(self.num_units)])   # (S*U, N, Cin, H, W)
        out = predict_heatmap_batched(xs, self.w1f, self.b1, self.w2f, self.b2,
                                      self.out_shape,
                                      compute_dtype=self.compute_dtype)
        return [out[k] for k in range(self.num_stages * self.num_units)]


# ----------------------------------------------------------------------------
# Pure-JAX reference (numerical sanity check)
# ----------------------------------------------------------------------------
def predict_heatmap_ref(x_nchw, p, out_shape):
    hi = jax.lax.Precision.HIGHEST
    x = jnp.transpose(x_nchw, (0, 2, 3, 1)).astype(jnp.float32)      # NHWC
    y = jnp.einsum("nhwi,oi->nhwo", x, p["w1f"], precision=hi)
    y = jnp.maximum(y + p["b1"][:, 0], 0.0)
    K, C = p["w2f"].shape[1:]
    w2 = jnp.transpose(p["w2f"].reshape(3, 3, K, C), (0, 1, 3, 2))   # HWIO
    y = jax.lax.conv_general_dilated(
        y, w2, (1, 1), "SAME",
        dimension_numbers=("NHWC", "HWIO", "NHWC"), precision=hi)
    y = y + p["b2"][:, 0]
    N, H, W, _ = y.shape
    Ho, Wo = out_shape
    Ah = jnp.asarray(_interp_matrix_1d(H, Ho))
    Aw = jnp.asarray(_interp_matrix_1d(W, Wo))
    y = jnp.einsum("ph,nhwc->npwc", Ah, y, precision=hi)
    y = jnp.einsum("qw,npwc->npqc", Aw, y, precision=hi)
    return jnp.transpose(y, (0, 3, 1, 2))                            # NCHW


if __name__ == "__main__":
    # Small, module-consistent shapes.
    N = 2
    unit_channels = 16
    out_channels = 8          # number of keypoints
    num_stages = 2
    num_units = 2
    H = W = 8
    out_shape = (16, 16)

    key = jax.random.PRNGKey(0)
    k_params, k_data = jax.random.split(key)

    data_keys = jax.random.split(k_data, num_stages * num_units)
    x = [[jax.random.normal(data_keys[i * num_units + j],
                            (N, unit_channels, H, W), jnp.float32)
          for j in range(num_units)]
         for i in range(num_stages)]

    # --- exact-semantics check with f32 compute ---
    head_f32 = TopDownMSMUHeadPallas(k_params, out_shape,
                                     unit_channels=unit_channels,
                                     out_channels=out_channels,
                                     num_stages=num_stages,
                                     num_units=num_units,
                                     compute_dtype=jnp.float32)
    outs = [jax.block_until_ready(o) for o in head_f32(x)]
    assert len(outs) == num_stages * num_units
    idx = 0
    for i in range(num_stages):
        for j in range(num_units):
            o = outs[idx]
            assert o.shape == (N, out_channels, out_shape[0], out_shape[1])
            assert o.dtype == jnp.float32
            ref = predict_heatmap_ref(x[i][j], head_f32.params[idx], out_shape)
            np.testing.assert_allclose(np.asarray(o), np.asarray(ref),
                                       rtol=1e-4, atol=1e-4)
            idx += 1

    # --- default bf16-MXU path (perf configuration), looser tolerance ---
    head_bf16 = TopDownMSMUHeadPallas(k_params, out_shape,
                                      unit_channels=unit_channels,
                                      out_channels=out_channels,
                                      num_stages=num_stages,
                                      num_units=num_units)
    outs_bf16 = [jax.block_until_ready(o) for o in head_bf16(x)]
    idx = 0
    for i in range(num_stages):
        for j in range(num_units):
            ref = predict_heatmap_ref(x[i][j], head_bf16.params[idx], out_shape)
            np.testing.assert_allclose(np.asarray(outs_bf16[idx]),
                                       np.asarray(ref),
                                       rtol=3e-2, atol=3e-2)
            idx += 1

    print("KERNEL_OK")
</pallas_src>

<mosaic_0001>
module attributes {stable_mosaic.version = 11 : i64} {
  func.func @_predict_heatmap_kernel(%arg0: i32, %arg1: i32, %arg2: memref<1x1x16x8x8xf32, #tpu.memory_space<vmem>>, %arg3: memref<1x16x16xf32, #tpu.memory_space<vmem>>, %arg4: memref<1x16x1xf32, #tpu.memory_space<vmem>>, %arg5: memref<1x9x8x16xf32, #tpu.memory_space<vmem>>, %arg6: memref<1x8x1xf32, #tpu.memory_space<vmem>>, %arg7: memref<16x8xf32, #tpu.memory_space<vmem>>, %arg8: memref<8x16xf32, #tpu.memory_space<vmem>>, %arg9: memref<1x1x8x16x16xf32, #tpu.memory_space<vmem>>, %arg10: memref<10x16x10xf32, #tpu.memory_space<vmem>>, %arg11: memref<8x8x8xf32, #tpu.memory_space<vmem>>) attributes {dimension_semantics = [#tpu.dimension_semantics<parallel>, #tpu.dimension_semantics<parallel>], iteration_bounds = array<i64: 4, 2>, scalar_prefetch = 0 : i64, scratch_operands = 2 : i64, tpu.core_type = #tpu.core_type<tc>, window_params = [{transform_indices = @transform_0, window_bounds = array<i64: 1, 1, 16, 8, 8>}, {transform_indices = @transform_1, window_bounds = array<i64: 1, 16, 16>}, {transform_indices = @transform_2, window_bounds = array<i64: 1, 16, 1>}, {transform_indices = @transform_3, window_bounds = array<i64: 1, 9, 8, 16>}, {transform_indices = @transform_4, window_bounds = array<i64: 1, 8, 1>}, {pipeline_mode = #tpu.pipeline_mode<synchronous>, transform_indices = @transform_5, window_bounds = array<i64: 16, 8>}, {pipeline_mode = #tpu.pipeline_mode<synchronous>, transform_indices = @transform_6, window_bounds = array<i64: 8, 16>}, {transform_indices = @transform_7, window_bounds = array<i64: 1, 1, 8, 16, 16>}]} {
    %cst = arith.constant 0.000000e+00 : f32
    %0 = vector.broadcast %cst : f32 to vector<16x10xf32>
    %c0 = arith.constant 0 : index
    %c0_0 = arith.constant 0 : index
    %c0_1 = arith.constant 0 : index
    %1 = vector.load %arg10[%c0, %c0_0, %c0_1] : memref<10x16x10xf32, #tpu.memory_space<vmem>>, vector<1x16x10xf32>
    %2 = vector.shape_cast %1 : vector<1x16x10xf32> to vector<16x10xf32>
    %3 = vector.shape_cast %0 : vector<16x10xf32> to vector<1x16x10xf32>
    tpu.vector_store %arg10[%c0, %c0_0, %c0_1], %3 {strides = array<i32>} : memref<10x16x10xf32, #tpu.memory_space<vmem>>, vector<1x16x10xf32>,
    %c9 = arith.constant 9 : index
    %c0_2 = arith.constant 0 : index
    %c0_3 = arith.constant 0 : index
    %4 = vector.load %arg10[%c9, %c0_2, %c0_3] : memref<10x16x10xf32, #tpu.memory_space<vmem>>, vector<1x16x10xf32>
    %5 = vector.shape_cast %4 : vector<1x16x10xf32> to vector<16x10xf32>
    %6 = vector.shape_cast %0 : vector<16x10xf32> to vector<1x16x10xf32>
    tpu.vector_store %arg10[%c9, %c0_2, %c0_3], %6 {strides = array<i32>} : memref<10x16x10xf32, #tpu.memory_space<vmem>>, vector<1x16x10xf32>,
    %cst_4 = arith.constant 0.000000e+00 : f32
    %7 = vector.broadcast %cst_4 : f32 to vector<16x1xf32>
    %c0_5 = arith.constant 0 : index
    %c0_6 = arith.constant 0 : index
    %c0_7 = arith.constant 0 : index
    %8 = vector.load %arg3[%c0_5, %c0_6, %c0_7] : memref<1x16x16xf32, #tpu.memory_space<vmem>>, vector<1x16x16xf32>
    %9 = vector.shape_cast %8 : vector<1x16x16xf32> to vector<16x16xf32>
    %c0_8 = arith.constant 0 : index
    %c0_9 = arith.constant 0 : index
    %c0_10 = arith.constant 0 : index
    %c0_11 = arith.constant 0 : index
    %c0_12 = arith.constant 0 : index
    %10 = vector.load %arg2[%c0_8, %c0_9, %c0_10, %c0_11, %c0_12] : memref<1x1x16x8x8xf32, #tpu.memory_space<vmem>>, vector<1x1x16x1x8xf32>
    %11 = vector.shape_cast %10 : vector<1x1x16x1x8xf32> to vector<16x8xf32>
    %cst_13 = arith.constant dense<0.000000e+00> : vector<16x8xf32>
    %12 = tpu.matmul %9, %11, %cst_13 {dimension_numbers = #tpu.dot_dimension_numbers<[1], [0], [0], [1], [0, 0, 1, 1], [], []>} : vector<16x16xf32>, vector<16x8xf32>, vector<16x8xf32> -> vector<16x8xf32>
    %c0_14 = arith.constant 0 : index
    %c0_15 = arith.constant 0 : index
    %c0_16 = arith.constant 0 : index
    %13 = vector.load %arg4[%c0_14, %c0_15, %c0_16] : memref<1x16x1xf32, #tpu.memory_space<vmem>>, vector<1x16x1xf32>
    %14 = vector.shape_cast %13 : vector<1x16x1xf32> to vector<16x1xf32>
    %15 = vector.broadcast %14 : vector<16x1xf32> to vector<16x8xf32>
    %16 = arith.addf %12, %15 : vector<16x8xf32>
    %cst_17 = arith.constant 0.000000e+00 : f32
    %17 = vector.broadcast %cst_17 : f32 to vector<16x8xf32>
    %18 = arith.maximumf %16, %17 : vector<16x8xf32>
    %19 = tpu.concatenate %7, %18, %7 in 1 : vector<16x1xf32>, vector<16x8xf32>, vector<16x1xf32> -> vector<16x10xf32>
    %c1 = arith.constant 1 : index
    %c0_18 = arith.constant 0 : index
    %c0_19 = arith.constant 0 : index
    %20 = vector.load %arg10[%c1, %c0_18, %c0_19] : memref<10x16x10xf32, #tpu.memory_space<vmem>>, vector<1x16x10xf32>
    %21 = vector.shape_cast %20 : vector<1x16x10xf32> to vector<16x10xf32>
    %22 = vector.shape_cast %19 : vector<16x10xf32> to vector<1x16x10xf32>
    tpu.vector_store %arg10[%c1, %c0_18, %c0_19], %22 {strides = array<i32>} : memref<10x16x10xf32, #tpu.memory_space<vmem>>, vector<1x16x10xf32>,
    %c0_20 = arith.constant 0 : index
    %c0_21 = arith.constant 0 : index
    %c0_22 = arith.constant 0 : index
    %23 = vector.load %arg3[%c0_20, %c0_21, %c0_22] : memref<1x16x16xf32, #tpu.memory_space<vmem>>, vector<1x16x16xf32>
    %24 = vector.shape_cast %23 : vector<1x16x16xf32> to vector<16x16xf32>
    %c0_23 = arith.constant 0 : index
    %c0_24 = arith.constant 0 : index
    %c0_25 = arith.constant 0 : index
    %c1_26 = arith.constant 1 : index
    %c0_27 = arith.constant 0 : index
    %25 = vector.load %arg2[%c0_23, %c0_24, %c0_25, %c1_26, %c0_27] : memref<1x1x16x8x8xf32, #tpu.memory_space<vmem>>, vector<1x1x16x1x8xf32>
    %26 = vector.shape_cast %25 : vector<1x1x16x1x8xf32> to vector<16x8xf32>
    %cst_28 = arith.constant dense<0.000000e+00> : vector<16x8xf32>
    %27 = tpu.matmul %24, %26, %cst_28 {dimension_numbers = #tpu.dot_dimension_numbers<[1], [0], [0], [1], [0, 0, 1, 1], [], []>} : vector<16x16xf32>, vector<16x8xf32>, vector<16x8xf32> -> vector<16x8xf32>
    %c0_29 = arith.constant 0 : index
    %c0_30 = arith.constant 0 : index
    %c0_31 = arith.constant 0 : index
    %28 = vector.load %arg4[%c0_29, %c0_30, %c0_31] : memref<1x16x1xf32, #tpu.memory_space<vmem>>, vector<1x16x1xf32>
    %29 = vector.shape_cast %28 : vector<1x16x1xf32> to vector<16x1xf32>
    %30 = vector.broadcast %29 : vector<16x1xf32> to vector<16x8xf32>
    %31 = arith.addf %27, %30 : vector<16x8xf32>
    %cst_32 = arith.constant 0.000000e+00 : f32
    %32 = vector.broadcast %cst_32 : f32 to vector<16x8xf32>
    %33 = arith.maximumf %31, %32 : vector<16x8xf32>
    %34 = tpu.concatenate %7, %33, %7 in 1 : vector<16x1xf32>, vector<16x8xf32>, vector<16x1xf32> -> vector<16x10xf32>
    %c2 = arith.constant 2 : index
    %c0_33 = arith.constant 0 : index
    %c0_34 = arith.constant 0 : index
    %35 = vector.load %arg10[%c2, %c0_33, %c0_34] : memref<10x16x10xf32, #tpu.memory_space<vmem>>, vector<1x16x10xf32>
    %36 = vector.shape_cast %35 : vector<1x16x10xf32> to vector<16x10xf32>
    %37 = vector.shape_cast %34 : vector<16x10xf32> to vector<1x16x10xf32>
    tpu.vector_store %arg10[%c2, %c0_33, %c0_34], %37 {strides = array<i32>} : memref<10x16x10xf32, #tpu.memory_space<vmem>>, vector<1x16x10xf32>,
    %c0_35 = arith.constant 0 : index
    %c0_36 = arith.constant 0 : index
    %c0_37 = arith.constant 0 : index
    %38 = vector.load %arg3[%c0_35, %c0_36, %c0_37] : memref<1x16x16xf32, #tpu.memory_space<vmem>>, vector<1x16x16xf32>
    %39 = vector.shape_cast %38 : vector<1x16x16xf32> to vector<16x16xf32>
    %c0_38 = arith.constant 0 : index
    %c0_39 = arith.constant 0 : index
    %c0_40 = arith.constant 0 : index
    %c2_41 = arith.constant 2 : index
    %c0_42 = arith.constant 0 : index
    %40 = vector.load %arg2[%c0_38, %c0_39, %c0_40, %c2_41, %c0_42] : memref<1x1x16x8x8xf32, #tpu.memory_space<vmem>>, vector<1x1x16x1x8xf32>
    %41 = vector.shape_cast %40 : vector<1x1x16x1x8xf32> to vector<16x8xf32>
    %cst_43 = arith.constant dense<0.000000e+00> : vector<16x8xf32>
    %42 = tpu.matmul %39, %41, %cst_43 {dimension_numbers = #tpu.dot_dimension_numbers<[1], [0], [0], [1], [0, 0, 1, 1], [], []>} : vector<16x16xf32>, vector<16x8xf32>, vector<16x8xf32> -> vector<16x8xf32>
    %c0_44 = arith.constant 0 : index
    %c0_45 = arith.constant 0 : index
    %c0_46 = arith.constant 0 : index
    %43 = vector.load %arg4[%c0_44, %c0_45, %c0_46] : memref<1x16x1xf32, #tpu.memory_space<vmem>>, vector<1x16x1xf32>
    %44 = vector.shape_cast %43 : vector<1x16x1xf32> to vector<16x1xf32>
    %45 = vector.broadcast %44 : vector<16x1xf32> to vector<16x8xf32>
    %46 = arith.addf %42, %45 : vector<16x8xf32>
    %cst_47 = arith.constant 0.000000e+00 : f32
    %47 = vector.broadcast %cst_47 : f32 to vector<16x8xf32>
    %48 = arith.maximumf %46, %47 : vector<16x8xf32>
    %49 = tpu.concatenate %7, %48, %7 in 1 : vector<16x1xf32>, vector<16x8xf32>, vector<16x1xf32> -> vector<16x10xf32>
    %c3 = arith.constant 3 : index
    %c0_48 = arith.constant 0 : index
    %c0_49 = arith.constant 0 : index
    %50 = vector.load %arg10[%c3, %c0_48, %c0_49] : memref<10x16x10xf32, #tpu.memory_space<vmem>>, vector<1x16x10xf32>
    %51 = vector.shape_cast %50 : vector<1x16x10xf32> to vector<16x10xf32>
    %52 = vector.shape_cast %49 : vector<16x10xf32> to vector<1x16x10xf32>
    tpu.vector_store %arg10[%c3, %c0_48, %c0_49], %52 {strides = array<i32>} : memref<10x16x10xf32, #tpu.memory_space<vmem>>, vector<1x16x10xf32>,
    %c0_50 = arith.constant 0 : index
    %c0_51 = arith.constant 0 : index
    %c0_52 = arith.constant 0 : index
    %53 = vector.load %arg3[%c0_50, %c0_51, %c0_52] : memref<1x16x16xf32, #tpu.memory_space<vmem>>, vector<1x16x16xf32>
    %54 = vector.shape_cast %53 : vector<1x16x16xf32> to vector<16x16xf32>
    %c0_53 = arith.constant 0 : index
    %c0_54 = arith.constant 0 : index
    %c0_55 = arith.constant 0 : index
    %c3_56 = arith.constant 3 : index
    %c0_57 = arith.constant 0 : index
    %55 = vector.load %arg2[%c0_53, %c0_54, %c0_55, %c3_56, %c0_57] : memref<1x1x16x8x8xf32, #tpu.memory_space<vmem>>, vector<1x1x16x1x8xf32>
    %56 = vector.shape_cast %55 : vector<1x1x16x1x8xf32> to vector<16x8xf32>
    %cst_58 = arith.constant dense<0.000000e+00> : vector<16x8xf32>
    %57 = tpu.matmul %54, %56, %cst_58 {dimension_numbers = #tpu.dot_dimension_numbers<[1], [0], [0], [1], [0, 0, 1, 1], [], []>} : vector<16x16xf32>, vector<16x8xf32>, vector<16x8xf32> -> vector<16x8xf32>
    %c0_59 = arith.constant 0 : index
    %c0_60 = arith.constant 0 : index
    %c0_61 = arith.constant 0 : index
    %58 = vector.load %arg4[%c0_59, %c0_60, %c0_61] : memref<1x16x1xf32, #tpu.memory_space<vmem>>, vector<1x16x1xf32>
    %59 = vector.shape_cast %58 : vector<1x16x1xf32> to vector<16x1xf32>
    %60 = vector.broadcast %59 : vector<16x1xf32> to vector<16x8xf32>
    %61 = arith.addf %57, %60 : vector<16x8xf32>
    %cst_62 = arith.constant 0.000000e+00 : f32
    %62 = vector.broadcast %cst_62 : f32 to vector<16x8xf32>
    %63 = arith.maximumf %61, %62 : vector<16x8xf32>
    %64 = tpu.concatenate %7, %63, %7 in 1 : vector<16x1xf32>, vector<16x8xf32>, vector<16x1xf32> -> vector<16x10xf32>
    %c4 = arith.constant 4 : index
    %c0_63 = arith.constant 0 : index
    %c0_64 = arith.constant 0 : index
    %65 = vector.load %arg10[%c4, %c0_63, %c0_64] : memref<10x16x10xf32, #tpu.memory_space<vmem>>, vector<1x16x10xf32>
    %66 = vector.shape_cast %65 : vector<1x16x10xf32> to vector<16x10xf32>
    %67 = vector.shape_cast %64 : vector<16x10xf32> to vector<1x16x10xf32>
    tpu.vector_store %arg10[%c4, %c0_63, %c0_64], %67 {strides = array<i32>} : memref<10x16x10xf32, #tpu.memory_space<vmem>>, vector<1x16x10xf32>,
    %c0_65 = arith.constant 0 : index
    %c0_66 = arith.constant 0 : index
    %c0_67 = arith.constant 0 : index
    %68 = vector.load %arg3[%c0_65, %c0_66, %c0_67] : memref<1x16x16xf32, #tpu.memory_space<vmem>>, vector<1x16x16xf32>
    %69 = vector.shape_cast %68 : vector<1x16x16xf32> to vector<16x16xf32>
    %c0_68 = arith.constant 0 : index
    %c0_69 = arith.constant 0 : index
    %c0_70 = arith.constant 0 : index
    %c4_71 = arith.constant 4 : index
    %c0_72 = arith.constant 0 : index
    %70 = vector.load %arg2[%c0_68, %c0_69, %c0_70, %c4_71, %c0_72] : memref<1x1x16x8x8xf32, #tpu.memory_space<vmem>>, vector<1x1x16x1x8xf32>
    %71 = vector.shape_cast %70 : vector<1x1x16x1x8xf32> to vector<16x8xf32>
    %cst_73 = arith.constant dense<0.000000e+00> : vector<16x8xf32>
    %72 = tpu.matmul %69, %71, %cst_73 {dimension_numbers = #tpu.dot_dimension_numbers<[1], [0], [0], [1], [0, 0, 1, 1], [], []>} : vector<16x16xf32>, vector<16x8xf32>, vector<16x8xf32> -> vector<16x8xf32>
    %c0_74 = arith.constant 0 : index
    %c0_75 = arith.constant 0 : index
    %c0_76 = arith.constant 0 : index
    %73 = vector.load %arg4[%c0_74, %c0_75, %c0_76] : memref<1x16x1xf32, #tpu.memory_space<vmem>>, vector<1x16x1xf32>
    %74 = vector.shape_cast %73 : vector<1x16x1xf32> to vector<16x1xf32>
    %75 = vector.broadcast %74 : vector<16x1xf32> to vector<16x8xf32>
    %76 = arith.addf %72, %75 : vector<16x8xf32>
    %cst_77 = arith.constant 0.000000e+00 : f32
    %77 = vector.broadcast %cst_77 : f32 to vector<16x8xf32>
    %78 = arith.maximumf %76, %77 : vector<16x8xf32>
    %79 = tpu.concatenate %7, %78, %7 in 1 : vector<16x1xf32>, vector<16x8xf32>, vector<16x1xf32> -> vector<16x10xf32>
    %c5 = arith.constant 5 : index
    %c0_78 = arith.constant 0 : index
    %c0_79 = arith.constant 0 : index
    %80 = vector.load %arg10[%c5, %c0_78, %c0_79] : memref<10x16x10xf32, #tpu.memory_space<vmem>>, vector<1x16x10xf32>
    %81 = vector.shape_cast %80 : vector<1x16x10xf32> to vector<16x10xf32>
    %82 = vector.shape_cast %79 : vector<16x10xf32> to vector<1x16x10xf32>
    tpu.vector_store %arg10[%c5, %c0_78, %c0_79], %82 {strides = array<i32>} : memref<10x16x10xf32, #tpu.memory_space<vmem>>, vector<1x16x10xf32>,
    %c0_80 = arith.constant 0 : index
    %c0_81 = arith.constant 0 : index
    %c0_82 = arith.constant 0 : index
    %83 = vector.load %arg3[%c0_80, %c0_81, %c0_82] : memref<1x16x16xf32, #tpu.memory_space<vmem>>, vector<1x16x16xf32>
    %84 = vector.shape_cast %83 : vector<1x16x16xf32> to vector<16x16xf32>
    %c0_83 = arith.constant 0 : index
    %c0_84 = arith.constant 0 : index
    %c0_85 = arith.constant 0 : index
    %c5_86 = arith.constant 5 : index
    %c0_87 = arith.constant 0 : index
    %85 = vector.load %arg2[%c0_83, %c0_84, %c0_85, %c5_86, %c0_87] : memref<1x1x16x8x8xf32, #tpu.memory_space<vmem>>, vector<1x1x16x1x8xf32>
    %86 = vector.shape_cast %85 : vector<1x1x16x1x8xf32> to vector<16x8xf32>
    %cst_88 = arith.constant dense<0.000000e+00> : vector<16x8xf32>
    %87 = tpu.matmul %84, %86, %cst_88 {dimension_numbers = #tpu.dot_dimension_numbers<[1], [0], [0], [1], [0, 0, 1, 1], [], []>} : vector<16x16xf32>, vector<16x8xf32>, vector<16x8xf32> -> vector<16x8xf32>
    %c0_89 = arith.constant 0 : index
    %c0_90 = arith.constant 0 : index
    %c0_91 = arith.constant 0 : index
    %88 = vector.load %arg4[%c0_89, %c0_90, %c0_91] : memref<1x16x1xf32, #tpu.memory_space<vmem>>, vector<1x16x1xf32>
    %89 = vector.shape_cast %88 : vector<1x16x1xf32> to vector<16x1xf32>
    %90 = vector.broadcast %89 : vector<16x1xf32> to vector<16x8xf32>
    %91 = arith.addf %87, %90 : vector<16x8xf32>
    %cst_92 = arith.constant 0.000000e+00 : f32
    %92 = vector.broadcast %cst_92 : f32 to vector<16x8xf32>
    %93 = arith.maximumf %91, %92 : vector<16x8xf32>
    %94 = tpu.concatenate %7, %93, %7 in 1 : vector<16x1xf32>, vector<16x8xf32>, vector<16x1xf32> -> vector<16x10xf32>
    %c6 = arith.constant 6 : index
    %c0_93 = arith.constant 0 : index
    %c0_94 = arith.constant 0 : index
    %95 = vector.load %arg10[%c6, %c0_93, %c0_94] : memref<10x16x10xf32, #tpu.memory_space<vmem>>, vector<1x16x10xf32>
    %96 = vector.shape_cast %95 : vector<1x16x10xf32> to vector<16x10xf32>
    %97 = vector.shape_cast %94 : vector<16x10xf32> to vector<1x16x10xf32>
    tpu.vector_store %arg10[%c6, %c0_93, %c0_94], %97 {strides = array<i32>} : memref<10x16x10xf32, #tpu.memory_space<vmem>>, vector<1x16x10xf32>,
    %c0_95 = arith.constant 0 : index
    %c0_96 = arith.constant 0 : index
    %c0_97 = arith.constant 0 : index
    %98 = vector.load %arg3[%c0_95, %c0_96, %c0_97] : memref<1x16x16xf32, #tpu.memory_space<vmem>>, vector<1x16x16xf32>
    %99 = vector.shape_cast %98 : vector<1x16x16xf32> to vector<16x16xf32>
    %c0_98 = arith.constant 0 : index
    %c0_99 = arith.constant 0 : index
    %c0_100 = arith.constant 0 : index
    %c6_101 = arith.constant 6 : index
    %c0_102 = arith.constant 0 : index
    %100 = vector.load %arg2[%c0_98, %c0_99, %c0_100, %c6_101, %c0_102] : memref<1x1x16x8x8xf32, #tpu.memory_space<vmem>>, vector<1x1x16x1x8xf32>
    %101 = vector.shape_cast %100 : vector<1x1x16x1x8xf32> to vector<16x8xf32>
    %cst_103 = arith.constant dense<0.000000e+00> : vector<16x8xf32>
    %102 = tpu.matmul %99, %101, %cst_103 {dimension_numbers = #tpu.dot_dimension_numbers<[1], [0], [0], [1], [0, 0, 1, 1], [], []>} : vector<16x16xf32>, vector<16x8xf32>, vector<16x8xf32> -> vector<16x8xf32>
    %c0_104 = arith.constant 0 : index
    %c0_105 = arith.constant 0 : index
    %c0_106 = arith.constant 0 : index
    %103 = vector.load %arg4[%c0_104, %c0_105, %c0_106] : memref<1x16x1xf32, #tpu.memory_space<vmem>>, vector<1x16x1xf32>
    %104 = vector.shape_cast %103 : vector<1x16x1xf32> to vector<16x1xf32>
    %105 = vector.broadcast %104 : vector<16x1xf32> to vector<16x8xf32>
    %106 = arith.addf %102, %105 : vector<16x8xf32>
    %cst_107 = arith.constant 0.000000e+00 : f32
    %107 = vector.broadcast %cst_107 : f32 to vector<16x8xf32>
    %108 = arith.maximumf %106, %107 : vector<16x8xf32>
    %109 = tpu.concatenate %7, %108, %7 in 1 : vector<16x1xf32>, vector<16x8xf32>, vector<16x1xf32> -> vector<16x10xf32>
    %c7 = arith.constant 7 : index
    %c0_108 = arith.constant 0 : index
    %c0_109 = arith.constant 0 : index
    %110 = vector.load %arg10[%c7, %c0_108, %c0_109] : memref<10x16x10xf32, #tpu.memory_space<vmem>>, vector<1x16x10xf32>
    %111 = vector.shape_cast %110 : vector<1x16x10xf32> to vector<16x10xf32>
    %112 = vector.shape_cast %109 : vector<16x10xf32> to vector<1x16x10xf32>
    tpu.vector_store %arg10[%c7, %c0_108, %c0_109], %112 {strides = array<i32>} : memref<10x16x10xf32, #tpu.memory_space<vmem>>, vector<1x16x10xf32>,
    %c0_110 = arith.constant 0 : index
    %c0_111 = arith.constant 0 : index
    %c0_112 = arith.constant 0 : index
    %113 = vector.load %arg3[%c0_110, %c0_111, %c0_112] : memref<1x16x16xf32, #tpu.memory_space<vmem>>, vector<1x16x16xf32>
    %114 = vector.shape_cast %113 : vector<1x16x16xf32> to vector<16x16xf32>
    %c0_113 = arith.constant 0 : index
    %c0_114 = arith.constant 0 : index
    %c0_115 = arith.constant 0 : index
    %c7_116 = arith.constant 7 : index
    %c0_117 = arith.constant 0 : index
    %115 = vector.load %arg2[%c0_113, %c0_114, %c0_115, %c7_116, %c0_117] : memref<1x1x16x8x8xf32, #tpu.memory_space<vmem>>, vector<1x1x16x1x8xf32>
    %116 = vector.shape_cast %115 : vector<1x1x16x1x8xf32> to vector<16x8xf32>
    %cst_118 = arith.constant dense<0.000000e+00> : vector<16x8xf32>
    %117 = tpu.matmul %114, %116, %cst_118 {dimension_numbers = #tpu.dot_dimension_numbers<[1], [0], [0], [1], [0, 0, 1, 1], [], []>} : vector<16x16xf32>, vector<16x8xf32>, vector<16x8xf32> -> vector<16x8xf32>
    %c0_119 = arith.constant 0 : index
    %c0_120 = arith.constant 0 : index
    %c0_121 = arith.constant 0 : index
    %118 = vector.load %arg4[%c0_119, %c0_120, %c0_121] : memref<1x16x1xf32, #tpu.memory_space<vmem>>, vector<1x16x1xf32>
    %119 = vector.shape_cast %118 : vector<1x16x1xf32> to vector<16x1xf32>
    %120 = vector.broadcast %119 : vector<16x1xf32> to vector<16x8xf32>
    %121 = arith.addf %117, %120 : vector<16x8xf32>
    %cst_122 = arith.constant 0.000000e+00 : f32
    %122 = vector.broadcast %cst_122 : f32 to vector<16x8xf32>
    %123 = arith.maximumf %121, %122 : vector<16x8xf32>
    %124 = tpu.concatenate %7, %123, %7 in 1 : vector<16x1xf32>, vector<16x8xf32>, vector<16x1xf32> -> vector<16x10xf32>
    %c8 = arith.constant 8 : index
    %c0_123 = arith.constant 0 : index
    %c0_124 = arith.constant 0 : index
    %125 = vector.load %arg10[%c8, %c0_123, %c0_124] : memref<10x16x10xf32, #tpu.memory_space<vmem>>, vector<1x16x10xf32>
    %126 = vector.shape_cast %125 : vector<1x16x10xf32> to vector<16x10xf32>
    %127 = vector.shape_cast %124 : vector<16x10xf32> to vector<1x16x10xf32>
    tpu.vector_store %arg10[%c8, %c0_123, %c0_124], %127 {strides = array<i32>} : memref<10x16x10xf32, #tpu.memory_space<vmem>>, vector<1x16x10xf32>,
    %cst_125 = arith.constant 0.000000e+00 : f32
    %128 = vector.broadcast %cst_125 : f32 to vector<8x8xf32>
    %c0_126 = arith.constant 0 : index
    %c0_127 = arith.constant 0 : index
    %c0_128 = arith.constant 0 : index
    %129 = vector.load %arg10[%c0_126, %c0_127, %c0_128] : memref<10x16x10xf32, #tpu.memory_space<vmem>>, vector<1x16x10xf32>
    %130 = vector.shape_cast %129 : vector<1x16x10xf32> to vector<16x10xf32>
    %c0_129 = arith.constant 0 : index
    %c0_130 = arith.constant 0 : index
    %c0_131 = arith.constant 0 : index
    %c0_132 = arith.constant 0 : index
    %131 = vector.load %arg5[%c0_129, %c0_130, %c0_131, %c0_132] : memref<1x9x8x16xf32, #tpu.memory_space<vmem>>, vector<1x1x8x16xf32>
    %132 = vector.shape_cast %131 : vector<1x1x8x16xf32> to vector<8x16xf32>
    %133 = vector.extract_strided_slice %130 {offsets = [0, 0], sizes = [16, 8], strides = [1, 1]} : vector<16x10xf32> to vector<16x8xf32>
    %cst_133 = arith.constant dense<0.000000e+00> : vector<8x8xf32>
    %134 = tpu.matmul %132, %133, %cst_133 {dimension_numbers = #tpu.dot_dimension_numbers<[1], [0], [0], [1], [0, 0, 1, 1], [], []>} : vector<8x16xf32>, vector<16x8xf32>, vector<8x8xf32> -> vector<8x8xf32>
    %135 = arith.addf %128, %134 : vector<8x8xf32>
    %c0_134 = arith.constant 0 : index
    %c1_135 = arith.constant 1 : index
    %c0_136 = arith.constant 0 : index
    %c0_137 = arith.constant 0 : index
    %136 = vector.load %arg5[%c0_134, %c1_135, %c0_136, %c0_137] : memref<1x9x8x16xf32, #tpu.memory_space<vmem>>, vector<1x1x8x16xf32>
    %137 = vector.shape_cast %136 : vector<1x1x8x16xf32> to vector<8x16xf32>
    %138 = vector.extract_strided_slice %130 {offsets = [0, 1], sizes = [16, 8], strides = [1, 1]} : vector<16x10xf32> to vector<16x8xf32>
    %cst_138 = arith.constant dense<0.000000e+00> : vector<8x8xf32>
    %139 = tpu.matmul %137, %138, %cst_138 {dimension_numbers = #tpu.dot_dimension_numbers<[1], [0], [0], [1], [0, 0, 1, 1], [], []>} : vector<8x16xf32>, vector<16x8xf32>, vector<8x8xf32> -> vector<8x8xf32>
    %140 = arith.addf %135, %139 : vector<8x8xf32>
    %c0_139 = arith.constant 0 : index
    %c2_140 = arith.constant 2 : index
    %c0_141 = arith.constant 0 : index
    %c0_142 = arith.constant 0 : index
    %141 = vector.load %arg5[%c0_139, %c2_140, %c0_141, %c0_142] : memref<1x9x8x16xf32, #tpu.memory_space<vmem>>, vector<1x1x8x16xf32>
    %142 = vector.shape_cast %141 : vector<1x1x8x16xf32> to vector<8x16xf32>
    %143 = vector.extract_strided_slice %130 {offsets = [0, 2], sizes = [16, 8], strides = [1, 1]} : vector<16x10xf32> to vector<16x8xf32>
    %cst_143 = arith.constant dense<0.000000e+00> : vector<8x8xf32>
    %144 = tpu.matmul %142, %143, %cst_143 {dimension_numbers = #tpu.dot_dimension_numbers<[1], [0], [0], [1], [0, 0, 1, 1], [], []>} : vector<8x16xf32>, vector<16x8xf32>, vector<8x8xf32> -> vector<8x8xf32>
    %145 = arith.addf %140, %144 : vector<8x8xf32>
    %c1_144 = arith.constant 1 : index
    %c0_145 = arith.constant 0 : index
    %c0_146 = arith.constant 0 : index
    %146 = vector.load %arg10[%c1_144, %c0_145, %c0_146] : memref<10x16x10xf32, #tpu.memory_space<vmem>>, vector<1x16x10xf32>
    %147 = vector.shape_cast %146 : vector<1x16x10xf32> to vector<16x10xf32>
    %c0_147 = arith.constant 0 : index
    %c3_148 = arith.constant 3 : index
    %c0_149 = arith.constant 0 : index
    %c0_150 = arith.constant 0 : index
    %148 = vector.load %arg5[%c0_147, %c3_148, %c0_149, %c0_150] : memref<1x9x8x16xf32, #tpu.memory_space<vmem>>, vector<1x1x8x16xf32>
    %149 = vector.shape_cast %148 : vector<1x1x8x16xf32> to vector<8x16xf32>
    %150 = vector.extract_strided_slice %147 {offsets = [0, 0], sizes = [16, 8], strides = [1, 1]} : vector<16x10xf32> to vector<16x8xf32>
    %cst_151 = arith.constant dense<0.000000e+00> : vector<8x8xf32>
    %151 = tpu.matmul %149, %150, %cst_151 {dimension_numbers = #tpu.dot_dimension_numbers<[1], [0], [0], [1], [0, 0, 1, 1], [], []>} : vector<8x16xf32>, vector<16x8xf32>, vector<8x8xf32> -> vector<8x8xf32>
    %152 = arith.addf %145, %151 : vector<8x8xf32>
    %c0_152 = arith.constant 0 : index
    %c4_153 = arith.constant 4 : index
    %c0_154 = arith.constant 0 : index
    %c0_155 = arith.constant 0 : index
    %153 = vector.load %arg5[%c0_152, %c4_153, %c0_154, %c0_155] : memref<1x9x8x16xf32, #tpu.memory_space<vmem>>, vector<1x1x8x16xf32>
    %154 = vector.shape_cast %153 : vector<1x1x8x16xf32> to vector<8x16xf32>
    %155 = vector.extract_strided_slice %147 {offsets = [0, 1], sizes = [16, 8], strides = [1, 1]} : vector<16x10xf32> to vector<16x8xf32>
    %cst_156 = arith.constant dense<0.000000e+00> : vector<8x8xf32>
    %156 = tpu.matmul %154, %155, %cst_156 {dimension_numbers = #tpu.dot_dimension_numbers<[1], [0], [0], [1], [0, 0, 1, 1], [], []>} : vector<8x16xf32>, vector<16x8xf32>, vector<8x8xf32> -> vector<8x8xf32>
    %157 = arith.addf %152, %156 : vector<8x8xf32>
    %c0_157 = arith.constant 0 : index
    %c5_158 = arith.constant 5 : index
    %c0_159 = arith.constant 0 : index
    %c0_160 = arith.constant 0 : index
    %158 = vector.load %arg5[%c0_157, %c5_158, %c0_159, %c0_160] : memref<1x9x8x16xf32, #tpu.memory_space<vmem>>, vector<1x1x8x16xf32>
    %159 = vector.shape_cast %158 : vector<1x1x8x16xf32> to vector<8x16xf32>
    %160 = vector.extract_strided_slice %147 {offsets = [0, 2], sizes = [16, 8], strides = [1, 1]} : vector<16x10xf32> to vector<16x8xf32>
    %cst_161 = arith.constant dense<0.000000e+00> : vector<8x8xf32>
    %161 = tpu.matmul %159, %160, %cst_161 {dimension_numbers = #tpu.dot_dimension_numbers<[1], [0], [0], [1], [0, 0, 1, 1], [], []>} : vector<8x16xf32>, vector<16x8xf32>, vector<8x8xf32> -> vector<8x8xf32>
    %162 = arith.addf %157, %161 : vector<8x8xf32>
    %c2_162 = arith.constant 2 : index
    %c0_163 = arith.constant 0 : index
    %c0_164 = arith.constant 0 : index
    %163 = vector.load %arg10[%c2_162, %c0_163, %c0_164] : memref<10x16x10xf32, #tpu.memory_space<vmem>>, vector<1x16x10xf32>
    %164 = vector.shape_cast %163 : vector<1x16x10xf32> to vector<16x10xf32>
    %c0_165 = arith.constant 0 : index
    %c6_166 = arith.constant 6 : index
    %c0_167 = arith.constant 0 : index
    %c0_168 = arith.constant 0 : index
    %165 = vector.load %arg5[%c0_165, %c6_166, %c0_167, %c0_168] : memref<1x9x8x16xf32, #tpu.memory_space<vmem>>, vector<1x1x8x16xf32>
    %166 = vector.shape_cast %165 : vector<1x1x8x16xf32> to vector<8x16xf32>
    %167 = vector.extract_strided_slice %164 {offsets = [0, 0], sizes = [16, 8], strides = [1, 1]} : vector<16x10xf32> to vector<16x8xf32>
    %cst_169 = arith.constant dense<0.000000e+00> : vector<8x8xf32>
    %168 = tpu.matmul %166, %167, %cst_169 {dimension_numbers = #tpu.dot_dimension_numbers<[1], [0], [0], [1], [0, 0, 1, 1], [], []>} : vector<8x16xf32>, vector<16x8xf32>, vector<8x8xf32> -> vector<8x8xf32>
    %169 = arith.addf %162, %168 : vector<8x8xf32>
    %c0_170 = arith.constant 0 : index
    %c7_171 = arith.constant 7 : index
    %c0_172 = arith.constant 0 : index
    %c0_173 = arith.constant 0 : index
    %170 = vector.load %arg5[%c0_170, %c7_171, %c0_172, %c0_173] : memref<1x9x8x16xf32, #tpu.memory_space<vmem>>, vector<1x1x8x16xf32>
    %171 = vector.shape_cast %170 : vector<1x1x8x16xf32> to vector<8x16xf32>
    %172 = vector.extract_strided_slice %164 {offsets = [0, 1], sizes = [16, 8], strides = [1, 1]} : vector<16x10xf32> to vector<16x8xf32>
    %cst_174 = arith.constant dense<0.000000e+00> : vector<8x8xf32>
    %173 = tpu.matmul %171, %172, %cst_174 {dimension_numbers = #tpu.dot_dimension_numbers<[1], [0], [0], [1], [0, 0, 1, 1], [], []>} : vector<8x16xf32>, vector<16x8xf32>, vector<8x8xf32> -> vector<8x8xf32>
    %174 = arith.addf %169, %173 : vector<8x8xf32>
    %c0_175 = arith.constant 0 : index
    %c8_176 = arith.constant 8 : index
    %c0_177 = arith.constant 0 : index
    %c0_178 = arith.constant 0 : index
    %175 = vector.load %arg5[%c0_175, %c8_176, %c0_177, %c0_178] : memref<1x9x8x16xf32, #tpu.memory_space<vmem>>, vector<1x1x8x16xf32>
    %176 = vector.shape_cast %175 : vector<1x1x8x16xf32> to vector<8x16xf32>
    %177 = vector.extract_strided_slice %164 {offsets = [0, 2], sizes = [16, 8], strides = [1, 1]} : vector<16x10xf32> to vector<16x8xf32>
    %cst_179 = arith.constant dense<0.000000e+00> : vector<8x8xf32>
    %178 = tpu.matmul %176, %177, %cst_179 {dimension_numbers = #tpu.dot_dimension_numbers<[1], [0], [0], [1], [0, 0, 1, 1], [], []>} : vector<8x16xf32>, vector<16x8xf32>, vector<8x8xf32> -> vector<8x8xf32>
    %179 = arith.addf %174, %178 : vector<8x8xf32>
    %c0_180 = arith.constant 0 : index
    %c0_181 = arith.constant 0 : index
    %c0_182 = arith.constant 0 : index
    %180 = vector.load %arg6[%c0_180, %c0_181, %c0_182] : memref<1x8x1xf32, #tpu.memory_space<vmem>>, vector<1x8x1xf32>
    %181 = vector.shape_cast %180 : vector<1x8x1xf32> to vector<8x1xf32>
    %182 = vector.broadcast %181 : vector<8x1xf32> to vector<8x8xf32>
    %183 = arith.addf %179, %182 : vector<8x8xf32>
    %c0_183 = arith.constant 0 : index
    %c0_184 = arith.constant 0 : index
    %c0_185 = arith.constant 0 : index
    %184 = vector.load %arg11[%c0_183, %c0_184, %c0_185] : memref<8x8x8xf32, #tpu.memory_space<vmem>>, vector<1x8x8xf32>
    %185 = vector.shape_cast %184 : vector<1x8x8xf32> to vector<8x8xf32>
    %186 = vector.shape_cast %183 : vector<8x8xf32> to vector<1x8x8xf32>
    tpu.vector_store %arg11[%c0_183, %c0_184, %c0_185], %186 {strides = array<i32>} : memref<8x8x8xf32, #tpu.memory_space<vmem>>, vector<1x8x8xf32>,
    %cst_186 = arith.constant 0.000000e+00 : f32
    %187 = vector.broadcast %cst_186 : f32 to vector<8x8xf32>
    %c1_187 = arith.constant 1 : index
    %c0_188 = arith.constant 0 : index
    %c0_189 = arith.constant 0 : index
    %188 = vector.load %arg10[%c1_187, %c0_188, %c0_189] : memref<10x16x10xf32, #tpu.memory_space<vmem>>, vector<1x16x10xf32>
    %189 = vector.shape_cast %188 : vector<1x16x10xf32> to vector<16x10xf32>
    %c0_190 = arith.constant 0 : index
    %c0_191 = arith.constant 0 : index
    %c0_192 = arith.constant 0 : index
    %c0_193 = arith.constant 0 : index
    %190 = vector.load %arg5[%c0_190, %c0_191, %c0_192, %c0_193] : memref<1x9x8x16xf32, #tpu.memory_space<vmem>>, vector<1x1x8x16xf32>
    %191 = vector.shape_cast %190 : vector<1x1x8x16xf32> to vector<8x16xf32>
    %192 = vector.extract_strided_slice %189 {offsets = [0, 0], sizes = [16, 8], strides = [1, 1]} : vector<16x10xf32> to vector<16x8xf32>
    %cst_194 = arith.constant dense<0.000000e+00> : vector<8x8xf32>
    %193 = tpu.matmul %191, %192, %cst_194 {dimension_numbers = #tpu.dot_dimension_numbers<[1], [0], [0], [1], [0, 0, 1, 1], [], []>} : vector<8x16xf32>, vector<16x8xf32>, vector<8x8xf32> -> vector<8x8xf32>
    %194 = arith.addf %187, %193 : vector<8x8xf32>
    %c0_195 = arith.constant 0 : index
    %c1_196 = arith.constant 1 : index
    %c0_197 = arith.constant 0 : index
    %c0_198 = arith.constant 0 : index
    %195 = vector.load %arg5[%c0_195, %c1_196, %c0_197, %c0_198] : memref<1x9x8x16xf32, #tpu.memory_space<vmem>>, vector<1x1x8x16xf32>
    %196 = vector.shape_cast %195 : vector<1x1x8x16xf32> to vector<8x16xf32>
    %197 = vector.extract_strided_slice %189 {offsets = [0, 1], sizes = [16, 8], strides = [1, 1]} : vector<16x10xf32> to vector<16x8xf32>
    %cst_199 = arith.constant dense<0.000000e+00> : vector<8x8xf32>
    %198 = tpu.matmul %196, %197, %cst_199 {dimension_numbers = #tpu.dot_dimension_numbers<[1], [0], [0], [1], [0, 0, 1, 1], [], []>} : vector<8x16xf32>, vector<16x8xf32>, vector<8x8xf32> -> vector<8x8xf32>
    %199 = arith.addf %194, %198 : vector<8x8xf32>
    %c0_200 = arith.constant 0 : index
    %c2_201 = arith.constant 2 : index
    %c0_202 = arith.constant 0 : index
    %c0_203 = arith.constant 0 : index
    %200 = vector.load %arg5[%c0_200, %c2_201, %c0_202, %c0_203] : memref<1x9x8x16xf32, #tpu.memory_space<vmem>>, vector<1x1x8x16xf32>
    %201 = vector.shape_cast %200 : vector<1x1x8x16xf32> to vector<8x16xf32>
    %202 = vector.extract_strided_slice %189 {offsets = [0, 2], sizes = [16, 8], strides = [1, 1]} : vector<16x10xf32> to vector<16x8xf32>
    %cst_204 = arith.constant dense<0.000000e+00> : vector<8x8xf32>
    %203 = tpu.matmul %201, %202, %cst_204 {dimension_numbers = #tpu.dot_dimension_numbers<[1], [0], [0], [1], [0, 0, 1, 1], [], []>} : vector<8x16xf32>, vector<16x8xf32>, vector<8x8xf32> -> vector<8x8xf32>
    %204 = arith.addf %199, %203 : vector<8x8xf32>
    %c2_205 = arith.constant 2 : index
    %c0_206 = arith.constant 0 : index
    %c0_207 = arith.constant 0 : index
    %205 = vector.load %arg10[%c2_205, %c0_206, %c0_207] : memref<10x16x10xf32, #tpu.memory_space<vmem>>, vector<1x16x10xf32>
    %206 = vector.shape_cast %205 : vector<1x16x10xf32> to vector<16x10xf32>
    %c0_208 = arith.constant 0 : index
    %c3_209 = arith.constant 3 : index
    %c0_210 = arith.constant 0 : index
    %c0_211 = arith.constant 0 : index
    %207 = vector.load %arg5[%c0_208, %c3_209, %c0_210, %c0_211] : memref<1x9x8x16xf32, #tpu.memory_space<vmem>>, vector<1x1x8x16xf32>
    %208 = vector.shape_cast %207 : vector<1x1x8x16xf32> to vector<8x16xf32>
    %209 = vector.extract_strided_slice %206 {offsets = [0, 0], sizes = [16, 8], strides = [1, 1]} : vector<16x10xf32> to vector<16x8xf32>
    %cst_212 = arith.constant dense<0.000000e+00> : vector<8x8xf32>
    %210 = tpu.matmul %208, %209, %cst_212 {dimension_numbers = #tpu.dot_dimension_numbers<[1], [0], [0], [1], [0, 0, 1, 1], [], []>} : vector<8x16xf32>, vector<16x8xf32>, vector<8x8xf32> -> vector<8x8xf32>
    %211 = arith.addf %204, %210 : vector<8x8xf32>
    %c0_213 = arith.constant 0 : index
    %c4_214 = arith.constant 4 : index
    %c0_215 = arith.constant 0 : index
    %c0_216 = arith.constant 0 : index
    %212 = vector.load %arg5[%c0_213, %c4_214, %c0_215, %c0_216] : memref<1x9x8x16xf32, #tpu.memory_space<vmem>>, vector<1x1x8x16xf32>
    %213 = vector.shape_cast %212 : vector<1x1x8x16xf32> to vector<8x16xf32>
    %214 = vector.extract_strided_slice %206 {offsets = [0, 1], sizes = [16, 8], strides = [1, 1]} : vector<16x10xf32> to vector<16x8xf32>
    %cst_217 = arith.constant dense<0.000000e+00> : vector<8x8xf32>
    %215 = tpu.matmul %213, %214, %cst_217 {dimension_numbers = #tpu.dot_dimension_numbers<[1], [0], [0], [1], [0, 0, 1, 1], [], []>} : vector<8x16xf32>, vector<16x8xf32>, vector<8x8xf32> -> vector<8x8xf32>
    %216 = arith.addf %211, %215 : vector<8x8xf32>
    %c0_218 = arith.constant 0 : index
    %c5_219 = arith.constant 5 : index
    %c0_220 = arith.constant 0 : index
    %c0_221 = arith.constant 0 : index
    %217 = vector.load %arg5[%c0_218, %c5_219, %c0_220, %c0_221] : memref<1x9x8x16xf32, #tpu.memory_space<vmem>>, vector<1x1x8x16xf32>
    %218 = vector.shape_cast %217 : vector<1x1x8x16xf32> to vector<8x16xf32>
    %219 = vector.extract_strided_slice %206 {offsets = [0, 2], sizes = [16, 8], strides = [1, 1]} : vector<16x10xf32> to vector<16x8xf32>
    %cst_222 = arith.constant dense<0.000000e+00> : vector<8x8xf32>
    %220 = tpu.matmul %218, %219, %cst_222 {dimension_numbers = #tpu.dot_dimension_numbers<[1], [0], [0], [1], [0, 0, 1, 1], [], []>} : vector<8x16xf32>, vector<16x8xf32>, vector<8x8xf32> -> vector<8x8xf32>
    %221 = arith.addf %216, %220 : vector<8x8xf32>
    %c3_223 = arith.constant 3 : index
    %c0_224 = arith.constant 0 : index
    %c0_225 = arith.constant 0 : index
    %222 = vector.load %arg10[%c3_223, %c0_224, %c0_225] : memref<10x16x10xf32, #tpu.memory_space<vmem>>, vector<1x16x10xf32>
    %223 = vector.shape_cast %222 : vector<1x16x10xf32> to vector<16x10xf32>
    %c0_226 = arith.constant 0 : index
    %c6_227 = arith.constant 6 : index
    %c0_228 = arith.constant 0 : index
    %c0_229 = arith.constant 0 : index
    %224 = vector.load %arg5[%c0_226, %c6_227, %c0_228, %c0_229] : memref<1x9x8x16xf32, #tpu.memory_space<vmem>>, vector<1x1x8x16xf32>
    %225 = vector.shape_cast %224 : vector<1x1x8x16xf32> to vector<8x16xf32>
    %226 = vector.extract_strided_slice %223 {offsets = [0, 0], sizes = [16, 8], strides = [1, 1]} : vector<16x10xf32> to vector<16x8xf32>
    %cst_230 = arith.constant dense<0.000000e+00> : vector<8x8xf32>
    %227 = tpu.matmul %225, %226, %cst_230 {dimension_numbers = #tpu.dot_dimension_numbers<[1], [0], [0], [1], [0, 0, 1, 1], [], []>} : vector<8x16xf32>, vector<16x8xf32>, vector<8x8xf32> -> vector<8x8xf32>
    %228 = arith.addf %221, %227 : vector<8x8xf32>
    %c0_231 = arith.constant 0 : index
    %c7_232 = arith.constant 7 : index
    %c0_233 = arith.constant 0 : index
    %c0_234 = arith.constant 0 : index
    %229 = vector.load %arg5[%c0_231, %c7_232, %c0_233, %c0_234] : memref<1x9x8x16xf32, #tpu.memory_space<vmem>>, vector<1x1x8x16xf32>
    %230 = vector.shape_cast %229 : vector<1x1x8x16xf32> to vector<8x16xf32>
    %231 = vector.extract_strided_slice %223 {offsets = [0, 1], sizes = [16, 8], strides = [1, 1]} : vector<16x10xf32> to vector<16x8xf32>
    %cst_235 = arith.constant dense<0.000000e+00> : vector<8x8xf32>
    %232 = tpu.matmul %230, %231, %cst_235 {dimension_numbers = #tpu.dot_dimension_numbers<[1], [0], [0], [1], [0, 0, 1, 1], [], []>} : vector<8x16xf32>, vector<16x8xf32>, vector<8x8xf32> -> vector<8x8xf32>
    %233 = arith.addf %228, %232 : vector<8x8xf32>
    %c0_236 = arith.constant 0 : index
    %c8_237 = arith.constant 8 : index
    %c0_238 = arith.constant 0 : index
    %c0_239 = arith.constant 0 : index
    %234 = vector.load %arg5[%c0_236, %c8_237, %c0_238, %c0_239] : memref<1x9x8x16xf32, #tpu.memory_space<vmem>>, vector<1x1x8x16xf32>
    %235 = vector.shape_cast %234 : vector<1x1x8x16xf32> to vector<8x16xf32>
    %236 = vector.extract_strided_slice %223 {offsets = [0, 2], sizes = [16, 8], strides = [1, 1]} : vector<16x10xf32> to vector<16x8xf32>
    %cst_240 = arith.constant dense<0.000000e+00> : vector<8x8xf32>
    %237 = tpu.matmul %235, %236, %cst_240 {dimension_numbers = #tpu.dot_dimension_numbers<[1], [0], [0], [1], [0, 0, 1, 1], [], []>} : vector<8x16xf32>, vector<16x8xf32>, vector<8x8xf32> -> vector<8x8xf32>
    %238 = arith.addf %233, %237 : vector<8x8xf32>
    %c0_241 = arith.constant 0 : index
    %c0_242 = arith.constant 0 : index
    %c0_243 = arith.constant 0 : index
    %239 = vector.load %arg6[%c0_241, %c0_242, %c0_243] : memref<1x8x1xf32, #tpu.memory_space<vmem>>, vector<1x8x1xf32>
    %240 = vector.shape_cast %239 : vector<1x8x1xf32> to vector<8x1xf32>
    %241 = vector.broadcast %240 : vector<8x1xf32> to vector<8x8xf32>
    %242 = arith.addf %238, %241 : vector<8x8xf32>
    %c1_244 = arith.constant 1 : index
    %c0_245 = arith.constant 0 : index
    %c0_246 = arith.constant 0 : index
    %243 = vector.load %arg11[%c1_244, %c0_245, %c0_246] : memref<8x8x8xf32, #tpu.memory_space<vmem>>, vector<1x8x8xf32>
    %244 = vector.shape_cast %243 : vector<1x8x8xf32> to vector<8x8xf32>
    %245 = vector.shape_cast %242 : vector<8x8xf32> to vector<1x8x8xf32>
    tpu.vector_store %arg11[%c1_244, %c0_245, %c0_246], %245 {strides = array<i32>} : memref<8x8x8xf32, #tpu.memory_space<vmem>>, vector<1x8x8xf32>,
    %cst_247 = arith.constant 0.000000e+00 : f32
    %246 = vector.broadcast %cst_247 : f32 to vector<8x8xf32>
    %c2_248 = arith.constant 2 : index
    %c0_249 = arith.constant 0 : index
    %c0_250 = arith.constant 0 : index
    %247 = vector.load %arg10[%c2_248, %c0_249, %c0_250] : memref<10x16x10xf32, #tpu.memory_space<vmem>>, vector<1x16x10xf32>
    %248 = vector.shape_cast %247 : vector<1x16x10xf32> to vector<16x10xf32>
    %c0_251 = arith.constant 0 : index
    %c0_252 = arith.constant 0 : index
    %c0_253 = arith.constant 0 : index
    %c0_254 = arith.constant 0 : index
    %249 = vector.load %arg5[%c0_251, %c0_252, %c0_253, %c0_254] : memref<1x9x8x16xf32, #tpu.memory_space<vmem>>, vector<1x1x8x16xf32>
    %250 = vector.shape_cast %249 : vector<1x1x8x16xf32> to vector<8x16xf32>
    %251 = vector.extract_strided_slice %248 {offsets = [0, 0], sizes = [16, 8], strides = [1, 1]} : vector<16x10xf32> to vector<16x8xf32>
    %cst_255 = arith.constant dense<0.000000e+00> : vector<8x8xf32>
    %252 = tpu.matmul %250, %251, %cst_255 {dimension_numbers = #tpu.dot_dimension_numbers<[1], [0], [0], [1], [0, 0, 1, 1], [], []>} : vector<8x16xf32>, vector<16x8xf32>, vector<8x8xf32> -> vector<8x8xf32>
    %253 = arith.addf %246, %252 : vector<8x8xf32>
    %c0_256 = arith.constant 0 : index
    %c1_257 = arith.constant 1 : index
    %c0_258 = arith.constant 0 : index
    %c0_259 = arith.constant 0 : index
    %254 = vector.load %arg5[%c0_256, %c1_257, %c0_258, %c0_259] : memref<1x9x8x16xf32, #tpu.memory_space<vmem>>, vector<1x1x8x16xf32>
    %255 = vector.shape_cast %254 : vector<1x1x8x16xf32> to vector<8x16xf32>
    %256 = vector.extract_strided_slice %248 {offsets = [0, 1], sizes = [16, 8], strides = [1, 1]} : vector<16x10xf32> to vector<16x8xf32>
    %cst_260 = arith.constant dense<0.000000e+00> : vector<8x8xf32>
    %257 = tpu.matmul %255, %256, %cst_260 {dimension_numbers = #tpu.dot_dimension_numbers<[1], [0], [0], [1], [0, 0, 1, 1], [], []>} : vector<8x16xf32>, vector<16x8xf32>, vector<8x8xf32> -> vector<8x8xf32>
    %258 = arith.addf %253, %257 : vector<8x8xf32>
    %c0_261 = arith.constant 0 : index
    %c2_262 = arith.constant 2 : index
    %c0_263 = arith.constant 0 : index
    %c0_264 = arith.constant 0 : index
    %259 = vector.load %arg5[%c0_261, %c2_262, %c0_263, %c0_264] : memref<1x9x8x16xf32, #tpu.memory_space<vmem>>, vector<1x1x8x16xf32>
    %260 = vector.shape_cast %259 : vector<1x1x8x16xf32> to vector<8x16xf32>
    %261 = vector.extract_strided_slice %248 {offsets = [0, 2], sizes = [16, 8], strides = [1, 1]} : vector<16x10xf32> to vector<16x8xf32>
    %cst_265 = arith.constant dense<0.000000e+00> : vector<8x8xf32>
    %262 = tpu.matmul %260, %261, %cst_265 {dimension_numbers = #tpu.dot_dimension_numbers<[1], [0], [0], [1], [0, 0, 1, 1], [], []>} : vector<8x16xf32>, vector<16x8xf32>, vector<8x8xf32> -> vector<8x8xf32>
    %263 = arith.addf %258, %262 : vector<8x8xf32>
    %c3_266 = arith.constant 3 : index
    %c0_267 = arith.constant 0 : index
    %c0_268 = arith.constant 0 : index
    %264 = vector.load %arg10[%c3_266, %c0_267, %c0_268] : memref<10x16x10xf32, #tpu.memory_space<vmem>>, vector<1x16x10xf32>
    %265 = vector.shape_cast %264 : vector<1x16x10xf32> to vector<16x10xf32>
    %c0_269 = arith.constant 0 : index
    %c3_270 = arith.constant 3 : index
    %c0_271 = arith.constant 0 : index
    %c0_272 = arith.constant 0 : index
    %266 = vector.load %arg5[%c0_269, %c3_270, %c0_271, %c0_272] : memref<1x9x8x16xf32, #tpu.memory_space<vmem>>, vector<1x1x8x16xf32>
    %267 = vector.shape_cast %266 : vector<1x1x8x16xf32> to vector<8x16xf32>
    %268 = vector.extract_strided_slice %265 {offsets = [0, 0], sizes = [16, 8], strides = [1, 1]} : vector<16x10xf32> to vector<16x8xf32>
    %cst_273 = arith.constant dense<0.000000e+00> : vector<8x8xf32>
    %269 = tpu.matmul %267, %268, %cst_273 {dimension_numbers = #tpu.dot_dimension_numbers<[1], [0], [0], [1], [0, 0, 1, 1], [], []>} : vector<8x16xf32>, vector<16x8xf32>, vector<8x8xf32> -> vector<8x8xf32>
    %270 = arith.addf %263, %269 : vector<8x8xf32>
    %c0_274 = arith.constant 0 : index
    %c4_275 = arith.constant 4 : index
    %c0_276 = arith.constant 0 : index
    %c0_277 = arith.constant 0 : index
    %271 = vector.load %arg5[%c0_274, %c4_275, %c0_276, %c0_277] : memref<1x9x8x16xf32, #tpu.memory_space<vmem>>, vector<1x1x8x16xf32>
    %272 = vector.shape_cast %271 : vector<1x1x8x16xf32> to vector<8x16xf32>
    %273 = vector.extract_strided_slice %265 {offsets = [0, 1], sizes = [16, 8], strides = [1, 1]} : vector<16x10xf32> to vector<16x8xf32>
    %cst_278 = arith.constant dense<0.000000e+00> : vector<8x8xf32>
    %274 = tpu.matmul %272, %273, %cst_278 {dimension_numbers = #tpu.dot_dimension_numbers<[1], [0], [0], [1], [0, 0, 1, 1], [], []>} : vector<8x16xf32>, vector<16x8xf32>, vector<8x8xf32> -> vector<8x8xf32>
    %275 = arith.addf %270, %274 : vector<8x8xf32>
    %c0_279 = arith.constant 0 : index
    %c5_280 = arith.constant 5 : index
    %c0_281 = arith.constant 0 : index
    %c0_282 = arith.constant 0 : index
    %276 = vector.load %arg5[%c0_279, %c5_280, %c0_281, %c0_282] : memref<1x9x8x16xf32, #tpu.memory_space<vmem>>, vector<1x1x8x16xf32>
    %277 = vector.shape_cast %276 : vector<1x1x8x16xf32> to vector<8x16xf32>
    %278 = vector.extract_strided_slice %265 {offsets = [0, 2], sizes = [16, 8], strides = [1, 1]} : vector<16x10xf32> to vector<16x8xf32>
    %cst_283 = arith.constant dense<0.000000e+00> : vector<8x8xf32>
    %279 = tpu.matmul %277, %278, %cst_283 {dimension_numbers = #tpu.dot_dimension_numbers<[1], [0], [0], [1], [0, 0, 1, 1], [], []>} : vector<8x16xf32>, vector<16x8xf32>, vector<8x8xf32> -> vector<8x8xf32>
    %280 = arith.addf %275, %279 : vector<8x8xf32>
    %c4_284 = arith.constant 4 : index
    %c0_285 = arith.constant 0 : index
    %c0_286 = arith.constant 0 : index
    %281 = vector.load %arg10[%c4_284, %c0_285, %c0_286] : memref<10x16x10xf32, #tpu.memory_space<vmem>>, vector<1x16x10xf32>
    %282 = vector.shape_cast %281 : vector<1x16x10xf32> to vector<16x10xf32>
    %c0_287 = arith.constant 0 : index
    %c6_288 = arith.constant 6 : index
    %c0_289 = arith.constant 0 : index
    %c0_290 = arith.constant 0 : index
    %283 = vector.load %arg5[%c0_287, %c6_288, %c0_289, %c0_290] : memref<1x9x8x16xf32, #tpu.memory_space<vmem>>, vector<1x1x8x16xf32>
    %284 = vector.shape_cast %283 : vector<1x1x8x16xf32> to vector<8x16xf32>
    %285 = vector.extract_strided_slice %282 {offsets = [0, 0], sizes = [16, 8], strides = [1, 1]} : vector<16x10xf32> to vector<16x8xf32>
    %cst_291 = arith.constant dense<0.000000e+00> : vector<8x8xf32>
    %286 = tpu.matmul %284, %285, %cst_291 {dimension_numbers = #tpu.dot_dimension_numbers<[1], [0], [0], [1], [0, 0, 1, 1], [], []>} : vector<8x16xf32>, vector<16x8xf32>, vector<8x8xf32> -> vector<8x8xf32>
    %287 = arith.addf %280, %286 : vector<8x8xf32>
    %c0_292 = arith.constant 0 : index
    %c7_293 = arith.constant 7 : index
    %c0_294 = arith.constant 0 : index
    %c0_295 = arith.constant 0 : index
    %288 = vector.load %arg5[%c0_292, %c7_293, %c0_294, %c0_295] : memref<1x9x8x16xf32, #tpu.memory_space<vmem>>, vector<1x1x8x16xf32>
    %289 = vector.shape_cast %288 : vector<1x1x8x16xf32> to vector<8x16xf32>
    %290 = vector.extract_strided_slice %282 {offsets = [0, 1], sizes = [16, 8], strides = [1, 1]} : vector<16x10xf32> to vector<16x8xf32>
    %cst_296 = arith.constant dense<0.000000e+00> : vector<8x8xf32>
    %291 = tpu.matmul %289, %290, %cst_296 {dimension_numbers = #tpu.dot_dimension_numbers<[1], [0], [0], [1], [0, 0, 1, 1], [], []>} : vector<8x16xf32>, vector<16x8xf32>, vector<8x8xf32> -> vector<8x8xf32>
    %292 = arith.addf %287, %291 : vector<8x8xf32>
    %c0_297 = arith.constant 0 : index
    %c8_298 = arith.constant 8 : index
    %c0_299 = arith.constant 0 : index
    %c0_300 = arith.constant 0 : index
    %293 = vector.load %arg5[%c0_297, %c8_298, %c0_299, %c0_300] : memref<1x9x8x16xf32, #tpu.memory_space<vmem>>, vector<1x1x8x16xf32>
    %294 = vector.shape_cast %293 : vector<1x1x8x16xf32> to vector<8x16xf32>
    %295 = vector.extract_strided_slice %282 {offsets = [0, 2], sizes = [16, 8], strides = [1, 1]} : vector<16x10xf32> to vector<16x8xf32>
    %cst_301 = arith.constant dense<0.000000e+00> : vector<8x8xf32>
    %296 = tpu.matmul %294, %295, %cst_301 {dimension_numbers = #tpu.dot_dimension_numbers<[1], [0], [0], [1], [0, 0, 1, 1], [], []>} : vector<8x16xf32>, vector<16x8xf32>, vector<8x8xf32> -> vector<8x8xf32>
    %297 = arith.addf %292, %296 : vector<8x8xf32>
    %c0_302 = arith.constant 0 : index
    %c0_303 = arith.constant 0 : index
    %c0_304 = arith.constant 0 : index
    %298 = vector.load %arg6[%c0_302, %c0_303, %c0_304] : memref<1x8x1xf32, #tpu.memory_space<vmem>>, vector<1x8x1xf32>
    %299 = vector.shape_cast %298 : vector<1x8x1xf32> to vector<8x1xf32>
    %300 = vector.broadcast %299 : vector<8x1xf32> to vector<8x8xf32>
    %301 = arith.addf %297, %300 : vector<8x8xf32>
    %c2_305 = arith.constant 2 : index
    %c0_306 = arith.constant 0 : index
    %c0_307 = arith.constant 0 : index
    %302 = vector.load %arg11[%c2_305, %c0_306, %c0_307] : memref<8x8x8xf32, #tpu.memory_space<vmem>>, vector<1x8x8xf32>
    %303 = vector.shape_cast %302 : vector<1x8x8xf32> to vector<8x8xf32>
    %304 = vector.shape_cast %301 : vector<8x8xf32> to vector<1x8x8xf32>
    tpu.vector_store %arg11[%c2_305, %c0_306, %c0_307], %304 {strides = array<i32>} : memref<8x8x8xf32, #tpu.memory_space<vmem>>, vector<1x8x8xf32>,
    %cst_308 = arith.constant 0.000000e+00 : f32
    %305 = vector.broadcast %cst_308 : f32 to vector<8x8xf32>
    %c3_309 = arith.constant 3 : index
    %c0_310 = arith.constant 0 : index
    %c0_311 = arith.constant 0 : index
    %306 = vector.load %arg10[%c3_309, %c0_310, %c0_311] : memref<10x16x10xf32, #tpu.memory_space<vmem>>, vector<1x16x10xf32>
    %307 = vector.shape_cast %306 : vector<1x16x10xf32> to vector<16x10xf32>
    %c0_312 = arith.constant 0 : index
    %c0_313 = arith.constant 0 : index
    %c0_314 = arith.constant 0 : index
    %c0_315 = arith.constant 0 : index
    %308 = vector.load %arg5[%c0_312, %c0_313, %c0_314, %c0_315] : memref<1x9x8x16xf32, #tpu.memory_space<vmem>>, vector<1x1x8x16xf32>
    %309 = vector.shape_cast %308 : vector<1x1x8x16xf32> to vector<8x16xf32>
    %310 = vector.extract_strided_slice %307 {offsets = [0, 0], sizes = [16, 8], strides = [1, 1]} : vector<16x10xf32> to vector<16x8xf32>
    %cst_316 = arith.constant dense<0.000000e+00> : vector<8x8xf32>
    %311 = tpu.matmul %309, %310, %cst_316 {dimension_numbers = #tpu.dot_dimension_numbers<[1], [0], [0], [1], [0, 0, 1, 1], [], []>} : vector<8x16xf32>, vector<16x8xf32>, vector<8x8xf32> -> vector<8x8xf32>
    %312 = arith.addf %305, %311 : vector<8x8xf32>
    %c0_317 = arith.constant 0 : index
    %c1_318 = arith.constant 1 : index
    %c0_319 = arith.constant 0 : index
    %c0_320 = arith.constant 0 : index
    %313 = vector.load %arg5[%c0_317, %c1_318, %c0_319, %c0_320] : memref<1x9x8x16xf32, #tpu.memory_space<vmem>>, vector<1x1x8x16xf32>
    %314 = vector.shape_cast %313 : vector<1x1x8x16xf32> to vector<8x16xf32>
    %315 = vector.extract_strided_slice %307 {offsets = [0, 1], sizes = [16, 8], strides = [1, 1]} : vector<16x10xf32> to vector<16x8xf32>
    %cst_321 = arith.constant dense<0.000000e+00> : vector<8x8xf32>
    %316 = tpu.matmul %314, %315, %cst_321 {dimension_numbers = #tpu.dot_dimension_numbers<[1], [0], [0], [1], [0, 0, 1, 1], [], []>} : vector<8x16xf32>, vector<16x8xf32>, vector<8x8xf32> -> vector<8x8xf32>
    %317 = arith.addf %312, %316 : vector<8x8xf32>
    %c0_322 = arith.constant 0 : index
    %c2_323 = arith.constant 2 : index
    %c0_324 = arith.constant 0 : index
    %c0_325 = arith.constant 0 : index
    %318 = vector.load %arg5[%c0_322, %c2_323, %c0_324, %c0_325] : memref<1x9x8x16xf32, #tpu.memory_space<vmem>>, vector<1x1x8x16xf32>
    %319 = vector.shape_cast %318 : vector<1x1x8x16xf32> to vector<8x16xf32>
    %320 = vector.extract_strided_slice %307 {offsets = [0, 2], sizes = [16, 8], strides = [1, 1]} : vector<16x10xf32> to vector<16x8xf32>
    %cst_326 = arith.constant dense<0.000000e+00> : vector<8x8xf32>
    %321 = tpu.matmul %319, %320, %cst_326 {dimension_numbers = #tpu.dot_dimension_numbers<[1], [0], [0], [1], [0, 0, 1, 1], [], []>} : vector<8x16xf32>, vector<16x8xf32>, vector<8x8xf32> -> vector<8x8xf32>
    %322 = arith.addf %317, %321 : vector<8x8xf32>
    %c4_327 = arith.constant 4 : index
    %c0_328 = arith.constant 0 : index
    %c0_329 = arith.constant 0 : index
    %323 = vector.load %arg10[%c4_327, %c0_328, %c0_329] : memref<10x16x10xf32, #tpu.memory_space<vmem>>, vector<1x16x10xf32>
    %324 = vector.shape_cast %323 : vector<1x16x10xf32> to vector<16x10xf32>
    %c0_330 = arith.constant 0 : index
    %c3_331 = arith.constant 3 : index
    %c0_332 = arith.constant 0 : index
    %c0_333 = arith.constant 0 : index
    %325 = vector.load %arg5[%c0_330, %c3_331, %c0_332, %c0_333] : memref<1x9x8x16xf32, #tpu.memory_space<vmem>>, vector<1x1x8x16xf32>
    %326 = vector.shape_cast %325 : vector<1x1x8x16xf32> to vector<8x16xf32>
    %327 = vector.extract_strided_slice %324 {offsets = [0, 0], sizes = [16, 8], strides = [1, 1]} : vector<16x10xf32> to vector<16x8xf32>
    %cst_334 = arith.constant dense<0.000000e+00> : vector<8x8xf32>
    %328 = tpu.matmul %326, %327, %cst_334 {dimension_numbers = #tpu.dot_dimension_numbers<[1], [0], [0], [1], [0, 0, 1, 1], [], []>} : vector<8x16xf32>, vector<16x8xf32>, vector<8x8xf32> -> vector<8x8xf32>
    %329 = arith.addf %322, %328 : vector<8x8xf32>
    %c0_335 = arith.constant 0 : index
    %c4_336 = arith.constant 4 : index
    %c0_337 = arith.constant 0 : index
    %c0_338 = arith.constant 0 : index
    %330 = vector.load %arg5[%c0_335, %c4_336, %c0_337, %c0_338] : memref<1x9x8x16xf32, #tpu.memory_space<vmem>>, vector<1x1x8x16xf32>
    %331 = vector.shape_cast %330 : vector<1x1x8x16xf32> to vector<8x16xf32>
    %332 = vector.extract_strided_slice %324 {offsets = [0, 1], sizes = [16, 8], strides = [1, 1]} : vector<16x10xf32> to vector<16x8xf32>
    %cst_339 = arith.constant dense<0.000000e+00> : vector<8x8xf32>
    %333 = tpu.matmul %331, %332, %cst_339 {dimension_numbers = #tpu.dot_dimension_numbers<[1], [0], [0], [1], [0, 0, 1, 1], [], []>} : vector<8x16xf32>, vector<16x8xf32>, vector<8x8xf32> -> vector<8x8xf32>
    %334 = arith.addf %329, %333 : vector<8x8xf32>
    %c0_340 = arith.constant 0 : index
    %c5_341 = arith.constant 5 : index
    %c0_342 = arith.constant 0 : index
    %c0_343 = arith.constant 0 : index
    %335 = vector.load %arg5[%c0_340, %c5_341, %c0_342, %c0_343] : memref<1x9x8x16xf32, #tpu.memory_space<vmem>>, vector<1x1x8x16xf32>
    %336 = vector.shape_cast %335 : vector<1x1x8x16xf32> to vector<8x16xf32>
    %337 = vector.extract_strided_slice %324 {offsets = [0, 2], sizes = [16, 8], strides = [1, 1]} : vector<16x10xf32> to vector<16x8xf32>
    %cst_344 = arith.constant dense<0.000000e+00> : vector<8x8xf32>
    %338 = tpu.matmul %336, %337, %cst_344 {dimension_numbers = #tpu.dot_dimension_numbers<[1], [0], [0], [1], [0, 0, 1, 1], [], []>} : vector<8x16xf32>, vector<16x8xf32>, vector<8x8xf32> -> vector<8x8xf32>
    %339 = arith.addf %334, %338 : vector<8x8xf32>
    %c5_345 = arith.constant 5 : index
    %c0_346 = arith.constant 0 : index
    %c0_347 = arith.constant 0 : index
    %340 = vector.load %arg10[%c5_345, %c0_346, %c0_347] : memref<10x16x10xf32, #tpu.memory_space<vmem>>, vector<1x16x10xf32>
    %341 = vector.shape_cast %340 : vector<1x16x10xf32> to vector<16x10xf32>
    %c0_348 = arith.constant 0 : index
    %c6_349 = arith.constant 6 : index
    %c0_350 = arith.constant 0 : index
    %c0_351 = arith.constant 0 : index
    %342 = vector.load %arg5[%c0_348, %c6_349, %c0_350, %c0_351] : memref<1x9x8x16xf32, #tpu.memory_space<vmem>>, vector<1x1x8x16xf32>
    %343 = vector.shape_cast %342 : vector<1x1x8x16xf32> to vector<8x16xf32>
    %344 = vector.extract_strided_slice %341 {offsets = [0, 0], sizes = [16, 8], strides = [1, 1]} : vector<16x10xf32> to vector<16x8xf32>
    %cst_352 = arith.constant dense<0.000000e+00> : vector<8x8xf32>
    %345 = tpu.matmul %343, %344, %cst_352 {dimension_numbers = #tpu.dot_dimension_numbers<[1], [0], [0], [1], [0, 0, 1, 1], [], []>} : vector<8x16xf32>, vector<16x8xf32>, vector<8x8xf32> -> vector<8x8xf32>
    %346 = arith.addf %339, %345 : vector<8x8xf32>
    %c0_353 = arith.constant 0 : index
    %c7_354 = arith.constant 7 : index
    %c0_355 = arith.constant 0 : index
    %c0_356 = arith.constant 0 : index
    %347 = vector.load %arg5[%c0_353, %c7_354, %c0_355, %c0_356] : memref<1x9x8x16xf32, #tpu.memory_space<vmem>>, vector<1x1x8x16xf32>
    %348 = vector.shape_cast %347 : vector<1x1x8x16xf32> to vector<8x16xf32>
    %349 = vector.extract_strided_slice %341 {offsets = [0, 1], sizes = [16, 8], strides = [1, 1]} : vector<16x10xf32> to vector<16x8xf32>
    %cst_357 = arith.constant dense<0.000000e+00> : vector<8x8xf32>
    %350 = tpu.matmul %348, %349, %cst_357 {dimension_numbers = #tpu.dot_dimension_numbers<[1], [0], [0], [1], [0, 0, 1, 1], [], []>} : vector<8x16xf32>, vector<16x8xf32>, vector<8x8xf32> -> vector<8x8xf32>
    %351 = arith.addf %346, %350 : vector<8x8xf32>
    %c0_358 = arith.constant 0 : index
    %c8_359 = arith.constant 8 : index
    %c0_360 = arith.constant 0 : index
    %c0_361 = arith.constant 0 : index
    %352 = vector.load %arg5[%c0_358, %c8_359, %c0_360, %c0_361] : memref<1x9x8x16xf32, #tpu.memory_space<vmem>>, vector<1x1x8x16xf32>
    %353 = vector.shape_cast %352 : vector<1x1x8x16xf32> to vector<8x16xf32>
    %354 = vector.extract_strided_slice %341 {offsets = [0, 2], sizes = [16, 8], strides = [1, 1]} : vector<16x10xf32> to vector<16x8xf32>
    %cst_362 = arith.constant dense<0.000000e+00> : vector<8x8xf32>
    %355 = tpu.matmul %353, %354, %cst_362 {dimension_numbers = #tpu.dot_dimension_numbers<[1], [0], [0], [1], [0, 0, 1, 1], [], []>} : vector<8x16xf32>, vector<16x8xf32>, vector<8x8xf32> -> vector<8x8xf32>
    %356 = arith.addf %351, %355 : vector<8x8xf32>
    %c0_363 = arith.constant 0 : index
    %c0_364 = arith.constant 0 : index
    %c0_365 = arith.constant 0 : index
    %357 = vector.load %arg6[%c0_363, %c0_364, %c0_365] : memref<1x8x1xf32, #tpu.memory_space<vmem>>, vector<1x8x1xf32>
    %358 = vector.shape_cast %357 : vector<1x8x1xf32> to vector<8x1xf32>
    %359 = vector.broadcast %358 : vector<8x1xf32> to vector<8x8xf32>
    %360 = arith.addf %356, %359 : vector<8x8xf32>
    %c3_366 = arith.constant 3 : index
    %c0_367 = arith.constant 0 : index
    %c0_368 = arith.constant 0 : index
    %361 = vector.load %arg11[%c3_366, %c0_367, %c0_368] : memref<8x8x8xf32, #tpu.memory_space<vmem>>, vector<1x8x8xf32>
    %362 = vector.shape_cast %361 : vector<1x8x8xf32> to vector<8x8xf32>
    %363 = vector.shape_cast %360 : vector<8x8xf32> to vector<1x8x8xf32>
    tpu.vector_store %arg11[%c3_366, %c0_367, %c0_368], %363 {strides = array<i32>} : memref<8x8x8xf32, #tpu.memory_space<vmem>>, vector<1x8x8xf32>,
    %cst_369 = arith.constant 0.000000e+00 : f32
    %364 = vector.broadcast %cst_369 : f32 to vector<8x8xf32>
    %c4_370 = arith.constant 4 : index
    %c0_371 = arith.constant 0 : index
    %c0_372 = arith.constant 0 : index
    %365 = vector.load %arg10[%c4_370, %c0_371, %c0_372] : memref<10x16x10xf32, #tpu.memory_space<vmem>>, vector<1x16x10xf32>
    %366 = vector.shape_cast %365 : vector<1x16x10xf32> to vector<16x10xf32>
    %c0_373 = arith.constant 0 : index
    %c0_374 = arith.constant 0 : index
    %c0_375 = arith.constant 0 : index
    %c0_376 = arith.constant 0 : index
    %367 = vector.load %arg5[%c0_373, %c0_374, %c0_375, %c0_376] : memref<1x9x8x16xf32, #tpu.memory_space<vmem>>, vector<1x1x8x16xf32>
    %368 = vector.shape_cast %367 : vector<1x1x8x16xf32> to vector<8x16xf32>
    %369 = vector.extract_strided_slice %366 {offsets = [0, 0], sizes = [16, 8], strides = [1, 1]} : vector<16x10xf32> to vector<16x8xf32>
    %cst_377 = arith.constant dense<0.000000e+00> : vector<8x8xf32>
    %370 = tpu.matmul %368, %369, %cst_377 {dimension_numbers = #tpu.dot_dimension_numbers<[1], [0], [0], [1], [0, 0, 1, 1], [], []>} : vector<8x16xf32>, vector<16x8xf32>, vector<8x8xf32> -> vector<8x8xf32>
    %371 = arith.addf %364, %370 : vector<8x8xf32>
    %c0_378 = arith.constant 0 : index
    %c1_379 = arith.constant 1 : index
    %c0_380 = arith.constant 0 : index
    %c0_381 = arith.constant 0 : index
    %372 = vector.load %arg5[%c0_378, %c1_379, %c0_380, %c0_381] : memref<1x9x8x16xf32, #tpu.memory_space<vmem>>, vector<1x1x8x16xf32>
    %373 = vector.shape_cast %372 : vector<1x1x8x16xf32> to vector<8x16xf32>
    %374 = vector.extract_strided_slice %366 {offsets = [0, 1], sizes = [16, 8], strides = [1, 1]} : vector<16x10xf32> to vector<16x8xf32>
    %cst_382 = arith.constant dense<0.000000e+00> : vector<8x8xf32>
    %375 = tpu.matmul %373, %374, %cst_382 {dimension_numbers = #tpu.dot_dimension_numbers<[1], [0], [0], [1], [0, 0, 1, 1], [], []>} : vector<8x16xf32>, vector<16x8xf32>, vector<8x8xf32> -> vector<8x8xf32>
    %376 = arith.addf %371, %375 : vector<8x8xf32>
    %c0_383 = arith.constant 0 : index
    %c2_384 = arith.constant 2 : index
    %c0_385 = arith.constant 0 : index
    %c0_386 = arith.constant 0 : index
    %377 = vector.load %arg5[%c0_383, %c2_384, %c0_385, %c0_386] : memref<1x9x8x16xf32, #tpu.memory_space<vmem>>, vector<1x1x8x16xf32>
    %378 = vector.shape_cast %377 : vector<1x1x8x16xf32> to vector<8x16xf32>
    %379 = vector.extract_strided_slice %366 {offsets = [0, 2], sizes = [16, 8], strides = [1, 1]} : vector<16x10xf32> to vector<16x8xf32>
    %cst_387 = arith.constant dense<0.000000e+00> : vector<8x8xf32>
    %380 = tpu.matmul %378, %379, %cst_387 {dimension_numbers = #tpu.dot_dimension_numbers<[1], [0], [0], [1], [0, 0, 1, 1], [], []>} : vector<8x16xf32>, vector<16x8xf32>, vector<8x8xf32> -> vector<8x8xf32>
    %381 = arith.addf %376, %380 : vector<8x8xf32>
    %c5_388 = arith.constant 5 : index
    %c0_389 = arith.constant 0 : index
    %c0_390 = arith.constant 0 : index
    %382 = vector.load %arg10[%c5_388, %c0_389, %c0_390] : memref<10x16x10xf32, #tpu.memory_space<vmem>>, vector<1x16x10xf32>
    %383 = vector.shape_cast %382 : vector<1x16x10xf32> to vector<16x10xf32>
    %c0_391 = arith.constant 0 : index
    %c3_392 = arith.constant 3 : index
    %c0_393 = arith.constant 0 : index
    %c0_394 = arith.constant 0 : index
    %384 = vector.load %arg5[%c0_391, %c3_392, %c0_393, %c0_394] : memref<1x9x8x16xf32, #tpu.memory_space<vmem>>, vector<1x1x8x16xf32>
    %385 = vector.shape_cast %384 : vector<1x1x8x16xf32> to vector<8x16xf32>
    %386 = vector.extract_strided_slice %383 {offsets = [0, 0], sizes = [16, 8], strides = [1, 1]} : vector<16x10xf32> to vector<16x8xf32>
    %cst_395 = arith.constant dense<0.000000e+00> : vector<8x8xf32>
    %387 = tpu.matmul %385, %386, %cst_395 {dimension_numbers = #tpu.dot_dimension_numbers<[1], [0], [0], [1], [0, 0, 1, 1], [], []>} : vector<8x16xf32>, vector<16x8xf32>, vector<8x8xf32> -> vector<8x8xf32>
    %388 = arith.addf %381, %387 : vector<8x8xf32>
    %c0_396 = arith.constant 0 : index
    %c4_397 = arith.constant 4 : index
    %c0_398 = arith.constant 0 : index
    %c0_399 = arith.constant 0 : index
    %389 = vector.load %arg5[%c0_396, %c4_397, %c0_398, %c0_399] : memref<1x9x8x16xf32, #tpu.memory_space<vmem>>, vector<1x1x8x16xf32>
    %390 = vector.shape_cast %389 : vector<1x1x8x16xf32> to vector<8x16xf32>
    %391 = vector.extract_strided_slice %383 {offsets = [0, 1], sizes = [16, 8], strides = [1, 1]} : vector<16x10xf32> to vector<16x8xf32>
    %cst_400 = arith.constant dense<0.000000e+00> : vector<8x8xf32>
    %392 = tpu.matmul %390, %391, %cst_400 {dimension_numbers = #tpu.dot_dimension_numbers<[1], [0], [0], [1], [0, 0, 1, 1], [], []>} : vector<8x16xf32>, vector<16x8xf32>, vector<8x8xf32> -> vector<8x8xf32>
    %393 = arith.addf %388, %392 : vector<8x8xf32>
    %c0_401 = arith.constant 0 : index
    %c5_402 = arith.constant 5 : index
    %c0_403 = arith.constant 0 : index
    %c0_404 = arith.constant 0 : index
    %394 = vector.load %arg5[%c0_401, %c5_402, %c0_403, %c0_404] : memref<1x9x8x16xf32, #tpu.memory_space<vmem>>, vector<1x1x8x16xf32>
    %395 = vector.shape_cast %394 : vector<1x1x8x16xf32> to vector<8x16xf32>
    %396 = vector.extract_strided_slice %383 {offsets = [0, 2], sizes = [16, 8], strides = [1, 1]} : vector<16x10xf32> to vector<16x8xf32>
    %cst_405 = arith.constant dense<0.000000e+00> : vector<8x8xf32>
    %397 = tpu.matmul %395, %396, %cst_405 {dimension_numbers = #tpu.dot_dimension_numbers<[1], [0], [0], [1], [0, 0, 1, 1], [], []>} : vector<8x16xf32>, vector<16x8xf32>, vector<8x8xf32> -> vector<8x8xf32>
    %398 = arith.addf %393, %397 : vector<8x8xf32>
    %c6_406 = arith.constant 6 : index
    %c0_407 = arith.constant 0 : index
    %c0_408 = arith.constant 0 : index
    %399 = vector.load %arg10[%c6_406, %c0_407, %c0_408] : memref<10x16x10xf32, #tpu.memory_space<vmem>>, vector<1x16x10xf32>
    %400 = vector.shape_cast %399 : vector<1x16x10xf32> to vector<16x10xf32>
    %c0_409 = arith.constant 0 : index
    %c6_410 = arith.constant 6 : index
    %c0_411 = arith.constant 0 : index
    %c0_412 = arith.constant 0 : index
    %401 = vector.load %arg5[%c0_409, %c6_410, %c0_411, %c0_412] : memref<1x9x8x16xf32, #tpu.memory_space<vmem>>, vector<1x1x8x16xf32>
    %402 = vector.shape_cast %401 : vector<1x1x8x16xf32> to vector<8x16xf32>
    %403 = vector.extract_strided_slice %400 {offsets = [0, 0], sizes = [16, 8], strides = [1, 1]} : vector<16x10xf32> to vector<16x8xf32>
    %cst_413 = arith.constant dense<0.000000e+00> : vector<8x8xf32>
    %404 = tpu.matmul %402, %403, %cst_413 {dimension_numbers = #tpu.dot_dimension_numbers<[1], [0], [0], [1], [0, 0, 1, 1], [], []>} : vector<8x16xf32>, vector<16x8xf32>, vector<8x8xf32> -> vector<8x8xf32>
    %405 = arith.addf %398, %404 : vector<8x8xf32>
    %c0_414 = arith.constant 0 : index
    %c7_415 = arith.constant 7 : index
    %c0_416 = arith.constant 0 : index
    %c0_417 = arith.constant 0 : index
    %406 = vector.load %arg5[%c0_414, %c7_415, %c0_416, %c0_417] : memref<1x9x8x16xf32, #tpu.memory_space<vmem>>, vector<1x1x8x16xf32>
    %407 = vector.shape_cast %406 : vector<1x1x8x16xf32> to vector<8x16xf32>
    %408 = vector.extract_strided_slice %400 {offsets = [0, 1], sizes = [16, 8], strides = [1, 1]} : vector<16x10xf32> to vector<16x8xf32>
    %cst_418 = arith.constant dense<0.000000e+00> : vector<8x8xf32>
    %409 = tpu.matmul %407, %408, %cst_418 {dimension_numbers = #tpu.dot_dimension_numbers<[1], [0], [0], [1], [0, 0, 1, 1], [], []>} : vector<8x16xf32>, vector<16x8xf32>, vector<8x8xf32> -> vector<8x8xf32>
    %410 = arith.addf %405, %409 : vector<8x8xf32>
    %c0_419 = arith.constant 0 : index
    %c8_420 = arith.constant 8 : index
    %c0_421 = arith.constant 0 : index
    %c0_422 = arith.constant 0 : index
    %411 = vector.load %arg5[%c0_419, %c8_420, %c0_421, %c0_422] : memref<1x9x8x16xf32, #tpu.memory_space<vmem>>, vector<1x1x8x16xf32>
    %412 = vector.shape_cast %411 : vector<1x1x8x16xf32> to vector<8x16xf32>
    %413 = vector.extract_strided_slice %400 {offsets = [0, 2], sizes = [16, 8], strides = [1, 1]} : vector<16x10xf32> to vector<16x8xf32>
    %cst_423 = arith.constant dense<0.000000e+00> : vector<8x8xf32>
    %414 = tpu.matmul %412, %413, %cst_423 {dimension_numbers = #tpu.dot_dimension_numbers<[1], [0], [0], [1], [0, 0, 1, 1], [], []>} : vector<8x16xf32>, vector<16x8xf32>, vector<8x8xf32> -> vector<8x8xf32>
    %415 = arith.addf %410, %414 : vector<8x8xf32>
    %c0_424 = arith.constant 0 : index
    %c0_425 = arith.constant 0 : index
    %c0_426 = arith.constant 0 : index
    %416 = vector.load %arg6[%c0_424, %c0_425, %c0_426] : memref<1x8x1xf32, #tpu.memory_space<vmem>>, vector<1x8x1xf32>
    %417 = vector.shape_cast %416 : vector<1x8x1xf32> to vector<8x1xf32>
    %418 = vector.broadcast %417 : vector<8x1xf32> to vector<8x8xf32>
    %419 = arith.addf %415, %418 : vector<8x8xf32>
    %c4_427 = arith.constant 4 : index
    %c0_428 = arith.constant 0 : index
    %c0_429 = arith.constant 0 : index
    %420 = vector.load %arg11[%c4_427, %c0_428, %c0_429] : memref<8x8x8xf32, #tpu.memory_space<vmem>>, vector<1x8x8xf32>
    %421 = vector.shape_cast %420 : vector<1x8x8xf32> to vector<8x8xf32>
    %422 = vector.shape_cast %419 : vector<8x8xf32> to vector<1x8x8xf32>
    tpu.vector_store %arg11[%c4_427, %c0_428, %c0_429], %422 {strides = array<i32>} : memref<8x8x8xf32, #tpu.memory_space<vmem>>, vector<1x8x8xf32>,
    %cst_430 = arith.constant 0.000000e+00 : f32
    %423 = vector.broadcast %cst_430 : f32 to vector<8x8xf32>
    %c5_431 = arith.constant 5 : index
    %c0_432 = arith.constant 0 : index
    %c0_433 = arith.constant 0 : index
    %424 = vector.load %arg10[%c5_431, %c0_432, %c0_433] : memref<10x16x10xf32, #tpu.memory_space<vmem>>, vector<1x16x10xf32>
    %425 = vector.shape_cast %424 : vector<1x16x10xf32> to vector<16x10xf32>
    %c0_434 = arith.constant 0 : index
    %c0_435 = arith.constant 0 : index
    %c0_436 = arith.constant 0 : index
    %c0_437 = arith.constant 0 : index
    %426 = vector.load %arg5[%c0_434, %c0_435, %c0_436, %c0_437] : memref<1x9x8x16xf32, #tpu.memory_space<vmem>>, vector<1x1x8x16xf32>
    %427 = vector.shape_cast %426 : vector<1x1x8x16xf32> to vector<8x16xf32>
    %428 = vector.extract_strided_slice %425 {offsets = [0, 0], sizes = [16, 8], strides = [1, 1]} : vector<16x10xf32> to vector<16x8xf32>
    %cst_438 = arith.constant dense<0.000000e+00> : vector<8x8xf32>
    %429 = tpu.matmul %427, %428, %cst_438 {dimension_numbers = #tpu.dot_dimension_numbers<[1], [0], [0], [1], [0, 0, 1, 1], [], []>} : vector<8x16xf32>, vector<16x8xf32>, vector<8x8xf32> -> vector<8x8xf32>
    %430 = arith.addf %423, %429 : vector<8x8xf32>
    %c0_439 = arith.constant 0 : index
    %c1_440 = arith.constant 1 : index
    %c0_441 = arith.constant 0 : index
    %c0_442 = arith.constant 0 : index
    %431 = vector.load %arg5[%c0_439, %c1_440, %c0_441, %c0_442] : memref<1x9x8x16xf32, #tpu.memory_space<vmem>>, vector<1x1x8x16xf32>
    %432 = vector.shape_cast %431 : vector<1x1x8x16xf32> to vector<8x16xf32>
    %433 = vector.extract_strided_slice %425 {offsets = [0, 1], sizes = [16, 8], strides = [1, 1]} : vector<16x10xf32> to vector<16x8xf32>
    %cst_443 = arith.constant dense<0.000000e+00> : vector<8x8xf32>
    %434 = tpu.matmul %432, %433, %cst_443 {dimension_numbers = #tpu.dot_dimension_numbers<[1], [0], [0], [1], [0, 0, 1, 1], [], []>} : vector<8x16xf32>, vector<16x8xf32>, vector<8x8xf32> -> vector<8x8xf32>
    %435 = arith.addf %430, %434 : vector<8x8xf32>
    %c0_444 = arith.constant 0 : index
    %c2_445 = arith.constant 2 : index
    %c0_446 = arith.constant 0 : index
    %c0_447 = arith.constant 0 : index
    %436 = vector.load %arg5[%c0_444, %c2_445, %c0_446, %c0_447] : memref<1x9x8x16xf32, #tpu.memory_space<vmem>>, vector<1x1x8x16xf32>
    %437 = vector.shape_cast %436 : vector<1x1x8x16xf32> to vector<8x16xf32>
    %438 = vector.extract_strided_slice %425 {offsets = [0, 2], sizes = [16, 8], strides = [1, 1]} : vector<16x10xf32> to vector<16x8xf32>
    %cst_448 = arith.constant dense<0.000000e+00> : vector<8x8xf32>
    %439 = tpu.matmul %437, %438, %cst_448 {dimension_numbers = #tpu.dot_dimension_numbers<[1], [0], [0], [1], [0, 0, 1, 1], [], []>} : vector<8x16xf32>, vector<16x8xf32>, vector<8x8xf32> -> vector<8x8xf32>
    %440 = arith.addf %435, %439 : vector<8x8xf32>
    %c6_449 = arith.constant 6 : index
    %c0_450 = arith.constant 0 : index
    %c0_451 = arith.constant 0 : index
    %441 = vector.load %arg10[%c6_449, %c0_450, %c0_451] : memref<10x16x10xf32, #tpu.memory_space<vmem>>, vector<1x16x10xf32>
    %442 = vector.shape_cast %441 : vector<1x16x10xf32> to vector<16x10xf32>
    %c0_452 = arith.constant 0 : index
    %c3_453 = arith.constant 3 : index
    %c0_454 = arith.constant 0 : index
    %c0_455 = arith.constant 0 : index
    %443 = vector.load %arg5[%c0_452, %c3_453, %c0_454, %c0_455] : memref<1x9x8x16xf32, #tpu.memory_space<vmem>>, vector<1x1x8x16xf32>
    %444 = vector.shape_cast %443 : vector<1x1x8x16xf32> to vector<8x16xf32>
    %445 = vector.extract_strided_slice %442 {offsets = [0, 0], sizes = [16, 8], strides = [1, 1]} : vector<16x10xf32> to vector<16x8xf32>
    %cst_456 = arith.constant dense<0.000000e+00> : vector<8x8xf32>
    %446 = tpu.matmul %444, %445, %cst_456 {dimension_numbers = #tpu.dot_dimension_numbers<[1], [0], [0], [1], [0, 0, 1, 1], [], []>} : vector<8x16xf32>, vector<16x8xf32>, vector<8x8xf32> -> vector<8x8xf32>
    %447 = arith.addf %440, %446 : vector<8x8xf32>
    %c0_457 = arith.constant 0 : index
    %c4_458 = arith.constant 4 : index
    %c0_459 = arith.constant 0 : index
    %c0_460 = arith.constant 0 : index
    %448 = vector.load %arg5[%c0_457, %c4_458, %c0_459, %c0_460] : memref<1x9x8x16xf32, #tpu.memory_space<vmem>>, vector<1x1x8x16xf32>
    %449 = vector.shape_cast %448 : vector<1x1x8x16xf32> to vector<8x16xf32>
    %450 = vector.extract_strided_slice %442 {offsets = [0, 1], sizes = [16, 8], strides = [1, 1]} : vector<16x10xf32> to vector<16x8xf32>
    %cst_461 = arith.constant dense<0.000000e+00> : vector<8x8xf32>
    %451 = tpu.matmul %449, %450, %cst_461 {dimension_numbers = #tpu.dot_dimension_numbers<[1], [0], [0], [1], [0, 0, 1, 1], [], []>} : vector<8x16xf32>, vector<16x8xf32>, vector<8x8xf32> -> vector<8x8xf32>
    %452 = arith.addf %447, %451 : vector<8x8xf32>
    %c0_462 = arith.constant 0 : index
    %c5_463 = arith.constant 5 : index
    %c0_464 = arith.constant 0 : index
    %c0_465 = arith.constant 0 : index
    %453 = vector.load %arg5[%c0_462, %c5_463, %c0_464, %c0_465] : memref<1x9x8x16xf32, #tpu.memory_space<vmem>>, vector<1x1x8x16xf32>
    %454 = vector.shape_cast %453 : vector<1x1x8x16xf32> to vector<8x16xf32>
    %455 = vector.extract_strided_slice %442 {offsets = [0, 2], sizes = [16, 8], strides = [1, 1]} : vector<16x10xf32> to vector<16x8xf32>
    %cst_466 = arith.constant dense<0.000000e+00> : vector<8x8xf32>
    %456 = tpu.matmul %454, %455, %cst_466 {dimension_numbers = #tpu.dot_dimension_numbers<[1], [0], [0], [1], [0, 0, 1, 1], [], []>} : vector<8x16xf32>, vector<16x8xf32>, vector<8x8xf32> -> vector<8x8xf32>
    %457 = arith.addf %452, %456 : vector<8x8xf32>
    %c7_467 = arith.constant 7 : index
    %c0_468 = arith.constant 0 : index
    %c0_469 = arith.constant 0 : index
    %458 = vector.load %arg10[%c7_467, %c0_468, %c0_469] : memref<10x16x10xf32, #tpu.memory_space<vmem>>, vector<1x16x10xf32>
    %459 = vector.shape_cast %458 : vector<1x16x10xf32> to vector<16x10xf32>
    %c0_470 = arith.constant 0 : index
    %c6_471 = arith.constant 6 : index
    %c0_472 = arith.constant 0 : index
    %c0_473 = arith.constant 0 : index
    %460 = vector.load %arg5[%c0_470, %c6_471, %c0_472, %c0_473] : memref<1x9x8x16xf32, #tpu.memory_space<vmem>>, vector<1x1x8x16xf32>
    %461 = vector.shape_cast %460 : vector<1x1x8x16xf32> to vector<8x16xf32>
    %462 = vector.extract_strided_slice %459 {offsets = [0, 0], sizes = [16, 8], strides = [1, 1]} : vector<16x10xf32> to vector<16x8xf32>
    %cst_474 = arith.constant dense<0.000000e+00> : vector<8x8xf32>
    %463 = tpu.matmul %461, %462, %cst_474 {dimension_numbers = #tpu.dot_dimension_numbers<[1], [0], [0], [1], [0, 0, 1, 1], [], []>} : vector<8x16xf32>, vector<16x8xf32>, vector<8x8xf32> -> vector<8x8xf32>
    %464 = arith.addf %457, %463 : vector<8x8xf32>
    %c0_475 = arith.constant 0 : index
    %c7_476 = arith.constant 7 : index
    %c0_477 = arith.constant 0 : index
    %c0_478 = arith.constant 0 : index
    %465 = vector.load %arg5[%c0_475, %c7_476, %c0_477, %c0_478] : memref<1x9x8x16xf32, #tpu.memory_space<vmem>>, vector<1x1x8x16xf32>
    %466 = vector.shape_cast %465 : vector<1x1x8x16xf32> to vector<8x16xf32>
    %467 = vector.extract_strided_slice %459 {offsets = [0, 1], sizes = [16, 8], strides = [1, 1]} : vector<16x10xf32> to vector<16x8xf32>
    %cst_479 = arith.constant dense<0.000000e+00> : vector<8x8xf32>
    %468 = tpu.matmul %466, %467, %cst_479 {dimension_numbers = #tpu.dot_dimension_numbers<[1], [0], [0], [1], [0, 0, 1, 1], [], []>} : vector<8x16xf32>, vector<16x8xf32>, vector<8x8xf32> -> vector<8x8xf32>
    %469 = arith.addf %464, %468 : vector<8x8xf32>
    %c0_480 = arith.constant 0 : index
    %c8_481 = arith.constant 8 : index
    %c0_482 = arith.constant 0 : index
    %c0_483 = arith.constant 0 : index
    %470 = vector.load %arg5[%c0_480, %c8_481, %c0_482, %c0_483] : memref<1x9x8x16xf32, #tpu.memory_space<vmem>>, vector<1x1x8x16xf32>
    %471 = vector.shape_cast %470 : vector<1x1x8x16xf32> to vector<8x16xf32>
    %472 = vector.extract_strided_slice %459 {offsets = [0, 2], sizes = [16, 8], strides = [1, 1]} : vector<16x10xf32> to vector<16x8xf32>
    %cst_484 = arith.constant dense<0.000000e+00> : vector<8x8xf32>
    %473 = tpu.matmul %471, %472, %cst_484 {dimension_numbers = #tpu.dot_dimension_numbers<[1], [0], [0], [1], [0, 0, 1, 1], [], []>} : vector<8x16xf32>, vector<16x8xf32>, vector<8x8xf32> -> vector<8x8xf32>
    %474 = arith.addf %469, %473 : vector<8x8xf32>
    %c0_485 = arith.constant 0 : index
    %c0_486 = arith.constant 0 : index
    %c0_487 = arith.constant 0 : index
    %475 = vector.load %arg6[%c0_485, %c0_486, %c0_487] : memref<1x8x1xf32, #tpu.memory_space<vmem>>, vector<1x8x1xf32>
    %476 = vector.shape_cast %475 : vector<1x8x1xf32> to vector<8x1xf32>
    %477 = vector.broadcast %476 : vector<8x1xf32> to vector<8x8xf32>
    %478 = arith.addf %474, %477 : vector<8x8xf32>
    %c5_488 = arith.constant 5 : index
    %c0_489 = arith.constant 0 : index
    %c0_490 = arith.constant 0 : index
    %479 = vector.load %arg11[%c5_488, %c0_489, %c0_490] : memref<8x8x8xf32, #tpu.memory_space<vmem>>, vector<1x8x8xf32>
    %480 = vector.shape_cast %479 : vector<1x8x8xf32> to vector<8x8xf32>
    %481 = vector.shape_cast %478 : vector<8x8xf32> to vector<1x8x8xf32>
    tpu.vector_store %arg11[%c5_488, %c0_489, %c0_490], %481 {strides = array<i32>} : memref<8x8x8xf32, #tpu.memory_space<vmem>>, vector<1x8x8xf32>,
    %cst_491 = arith.constant 0.000000e+00 : f32
    %482 = vector.broadcast %cst_491 : f32 to vector<8x8xf32>
    %c6_492 = arith.constant 6 : index
    %c0_493 = arith.constant 0 : index
    %c0_494 = arith.constant 0 : index
    %483 = vector.load %arg10[%c6_492, %c0_493, %c0_494] : memref<10x16x10xf32, #tpu.memory_space<vmem>>, vector<1x16x10xf32>
    %484 = vector.shape_cast %483 : vector<1x16x10xf32> to vector<16x10xf32>
    %c0_495 = arith.constant 0 : index
    %c0_496 = arith.constant 0 : index
    %c0_497 = arith.constant 0 : index
    %c0_498 = arith.constant 0 : index
    %485 = vector.load %arg5[%c0_495, %c0_496, %c0_497, %c0_498] : memref<1x9x8x16xf32, #tpu.memory_space<vmem>>, vector<1x1x8x16xf32>
    %486 = vector.shape_cast %485 : vector<1x1x8x16xf32> to vector<8x16xf32>
    %487 = vector.extract_strided_slice %484 {offsets = [0, 0], sizes = [16, 8], strides = [1, 1]} : vector<16x10xf32> to vector<16x8xf32>
    %cst_499 = arith.constant dense<0.000000e+00> : vector<8x8xf32>
    %488 = tpu.matmul %486, %487, %cst_499 {dimension_numbers = #tpu.dot_dimension_numbers<[1], [0], [0], [1], [0, 0, 1, 1], [], []>} : vector<8x16xf32>, vector<16x8xf32>, vector<8x8xf32> -> vector<8x8xf32>
    %489 = arith.addf %482, %488 : vector<8x8xf32>
    %c0_500 = arith.constant 0 : index
    %c1_501 = arith.constant 1 : index
    %c0_502 = arith.constant 0 : index
    %c0_503 = arith.constant 0 : index
    %490 = vector.load %arg5[%c0_500, %c1_501, %c0_502, %c0_503] : memref<1x9x8x16xf32, #tpu.memory_space<vmem>>, vector<1x1x8x16xf32>
    %491 = vector.shape_cast %490 : vector<1x1x8x16xf32> to vector<8x16xf32>
    %492 = vector.extract_strided_slice %484 {offsets = [0, 1], sizes = [16, 8], strides = [1, 1]} : vector<16x10xf32> to vector<16x8xf32>
    %cst_504 = arith.constant dense<0.000000e+00> : vector<8x8xf32>
    %493 = tpu.matmul %491, %492, %cst_504 {dimension_numbers = #tpu.dot_dimension_numbers<[1], [0], [0], [1], [0, 0, 1, 1], [], []>} : vector<8x16xf32>, vector<16x8xf32>, vector<8x8xf32> -> vector<8x8xf32>
    %494 = arith.addf %489, %493 : vector<8x8xf32>
    %c0_505 = arith.constant 0 : index
    %c2_506 = arith.constant 2 : index
    %c0_507 = arith.constant 0 : index
    %c0_508 = arith.constant 0 : index
    %495 = vector.load %arg5[%c0_505, %c2_506, %c0_507, %c0_508] : memref<1x9x8x16xf32, #tpu.memory_space<vmem>>, vector<1x1x8x16xf32>
    %496 = vector.shape_cast %495 : vector<1x1x8x16xf32> to vector<8x16xf32>
    %497 = vector.extract_strided_slice %484 {offsets = [0, 2], sizes = [16, 8], strides = [1, 1]} : vector<16x10xf32> to vector<16x8xf32>
    %cst_509 = arith.constant dense<0.000000e+00> : vector<8x8xf32>
    %498 = tpu.matmul %496, %497, %cst_509 {dimension_numbers = #tpu.dot_dimension_numbers<[1], [0], [0], [1], [0, 0, 1, 1], [], []>} : vector<8x16xf32>, vector<16x8xf32>, vector<8x8xf32> -> vector<8x8xf32>
    %499 = arith.addf %494, %498 : vector<8x8xf32>
    %c7_510 = arith.constant 7 : index
    %c0_511 = arith.constant 0 : index
    %c0_512 = arith.constant 0 : index
    %500 = vector.load %arg10[%c7_510, %c0_511, %c0_512] : memref<10x16x10xf32, #tpu.memory_space<vmem>>, vector<1x16x10xf32>
    %501 = vector.shape_cast %500 : vector<1x16x10xf32> to vector<16x10xf32>
    %c0_513 = arith.constant 0 : index
    %c3_514 = arith.constant 3 : index
    %c0_515 = arith.constant 0 : index
    %c0_516 = arith.constant 0 : index
    %502 = vector.load %arg5[%c0_513, %c3_514, %c0_515, %c0_516] : memref<1x9x8x16xf32, #tpu.memory_space<vmem>>, vector<1x1x8x16xf32>
    %503 = vector.shape_cast %502 : vector<1x1x8x16xf32> to vector<8x16xf32>
    %504 = vector.extract_strided_slice %501 {offsets = [0, 0], sizes = [16, 8], strides = [1, 1]} : vector<16x10xf32> to vector<16x8xf32>
    %cst_517 = arith.constant dense<0.000000e+00> : vector<8x8xf32>
    %505 = tpu.matmul %503, %504, %cst_517 {dimension_numbers = #tpu.dot_dimension_numbers<[1], [0], [0], [1], [0, 0, 1, 1], [], []>} : vector<8x16xf32>, vector<16x8xf32>, vector<8x8xf32> -> vector<8x8xf32>
    %506 = arith.addf %499, %505 : vector<8x8xf32>
    %c0_518 = arith.constant 0 : index
    %c4_519 = arith.constant 4 : index
    %c0_520 = arith.constant 0 : index
    %c0_521 = arith.constant 0 : index
    %507 = vector.load %arg5[%c0_518, %c4_519, %c0_520, %c0_521] : memref<1x9x8x16xf32, #tpu.memory_space<vmem>>, vector<1x1x8x16xf32>
    %508 = vector.shape_cast %507 : vector<1x1x8x16xf32> to vector<8x16xf32>
    %509 = vector.extract_strided_slice %501 {offsets = [0, 1], sizes = [16, 8], strides = [1, 1]} : vector<16x10xf32> to vector<16x8xf32>
    %cst_522 = arith.constant dense<0.000000e+00> : vector<8x8xf32>
    %510 = tpu.matmul %508, %509, %cst_522 {dimension_numbers = #tpu.dot_dimension_numbers<[1], [0], [0], [1], [0, 0, 1, 1], [], []>} : vector<8x16xf32>, vector<16x8xf32>, vector<8x8xf32> -> vector<8x8xf32>
    %511 = arith.addf %506, %510 : vector<8x8xf32>
    %c0_523 = arith.constant 0 : index
    %c5_524 = arith.constant 5 : index
    %c0_525 = arith.constant 0 : index
    %c0_526 = arith.constant 0 : index
    %512 = vector.load %arg5[%c0_523, %c5_524, %c0_525, %c0_526] : memref<1x9x8x16xf32, #tpu.memory_space<vmem>>, vector<1x1x8x16xf32>
    %513 = vector.shape_cast %512 : vector<1x1x8x16xf32> to vector<8x16xf32>
    %514 = vector.extract_strided_slice %501 {offsets = [0, 2], sizes = [16, 8], strides = [1, 1]} : vector<16x10xf32> to vector<16x8xf32>
    %cst_527 = arith.constant dense<0.000000e+00> : vector<8x8xf32>
    %515 = tpu.matmul %513, %514, %cst_527 {dimension_numbers = #tpu.dot_dimension_numbers<[1], [0], [0], [1], [0, 0, 1, 1], [], []>} : vector<8x16xf32>, vector<16x8xf32>, vector<8x8xf32> -> vector<8x8xf32>
    %516 = arith.addf %511, %515 : vector<8x8xf32>
    %c8_528 = arith.constant 8 : index
    %c0_529 = arith.constant 0 : index
    %c0_530 = arith.constant 0 : index
    %517 = vector.load %arg10[%c8_528, %c0_529, %c0_530] : memref<10x16x10xf32, #tpu.memory_space<vmem>>, vector<1x16x10xf32>
    %518 = vector.shape_cast %517 : vector<1x16x10xf32> to vector<16x10xf32>
    %c0_531 = arith.constant 0 : index
    %c6_532 = arith.constant 6 : index
    %c0_533 = arith.constant 0 : index
    %c0_534 = arith.constant 0 : index
    %519 = vector.load %arg5[%c0_531, %c6_532, %c0_533, %c0_534] : memref<1x9x8x16xf32, #tpu.memory_space<vmem>>, vector<1x1x8x16xf32>
    %520 = vector.shape_cast %519 : vector<1x1x8x16xf32> to vector<8x16xf32>
    %521 = vector.extract_strided_slice %518 {offsets = [0, 0], sizes = [16, 8], strides = [1, 1]} : vector<16x10xf32> to vector<16x8xf32>
    %cst_535 = arith.constant dense<0.000000e+00> : vector<8x8xf32>
    %522 = tpu.matmul %520, %521, %cst_535 {dimension_numbers = #tpu.dot_dimension_numbers<[1], [0], [0], [1], [0, 0, 1, 1], [], []>} : vector<8x16xf32>, vector<16x8xf32>, vector<8x8xf32> -> vector<8x8xf32>
    %523 = arith.addf %516, %522 : vector<8x8xf32>
    %c0_536 = arith.constant 0 : index
    %c7_537 = arith.constant 7 : index
    %c0_538 = arith.constant 0 : index
    %c0_539 = arith.constant 0 : index
    %524 = vector.load %arg5[%c0_536, %c7_537, %c0_538, %c0_539] : memref<1x9x8x16xf32, #tpu.memory_space<vmem>>, vector<1x1x8x16xf32>
    %525 = vector.shape_cast %524 : vector<1x1x8x16xf32> to vector<8x16xf32>
    %526 = vector.extract_strided_slice %518 {offsets = [0, 1], sizes = [16, 8], strides = [1, 1]} : vector<16x10xf32> to vector<16x8xf32>
    %cst_540 = arith.constant dense<0.000000e+00> : vector<8x8xf32>
    %527 = tpu.matmul %525, %526, %cst_540 {dimension_numbers = #tpu.dot_dimension_numbers<[1], [0], [0], [1], [0, 0, 1, 1], [], []>} : vector<8x16xf32>, vector<16x8xf32>, vector<8x8xf32> -> vector<8x8xf32>
    %528 = arith.addf %523, %527 : vector<8x8xf32>
    %c0_541 = arith.constant 0 : index
    %c8_542 = arith.constant 8 : index
    %c0_543 = arith.constant 0 : index
    %c0_544 = arith.constant 0 : index
    %529 = vector.load %arg5[%c0_541, %c8_542, %c0_543, %c0_544] : memref<1x9x8x16xf32, #tpu.memory_space<vmem>>, vector<1x1x8x16xf32>
    %530 = vector.shape_cast %529 : vector<1x1x8x16xf32> to vector<8x16xf32>
    %531 = vector.extract_strided_slice %518 {offsets = [0, 2], sizes = [16, 8], strides = [1, 1]} : vector<16x10xf32> to vector<16x8xf32>
    %cst_545 = arith.constant dense<0.000000e+00> : vector<8x8xf32>
    %532 = tpu.matmul %530, %531, %cst_545 {dimension_numbers = #tpu.dot_dimension_numbers<[1], [0], [0], [1], [0, 0, 1, 1], [], []>} : vector<8x16xf32>, vector<16x8xf32>, vector<8x8xf32> -> vector<8x8xf32>
    %533 = arith.addf %528, %532 : vector<8x8xf32>
    %c0_546 = arith.constant 0 : index
    %c0_547 = arith.constant 0 : index
    %c0_548 = arith.constant 0 : index
    %534 = vector.load %arg6[%c0_546, %c0_547, %c0_548] : memref<1x8x1xf32, #tpu.memory_space<vmem>>, vector<1x8x1xf32>
    %535 = vector.shape_cast %534 : vector<1x8x1xf32> to vector<8x1xf32>
    %536 = vector.broadcast %535 : vector<8x1xf32> to vector<8x8xf32>
    %537 = arith.addf %533, %536 : vector<8x8xf32>
    %c6_549 = arith.constant 6 : index
    %c0_550 = arith.constant 0 : index
    %c0_551 = arith.constant 0 : index
    %538 = vector.load %arg11[%c6_549, %c0_550, %c0_551] : memref<8x8x8xf32, #tpu.memory_space<vmem>>, vector<1x8x8xf32>
    %539 = vector.shape_cast %538 : vector<1x8x8xf32> to vector<8x8xf32>
    %540 = vector.shape_cast %537 : vector<8x8xf32> to vector<1x8x8xf32>
    tpu.vector_store %arg11[%c6_549, %c0_550, %c0_551], %540 {strides = array<i32>} : memref<8x8x8xf32, #tpu.memory_space<vmem>>, vector<1x8x8xf32>,
    %cst_552 = arith.constant 0.000000e+00 : f32
    %541 = vector.broadcast %cst_552 : f32 to vector<8x8xf32>
    %c7_553 = arith.constant 7 : index
    %c0_554 = arith.constant 0 : index
    %c0_555 = arith.constant 0 : index
    %542 = vector.load %arg10[%c7_553, %c0_554, %c0_555] : memref<10x16x10xf32, #tpu.memory_space<vmem>>, vector<1x16x10xf32>
    %543 = vector.shape_cast %542 : vector<1x16x10xf32> to vector<16x10xf32>
    %c0_556 = arith.constant 0 : index
    %c0_557 = arith.constant 0 : index
    %c0_558 = arith.constant 0 : index
    %c0_559 = arith.constant 0 : index
    %544 = vector.load %arg5[%c0_556, %c0_557, %c0_558, %c0_559] : memref<1x9x8x16xf32, #tpu.memory_space<vmem>>, vector<1x1x8x16xf32>
    %545 = vector.shape_cast %544 : vector<1x1x8x16xf32> to vector<8x16xf32>
    %546 = vector.extract_strided_slice %543 {offsets = [0, 0], sizes = [16, 8], strides = [1, 1]} : vector<16x10xf32> to vector<16x8xf32>
    %cst_560 = arith.constant dense<0.000000e+00> : vector<8x8xf32>
    %547 = tpu.matmul %545, %546, %cst_560 {dimension_numbers = #tpu.dot_dimension_numbers<[1], [0], [0], [1], [0, 0, 1, 1], [], []>} : vector<8x16xf32>, vector<16x8xf32>, vector<8x8xf32> -> vector<8x8xf32>
    %548 = arith.addf %541, %547 : vector<8x8xf32>
    %c0_561 = arith.constant 0 : index
    %c1_562 = arith.constant 1 : index
    %c0_563 = arith.constant 0 : index
    %c0_564 = arith.constant 0 : index
    %549 = vector.load %arg5[%c0_561, %c1_562, %c0_563, %c0_564] : memref<1x9x8x16xf32, #tpu.memory_space<vmem>>, vector<1x1x8x16xf32>
    %550 = vector.shape_cast %549 : vector<1x1x8x16xf32> to vector<8x16xf32>
    %551 = vector.extract_strided_slice %543 {offsets = [0, 1], sizes = [16, 8], strides = [1, 1]} : vector<16x10xf32> to vector<16x8xf32>
    %cst_565 = arith.constant dense<0.000000e+00> : vector<8x8xf32>
    %552 = tpu.matmul %550, %551, %cst_565 {dimension_numbers = #tpu.dot_dimension_numbers<[1], [0], [0], [1], [0, 0, 1, 1], [], []>} : vector<8x16xf32>, vector<16x8xf32>, vector<8x8xf32> -> vector<8x8xf32>
    %553 = arith.addf %548, %552 : vector<8x8xf32>
    %c0_566 = arith.constant 0 : index
    %c2_567 = arith.constant 2 : index
    %c0_568 = arith.constant 0 : index
    %c0_569 = arith.constant 0 : index
    %554 = vector.load %arg5[%c0_566, %c2_567, %c0_568, %c0_569] : memref<1x9x8x16xf32, #tpu.memory_space<vmem>>, vector<1x1x8x16xf32>
    %555 = vector.shape_cast %554 : vector<1x1x8x16xf32> to vector<8x16xf32>
    %556 = vector.extract_strided_slice %543 {offsets = [0, 2], sizes = [16, 8], strides = [1, 1]} : vector<16x10xf32> to vector<16x8xf32>
    %cst_570 = arith.constant dense<0.000000e+00> : vector<8x8xf32>
    %557 = tpu.matmul %555, %556, %cst_570 {dimension_numbers = #tpu.dot_dimension_numbers<[1], [0], [0], [1], [0, 0, 1, 1], [], []>} : vector<8x16xf32>, vector<16x8xf32>, vector<8x8xf32> -> vector<8x8xf32>
    %558 = arith.addf %553, %557 : vector<8x8xf32>
    %c8_571 = arith.constant 8 : index
    %c0_572 = arith.constant 0 : index
    %c0_573 = arith.constant 0 : index
    %559 = vector.load %arg10[%c8_571, %c0_572, %c0_573] : memref<10x16x10xf32, #tpu.memory_space<vmem>>, vector<1x16x10xf32>
    %560 = vector.shape_cast %559 : vector<1x16x10xf32> to vector<16x10xf32>
    %c0_574 = arith.constant 0 : index
    %c3_575 = arith.constant 3 : index
    %c0_576 = arith.constant 0 : index
    %c0_577 = arith.constant 0 : index
    %561 = vector.load %arg5[%c0_574, %c3_575, %c0_576, %c0_577] : memref<1x9x8x16xf32, #tpu.memory_space<vmem>>, vector<1x1x8x16xf32>
    %562 = vector.shape_cast %561 : vector<1x1x8x16xf32> to vector<8x16xf32>
    %563 = vector.extract_strided_slice %560 {offsets = [0, 0], sizes = [16, 8], strides = [1, 1]} : vector<16x10xf32> to vector<16x8xf32>
    %cst_578 = arith.constant dense<0.000000e+00> : vector<8x8xf32>
    %564 = tpu.matmul %562, %563, %cst_578 {dimension_numbers = #tpu.dot_dimension_numbers<[1], [0], [0], [1], [0, 0, 1, 1], [], []>} : vector<8x16xf32>, vector<16x8xf32>, vector<8x8xf32> -> vector<8x8xf32>
    %565 = arith.addf %558, %564 : vector<8x8xf32>
    %c0_579 = arith.constant 0 : index
    %c4_580 = arith.constant 4 : index
    %c0_581 = arith.constant 0 : index
    %c0_582 = arith.constant 0 : index
    %566 = vector.load %arg5[%c0_579, %c4_580, %c0_581, %c0_582] : memref<1x9x8x16xf32, #tpu.memory_space<vmem>>, vector<1x1x8x16xf32>
    %567 = vector.shape_cast %566 : vector<1x1x8x16xf32> to vector<8x16xf32>
    %568 = vector.extract_strided_slice %560 {offsets = [0, 1], sizes = [16, 8], strides = [1, 1]} : vector<16x10xf32> to vector<16x8xf32>
    %cst_583 = arith.constant dense<0.000000e+00> : vector<8x8xf32>
    %569 = tpu.matmul %567, %568, %cst_583 {dimension_numbers = #tpu.dot_dimension_numbers<[1], [0], [0], [1], [0, 0, 1, 1], [], []>} : vector<8x16xf32>, vector<16x8xf32>, vector<8x8xf32> -> vector<8x8xf32>
    %570 = arith.addf %565, %569 : vector<8x8xf32>
    %c0_584 = arith.constant 0 : index
    %c5_585 = arith.constant 5 : index
    %c0_586 = arith.constant 0 : index
    %c0_587 = arith.constant 0 : index
    %571 = vector.load %arg5[%c0_584, %c5_585, %c0_586, %c0_587] : memref<1x9x8x16xf32, #tpu.memory_space<vmem>>, vector<1x1x8x16xf32>
    %572 = vector.shape_cast %571 : vector<1x1x8x16xf32> to vector<8x16xf32>
    %573 = vector.extract_strided_slice %560 {offsets = [0, 2], sizes = [16, 8], strides = [1, 1]} : vector<16x10xf32> to vector<16x8xf32>
    %cst_588 = arith.constant dense<0.000000e+00> : vector<8x8xf32>
    %574 = tpu.matmul %572, %573, %cst_588 {dimension_numbers = #tpu.dot_dimension_numbers<[1], [0], [0], [1], [0, 0, 1, 1], [], []>} : vector<8x16xf32>, vector<16x8xf32>, vector<8x8xf32> -> vector<8x8xf32>
    %575 = arith.addf %570, %574 : vector<8x8xf32>
    %c9_589 = arith.constant 9 : index
    %c0_590 = arith.constant 0 : index
    %c0_591 = arith.constant 0 : index
    %576 = vector.load %arg10[%c9_589, %c0_590, %c0_591] : memref<10x16x10xf32, #tpu.memory_space<vmem>>, vector<1x16x10xf32>
    %577 = vector.shape_cast %576 : vector<1x16x10xf32> to vector<16x10xf32>
    %c0_592 = arith.constant 0 : index
    %c6_593 = arith.constant 6 : index
    %c0_594 = arith.constant 0 : index
    %c0_595 = arith.constant 0 : index
    %578 = vector.load %arg5[%c0_592, %c6_593, %c0_594, %c0_595] : memref<1x9x8x16xf32, #tpu.memory_space<vmem>>, vector<1x1x8x16xf32>
    %579 = vector.shape_cast %578 : vector<1x1x8x16xf32> to vector<8x16xf32>
    %580 = vector.extract_strided_slice %577 {offsets = [0, 0], sizes = [16, 8], strides = [1, 1]} : vector<16x10xf32> to vector<16x8xf32>
    %cst_596 = arith.constant dense<0.000000e+00> : vector<8x8xf32>
    %581 = tpu.matmul %579, %580, %cst_596 {dimension_numbers = #tpu.dot_dimension_numbers<[1], [0], [0], [1], [0, 0, 1, 1], [], []>} : vector<8x16xf32>, vector<16x8xf32>, vector<8x8xf32> -> vector<8x8xf32>
    %582 = arith.addf %575, %581 : vector<8x8xf32>
    %c0_597 = arith.constant 0 : index
    %c7_598 = arith.constant 7 : index
    %c0_599 = arith.constant 0 : index
    %c0_600 = arith.constant 0 : index
    %583 = vector.load %arg5[%c0_597, %c7_598, %c0_599, %c0_600] : memref<1x9x8x16xf32, #tpu.memory_space<vmem>>, vector<1x1x8x16xf32>
    %584 = vector.shape_cast %583 : vector<1x1x8x16xf32> to vector<8x16xf32>
    %585 = vector.extract_strided_slice %577 {offsets = [0, 1], sizes = [16, 8], strides = [1, 1]} : vector<16x10xf32> to vector<16x8xf32>
    %cst_601 = arith.constant dense<0.000000e+00> : vector<8x8xf32>
    %586 = tpu.matmul %584, %585, %cst_601 {dimension_numbers = #tpu.dot_dimension_numbers<[1], [0], [0], [1], [0, 0, 1, 1], [], []>} : vector<8x16xf32>, vector<16x8xf32>, vector<8x8xf32> -> vector<8x8xf32>
    %587 = arith.addf %582, %586 : vector<8x8xf32>
    %c0_602 = arith.constant 0 : index
    %c8_603 = arith.constant 8 : index
    %c0_604 = arith.constant 0 : index
    %c0_605 = arith.constant 0 : index
    %588 = vector.load %arg5[%c0_602, %c8_603, %c0_604, %c0_605] : memref<1x9x8x16xf32, #tpu.memory_space<vmem>>, vector<1x1x8x16xf32>
    %589 = vector.shape_cast %588 : vector<1x1x8x16xf32> to vector<8x16xf32>
    %590 = vector.extract_strided_slice %577 {offsets = [0, 2], sizes = [16, 8], strides = [1, 1]} : vector<16x10xf32> to vector<16x8xf32>
    %cst_606 = arith.constant dense<0.000000e+00> : vector<8x8xf32>
    %591 = tpu.matmul %589, %590, %cst_606 {dimension_numbers = #tpu.dot_dimension_numbers<[1], [0], [0], [1], [0, 0, 1, 1], [], []>} : vector<8x16xf32>, vector<16x8xf32>, vector<8x8xf32> -> vector<8x8xf32>
    %592 = arith.addf %587, %591 : vector<8x8xf32>
    %c0_607 = arith.constant 0 : index
    %c0_608 = arith.constant 0 : index
    %c0_609 = arith.constant 0 : index
    %593 = vector.load %arg6[%c0_607, %c0_608, %c0_609] : memref<1x8x1xf32, #tpu.memory_space<vmem>>, vector<1x8x1xf32>
    %594 = vector.shape_cast %593 : vector<1x8x1xf32> to vector<8x1xf32>
    %595 = vector.broadcast %594 : vector<8x1xf32> to vector<8x8xf32>
    %596 = arith.addf %592, %595 : vector<8x8xf32>
    %c7_610 = arith.constant 7 : index
    %c0_611 = arith.constant 0 : index
    %c0_612 = arith.constant 0 : index
    %597 = vector.load %arg11[%c7_610, %c0_611, %c0_612] : memref<8x8x8xf32, #tpu.memory_space<vmem>>, vector<1x8x8xf32>
    %598 = vector.shape_cast %597 : vector<1x8x8xf32> to vector<8x8xf32>
    %599 = vector.shape_cast %596 : vector<8x8xf32> to vector<1x8x8xf32>
    tpu.vector_store %arg11[%c7_610, %c0_611, %c0_612], %599 {strides = array<i32>} : memref<8x8x8xf32, #tpu.memory_space<vmem>>, vector<1x8x8xf32>,
    %c0_613 = arith.constant 0 : index
    %c0_614 = arith.constant 0 : index
    %600 = vector.load %arg7[%c0_613, %c0_614] : memref<16x8xf32, #tpu.memory_space<vmem>>, vector<16x8xf32>
    %c0_615 = arith.constant 0 : index
    %c0_616 = arith.constant 0 : index
    %c0_617 = arith.constant 0 : index
    %601 = vector.load %arg11[%c0_615, %c0_616, %c0_617] : memref<8x8x8xf32, #tpu.memory_space<vmem>>, vector<8x1x8xf32>
    %602 = vector.shape_cast %601 : vector<8x1x8xf32> to vector<8x8xf32>
    %cst_618 = arith.constant dense<0.000000e+00> : vector<16x8xf32>
    %603 = tpu.matmul %600, %602, %cst_618 {dimension_numbers = #tpu.dot_dimension_numbers<[1], [0], [0], [1], [0, 0, 1, 1], [], []>} : vector<16x8xf32>, vector<8x8xf32>, vector<16x8xf32> -> vector<16x8xf32>
    %c0_619 = arith.constant 0 : index
    %c0_620 = arith.constant 0 : index
    %604 = vector.load %arg8[%c0_619, %c0_620] : memref<8x16xf32, #tpu.memory_space<vmem>>, vector<8x16xf32>
    %cst_621 = arith.constant dense<0.000000e+00> : vector<16x16xf32>
    %605 = tpu.matmul %603, %604, %cst_621 {dimension_numbers = #tpu.dot_dimension_numbers<[1], [0], [0], [1], [0, 0, 1, 1], [], []>} : vector<16x8xf32>, vector<8x16xf32>, vector<16x16xf32> -> vector<16x16xf32>
    %c0_622 = arith.constant 0 : index
    %c0_623 = arith.constant 0 : index
    %c0_624 = arith.constant 0 : index
    %c0_625 = arith.constant 0 : index
    %c0_626 = arith.constant 0 : index
    %606 = vector.load %arg9[%c0_622, %c0_623, %c0_624, %c0_625, %c0_626] : memref<1x1x8x16x16xf32, #tpu.memory_space<vmem>>, vector<1x1x1x16x16xf32>
    %607 = vector.shape_cast %606 : vector<1x1x1x16x16xf32> to vector<16x16xf32>
    %608 = vector.shape_cast %605 : vector<16x16xf32> to vector<1x1x1x16x16xf32>
    tpu.vector_store %arg9[%c0_622, %c0_623, %c0_624, %c0_625, %c0_626], %608 {strides = array<i32>} : memref<1x1x8x16x16xf32, #tpu.memory_space<vmem>>, vector<1x1x1x16x16xf32>,
    %c0_627 = arith.constant 0 : index
    %c0_628 = arith.constant 0 : index
    %609 = vector.load %arg7[%c0_627, %c0_628] : memref<16x8xf32, #tpu.memory_space<vmem>>, vector<16x8xf32>
    %c0_629 = arith.constant 0 : index
    %c1_630 = arith.constant 1 : index
    %c0_631 = arith.constant 0 : index
    %610 = vector.load %arg11[%c0_629, %c1_630, %c0_631] : memref<8x8x8xf32, #tpu.memory_space<vmem>>, vector<8x1x8xf32>
    %611 = vector.shape_cast %610 : vector<8x1x8xf32> to vector<8x8xf32>
    %cst_632 = arith.constant dense<0.000000e+00> : vector<16x8xf32>
    %612 = tpu.matmul %609, %611, %cst_632 {dimension_numbers = #tpu.dot_dimension_numbers<[1], [0], [0], [1], [0, 0, 1, 1], [], []>} : vector<16x8xf32>, vector<8x8xf32>, vector<16x8xf32> -> vector<16x8xf32>
    %c0_633 = arith.constant 0 : index
    %c0_634 = arith.constant 0 : index
    %613 = vector.load %arg8[%c0_633, %c0_634] : memref<8x16xf32, #tpu.memory_space<vmem>>, vector<8x16xf32>
    %cst_635 = arith.constant dense<0.000000e+00> : vector<16x16xf32>
    %614 = tpu.matmul %612, %613, %cst_635 {dimension_numbers = #tpu.dot_dimension_numbers<[1], [0], [0], [1], [0, 0, 1, 1], [], []>} : vector<16x8xf32>, vector<8x16xf32>, vector<16x16xf32> -> vector<16x16xf32>
    %c0_636 = arith.constant 0 : index
    %c0_637 = arith.constant 0 : index
    %c1_638 = arith.constant 1 : index
    %c0_639 = arith.constant 0 : index
    %c0_640 = arith.constant 0 : index
    %615 = vector.load %arg9[%c0_636, %c0_637, %c1_638, %c0_639, %c0_640] : memref<1x1x8x16x16xf32, #tpu.memory_space<vmem>>, vector<1x1x1x16x16xf32>
    %616 = vector.shape_cast %615 : vector<1x1x1x16x16xf32> to vector<16x16xf32>
    %617 = vector.shape_cast %614 : vector<16x16xf32> to vector<1x1x1x16x16xf32>
    tpu.vector_store %arg9[%c0_636, %c0_637, %c1_638, %c0_639, %c0_640], %617 {strides = array<i32>} : memref<1x1x8x16x16xf32, #tpu.memory_space<vmem>>, vector<1x1x1x16x16xf32>,
    %c0_641 = arith.constant 0 : index
    %c0_642 = arith.constant 0 : index
    %618 = vector.load %arg7[%c0_641, %c0_642] : memref<16x8xf32, #tpu.memory_space<vmem>>, vector<16x8xf32>
    %c0_643 = arith.constant 0 : index
    %c2_644 = arith.constant 2 : index
    %c0_645 = arith.constant 0 : index
    %619 = vector.load %arg11[%c0_643, %c2_644, %c0_645] : memref<8x8x8xf32, #tpu.memory_space<vmem>>, vector<8x1x8xf32>
    %620 = vector.shape_cast %619 : vector<8x1x8xf32> to vector<8x8xf32>
    %cst_646 = arith.constant dense<0.000000e+00> : vector<16x8xf32>
    %621 = tpu.matmul %618, %620, %cst_646 {dimension_numbers = #tpu.dot_dimension_numbers<[1], [0], [0], [1], [0, 0, 1, 1], [], []>} : vector<16x8xf32>, vector<8x8xf32>, vector<16x8xf32> -> vector<16x8xf32>
    %c0_647 = arith.constant 0 : index
    %c0_648 = arith.constant 0 : index
    %622 = vector.load %arg8[%c0_647, %c0_648] : memref<8x16xf32, #tpu.memory_space<vmem>>, vector<8x16xf32>
    %cst_649 = arith.constant dense<0.000000e+00> : vector<16x16xf32>
    %623 = tpu.matmul %621, %622, %cst_649 {dimension_numbers = #tpu.dot_dimension_numbers<[1], [0], [0], [1], [0, 0, 1, 1], [], []>} : vector<16x8xf32>, vector<8x16xf32>, vector<16x16xf32> -> vector<16x16xf32>
    %c0_650 = arith.constant 0 : index
    %c0_651 = arith.constant 0 : index
    %c2_652 = arith.constant 2 : index
    %c0_653 = arith.constant 0 : index
    %c0_654 = arith.constant 0 : index
    %624 = vector.load %arg9[%c0_650, %c0_651, %c2_652, %c0_653, %c0_654] : memref<1x1x8x16x16xf32, #tpu.memory_space<vmem>>, vector<1x1x1x16x16xf32>
    %625 = vector.shape_cast %624 : vector<1x1x1x16x16xf32> to vector<16x16xf32>
    %626 = vector.shape_cast %623 : vector<16x16xf32> to vector<1x1x1x16x16xf32>
    tpu.vector_store %arg9[%c0_650, %c0_651, %c2_652, %c0_653, %c0_654], %626 {strides = array<i32>} : memref<1x1x8x16x16xf32, #tpu.memory_space<vmem>>, vector<1x1x1x16x16xf32>,
    %c0_655 = arith.constant 0 : index
    %c0_656 = arith.constant 0 : index
    %627 = vector.load %arg7[%c0_655, %c0_656] : memref<16x8xf32, #tpu.memory_space<vmem>>, vector<16x8xf32>
    %c0_657 = arith.constant 0 : index
    %c3_658 = arith.constant 3 : index
    %c0_659 = arith.constant 0 : index
    %628 = vector.load %arg11[%c0_657, %c3_658, %c0_659] : memref<8x8x8xf32, #tpu.memory_space<vmem>>, vector<8x1x8xf32>
    %629 = vector.shape_cast %628 : vector<8x1x8xf32> to vector<8x8xf32>
    %cst_660 = arith.constant dense<0.000000e+00> : vector<16x8xf32>
    %630 = tpu.matmul %627, %629, %cst_660 {dimension_numbers = #tpu.dot_dimension_numbers<[1], [0], [0], [1], [0, 0, 1, 1], [], []>} : vector<16x8xf32>, vector<8x8xf32>, vector<16x8xf32> -> vector<16x8xf32>
    %c0_661 = arith.constant 0 : index
    %c0_662 = arith.constant 0 : index
    %631 = vector.load %arg8[%c0_661, %c0_662] : memref<8x16xf32, #tpu.memory_space<vmem>>, vector<8x16xf32>
    %cst_663 = arith.constant dense<0.000000e+00> : vector<16x16xf32>
    %632 = tpu.matmul %630, %631, %cst_663 {dimension_numbers = #tpu.dot_dimension_numbers<[1], [0], [0], [1], [0, 0, 1, 1], [], []>} : vector<16x8xf32>, vector<8x16xf32>, vector<16x16xf32> -> vector<16x16xf32>
    %c0_664 = arith.constant 0 : index
    %c0_665 = arith.constant 0 : index
    %c3_666 = arith.constant 3 : index
    %c0_667 = arith.constant 0 : index
    %c0_668 = arith.constant 0 : index
    %633 = vector.load %arg9[%c0_664, %c0_665, %c3_666, %c0_667, %c0_668] : memref<1x1x8x16x16xf32, #tpu.memory_space<vmem>>, vector<1x1x1x16x16xf32>
    %634 = vector.shape_cast %633 : vector<1x1x1x16x16xf32> to vector<16x16xf32>
    %635 = vector.shape_cast %632 : vector<16x16xf32> to vector<1x1x1x16x16xf32>
    tpu.vector_store %arg9[%c0_664, %c0_665, %c3_666, %c0_667, %c0_668], %635 {strides = array<i32>} : memref<1x1x8x16x16xf32, #tpu.memory_space<vmem>>, vector<1x1x1x16x16xf32>,
    %c0_669 = arith.constant 0 : index
    %c0_670 = arith.constant 0 : index
    %636 = vector.load %arg7[%c0_669, %c0_670] : memref<16x8xf32, #tpu.memory_space<vmem>>, vector<16x8xf32>
    %c0_671 = arith.constant 0 : index
    %c4_672 = arith.constant 4 : index
    %c0_673 = arith.constant 0 : index
    %637 = vector.load %arg11[%c0_671, %c4_672, %c0_673] : memref<8x8x8xf32, #tpu.memory_space<vmem>>, vector<8x1x8xf32>
    %638 = vector.shape_cast %637 : vector<8x1x8xf32> to vector<8x8xf32>
    %cst_674 = arith.constant dense<0.000000e+00> : vector<16x8xf32>
    %639 = tpu.matmul %636, %638, %cst_674 {dimension_numbers = #tpu.dot_dimension_numbers<[1], [0], [0], [1], [0, 0, 1, 1], [], []>} : vector<16x8xf32>, vector<8x8xf32>, vector<16x8xf32> -> vector<16x8xf32>
    %c0_675 = arith.constant 0 : index
    %c0_676 = arith.constant 0 : index
    %640 = vector.load %arg8[%c0_675, %c0_676] : memref<8x16xf32, #tpu.memory_space<vmem>>, vector<8x16xf32>
    %cst_677 = arith.constant dense<0.000000e+00> : vector<16x16xf32>
    %641 = tpu.matmul %639, %640, %cst_677 {dimension_numbers = #tpu.dot_dimension_numbers<[1], [0], [0], [1], [0, 0, 1, 1], [], []>} : vector<16x8xf32>, vector<8x16xf32>, vector<16x16xf32> -> vector<16x16xf32>
    %c0_678 = arith.constant 0 : index
    %c0_679 = arith.constant 0 : index
    %c4_680 = arith.constant 4 : index
    %c0_681 = arith.constant 0 : index
    %c0_682 = arith.constant 0 : index
    %642 = vector.load %arg9[%c0_678, %c0_679, %c4_680, %c0_681, %c0_682] : memref<1x1x8x16x16xf32, #tpu.memory_space<vmem>>, vector<1x1x1x16x16xf32>
    %643 = vector.shape_cast %642 : vector<1x1x1x16x16xf32> to vector<16x16xf32>
    %644 = vector.shape_cast %641 : vector<16x16xf32> to vector<1x1x1x16x16xf32>
    tpu.vector_store %arg9[%c0_678, %c0_679, %c4_680, %c0_681, %c0_682], %644 {strides = array<i32>} : memref<1x1x8x16x16xf32, #tpu.memory_space<vmem>>, vector<1x1x1x16x16xf32>,
    %c0_683 = arith.constant 0 : index
    %c0_684 = arith.constant 0 : index
    %645 = vector.load %arg7[%c0_683, %c0_684] : memref<16x8xf32, #tpu.memory_space<vmem>>, vector<16x8xf32>
    %c0_685 = arith.constant 0 : index
    %c5_686 = arith.constant 5 : index
    %c0_687 = arith.constant 0 : index
    %646 = vector.load %arg11[%c0_685, %c5_686, %c0_687] : memref<8x8x8xf32, #tpu.memory_space<vmem>>, vector<8x1x8xf32>
    %647 = vector.shape_cast %646 : vector<8x1x8xf32> to vector<8x8xf32>
    %cst_688 = arith.constant dense<0.000000e+00> : vector<16x8xf32>
    %648 = tpu.matmul %645, %647, %cst_688 {dimension_numbers = #tpu.dot_dimension_numbers<[1], [0], [0], [1], [0, 0, 1, 1], [], []>} : vector<16x8xf32>, vector<8x8xf32>, vector<16x8xf32> -> vector<16x8xf32>
    %c0_689 = arith.constant 0 : index
    %c0_690 = arith.constant 0 : index
    %649 = vector.load %arg8[%c0_689, %c0_690] : memref<8x16xf32, #tpu.memory_space<vmem>>, vector<8x16xf32>
    %cst_691 = arith.constant dense<0.000000e+00> : vector<16x16xf32>
    %650 = tpu.matmul %648, %649, %cst_691 {dimension_numbers = #tpu.dot_dimension_numbers<[1], [0], [0], [1], [0, 0, 1, 1], [], []>} : vector<16x8xf32>, vector<8x16xf32>, vector<16x16xf32> -> vector<16x16xf32>
    %c0_692 = arith.constant 0 : index
    %c0_693 = arith.constant 0 : index
    %c5_694 = arith.constant 5 : index
    %c0_695 = arith.constant 0 : index
    %c0_696 = arith.constant 0 : index
    %651 = vector.load %arg9[%c0_692, %c0_693, %c5_694, %c0_695, %c0_696] : memref<1x1x8x16x16xf32, #tpu.memory_space<vmem>>, vector<1x1x1x16x16xf32>
    %652 = vector.shape_cast %651 : vector<1x1x1x16x16xf32> to vector<16x16xf32>
    %653 = vector.shape_cast %650 : vector<16x16xf32> to vector<1x1x1x16x16xf32>
    tpu.vector_store %arg9[%c0_692, %c0_693, %c5_694, %c0_695, %c0_696], %653 {strides = array<i32>} : memref<1x1x8x16x16xf32, #tpu.memory_space<vmem>>, vector<1x1x1x16x16xf32>,
    %c0_697 = arith.constant 0 : index
    %c0_698 = arith.constant 0 : index
    %654 = vector.load %arg7[%c0_697, %c0_698] : memref<16x8xf32, #tpu.memory_space<vmem>>, vector<16x8xf32>
    %c0_699 = arith.constant 0 : index
    %c6_700 = arith.constant 6 : index
    %c0_701 = arith.constant 0 : index
    %655 = vector.load %arg11[%c0_699, %c6_700, %c0_701] : memref<8x8x8xf32, #tpu.memory_space<vmem>>, vector<8x1x8xf32>
    %656 = vector.shape_cast %655 : vector<8x1x8xf32> to vector<8x8xf32>
    %cst_702 = arith.constant dense<0.000000e+00> : vector<16x8xf32>
    %657 = tpu.matmul %654, %656, %cst_702 {dimension_numbers = #tpu.dot_dimension_numbers<[1], [0], [0], [1], [0, 0, 1, 1], [], []>} : vector<16x8xf32>, vector<8x8xf32>, vector<16x8xf32> -> vector<16x8xf32>
    %c0_703 = arith.constant 0 : index
    %c0_704 = arith.constant 0 : index
    %658 = vector.load %arg8[%c0_703, %c0_704] : memref<8x16xf32, #tpu.memory_space<vmem>>, vector<8x16xf32>
    %cst_705 = arith.constant dense<0.000000e+00> : vector<16x16xf32>
    %659 = tpu.matmul %657, %658, %cst_705 {dimension_numbers = #tpu.dot_dimension_numbers<[1], [0], [0], [1], [0, 0, 1, 1], [], []>} : vector<16x8xf32>, vector<8x16xf32>, vector<16x16xf32> -> vector<16x16xf32>
    %c0_706 = arith.constant 0 : index
    %c0_707 = arith.constant 0 : index
    %c6_708 = arith.constant 6 : index
    %c0_709 = arith.constant 0 : index
    %c0_710 = arith.constant 0 : index
    %660 = vector.load %arg9[%c0_706, %c0_707, %c6_708, %c0_709, %c0_710] : memref<1x1x8x16x16xf32, #tpu.memory_space<vmem>>, vector<1x1x1x16x16xf32>
    %661 = vector.shape_cast %660 : vector<1x1x1x16x16xf32> to vector<16x16xf32>
    %662 = vector.shape_cast %659 : vector<16x16xf32> to vector<1x1x1x16x16xf32>
    tpu.vector_store %arg9[%c0_706, %c0_707, %c6_708, %c0_709, %c0_710], %662 {strides = array<i32>} : memref<1x1x8x16x16xf32, #tpu.memory_space<vmem>>, vector<1x1x1x16x16xf32>,
    %c0_711 = arith.constant 0 : index
    %c0_712 = arith.constant 0 : index
    %663 = vector.load %arg7[%c0_711, %c0_712] : memref<16x8xf32, #tpu.memory_space<vmem>>, vector<16x8xf32>
    %c0_713 = arith.constant 0 : index
    %c7_714 = arith.constant 7 : index
    %c0_715 = arith.constant 0 : index
    %664 = vector.load %arg11[%c0_713, %c7_714, %c0_715] : memref<8x8x8xf32, #tpu.memory_space<vmem>>, vector<8x1x8xf32>
    %665 = vector.shape_cast %664 : vector<8x1x8xf32> to vector<8x8xf32>
    %cst_716 = arith.constant dense<0.000000e+00> : vector<16x8xf32>
    %666 = tpu.matmul %663, %665, %cst_716 {dimension_numbers = #tpu.dot_dimension_numbers<[1], [0], [0], [1], [0, 0, 1, 1], [], []>} : vector<16x8xf32>, vector<8x8xf32>, vector<16x8xf32> -> vector<16x8xf32>
    %c0_717 = arith.constant 0 : index
    %c0_718 = arith.constant 0 : index
    %667 = vector.load %arg8[%c0_717, %c0_718] : memref<8x16xf32, #tpu.memory_space<vmem>>, vector<8x16xf32>
    %cst_719 = arith.constant dense<0.000000e+00> : vector<16x16xf32>
    %668 = tpu.matmul %666, %667, %cst_719 {dimension_numbers = #tpu.dot_dimension_numbers<[1], [0], [0], [1], [0, 0, 1, 1], [], []>} : vector<16x8xf32>, vector<8x16xf32>, vector<16x16xf32> -> vector<16x16xf32>
    %c0_720 = arith.constant 0 : index
    %c0_721 = arith.constant 0 : index
    %c7_722 = arith.constant 7 : index
    %c0_723 = arith.constant 0 : index
    %c0_724 = arith.constant 0 : index
    %669 = vector.load %arg9[%c0_720, %c0_721, %c7_722, %c0_723, %c0_724] : memref<1x1x8x16x16xf32, #tpu.memory_space<vmem>>, vector<1x1x1x16x16xf32>
    %670 = vector.shape_cast %669 : vector<1x1x1x16x16xf32> to vector<16x16xf32>
    %671 = vector.shape_cast %668 : vector<16x16xf32> to vector<1x1x1x16x16xf32>
    tpu.vector_store %arg9[%c0_720, %c0_721, %c7_722, %c0_723, %c0_724], %671 {strides = array<i32>} : memref<1x1x8x16x16xf32, #tpu.memory_space<vmem>>, vector<1x1x1x16x16xf32>,
    return
  }
  func.func @transform_0(%arg0: i32, %arg1: i32) -> (i32, i32, i32, i32, i32) {
    %c0_i32 = arith.constant 0 : i32
    %c0_i32_0 = arith.constant 0 : i32
    %c0_i32_1 = arith.constant 0 : i32
    %c0_i32_2 = arith.constant 0 : i32
    return %arg0, %arg1, %c0_i32, %c0_i32_0, %c0_i32_1 : i32, i32, i32, i32, i32
  }
  func.func @transform_1(%arg0: i32, %arg1: i32) -> (i32, i32, i32) {
    %c0_i32 = arith.constant 0 : i32
    %c0_i32_0 = arith.constant 0 : i32
    %c0_i32_1 = arith.constant 0 : i32
    return %arg0, %c0_i32, %c0_i32_0 : i32, i32, i32
  }
  func.func @transform_2(%arg0: i32, %arg1: i32) -> (i32, i32, i32) {
    %c0_i32 = arith.constant 0 : i32
    %c0_i32_0 = arith.constant 0 : i32
    %c0_i32_1 = arith.constant 0 : i32
    return %arg0, %c0_i32, %c0_i32_0 : i32, i32, i32
  }
  func.func @transform_3(%arg0: i32, %arg1: i32) -> (i32, i32, i32, i32) {
    %c0_i32 = arith.constant 0 : i32
    %c0_i32_0 = arith.constant 0 : i32
    %c0_i32_1 = arith.constant 0 : i32
    %c0_i32_2 = arith.constant 0 : i32
    return %arg0, %c0_i32, %c0_i32_0, %c0_i32_1 : i32, i32, i32, i32
  }
  func.func @transform_4(%arg0: i32, %arg1: i32) -> (i32, i32, i32) {
    %c0_i32 = arith.constant 0 : i32
    %c0_i32_0 = arith.constant 0 : i32
    %c0_i32_1 = arith.constant 0 : i32
    return %arg0, %c0_i32, %c0_i32_0 : i32, i32, i32
  }
  func.func @transform_5(%arg0: i32, %arg1: i32) -> (i32, i32) {
    %c0_i32 = arith.constant 0 : i32
    %c0_i32_0 = arith.constant 0 : i32
    %c0_i32_1 = arith.constant 0 : i32
    return %c0_i32, %c0_i32_0 : i32, i32
  }
  func.func @transform_6(%arg0: i32, %arg1: i32) -> (i32, i32) {
    %c0_i32 = arith.constant 0 : i32
    %c0_i32_0 = arith.constant 0 : i32
    %c0_i32_1 = arith.constant 0 : i32
    return %c0_i32, %c0_i32_0 : i32, i32
  }
  func.func @transform_7(%arg0: i32, %arg1: i32) -> (i32, i32, i32, i32, i32) {
    %c0_i32 = arith.constant 0 : i32
    %c0_i32_0 = arith.constant 0 : i32
    %c0_i32_1 = arith.constant 0 : i32
    %c0_i32_2 = arith.constant 0 : i32
    return %arg0, %arg1, %c0_i32, %c0_i32_0, %c0_i32_1 : i32, i32, i32, i32, i32
  }
}

</mosaic_0001>

<bundles_post_ra>
// kernel: tpu_custom_call.1
= control target key start
LH: loop header
LB: loop body
LE: loop exit
PB: predicated region body
PF: predicated region fallthrough
CT: control target
= control target key end

     0   :  { %s13368_s0 = inlined_call_operand.hbm [shape: f32[4,2,16,8,8], index: 0, kind: input, shape index: {}]   ;;  %s13369_s1 = inlined_call_operand.hbm [shape: f32[4,16,16], index: 1, kind: input, shape index: {}]   ;;  %s13370_s2 = inlined_call_operand.hbm [shape: f32[4,16,1], index: 2, kind: input, shape index: {}]   ;;  %s13371_s3 = inlined_call_operand.hbm [shape: f32[4,9,8,16], index: 3, kind: input, shape index: {}]   ;;  %s13372_s4 = inlined_call_operand.hbm [shape: f32[4,8,1], index: 4, kind: input, shape index: {}]   ;;  %s13373_s5 = inlined_call_operand.hbm [shape: f32[16,8], index: 5, kind: input, shape index: {}]   ;;  %s13374_s6 = inlined_call_operand.hbm [shape: f32[8,16], index: 6, kind: input, shape index: {}]   ;;  %s13375_s7 = inlined_call_operand.hbm [shape: f32[4,2,8,16,16], index: 7, kind: output, shape index: {}]  }
   0x1   :  { %13417 = sst [smem:[#allocation38_spill]] %s13368_s0 }
   0x2   :  { %13418 = sst [smem:[#allocation39_spill]] %s13369_s1 }
   0x3   :  { %13419 = sst [smem:[#allocation40_spill]] %s13371_s3 }
   0x4   :  { %13420 = sst [smem:[#allocation41_spill]] %s13372_s4 }
   0x5   :  { %13421 = sst [smem:[#allocation42_spill]] %s13373_s5 }
   0x6   :  { %13422 = sst [smem:[#allocation43_spill]] %s13374_s6 }
   0x7   :  { %13423 = sst [smem:[#allocation44_spill]] %s13375_s7 }
   0x8   :  { %12 = vsyncpa [#allocation5], 0 }
   0x9   :  { %14 = vsyncpa [#allocation5 + $0x1], 0 }
   0xa   :  { %15 = vsyncpa [#allocation8], 0 }
   0xb   :  { %17 = vsyncpa [#allocation8 + $0x1], 0 }
   0xc   :  { %18 = vsyncpa [#allocation11], 0 }
   0xd   :  { %20 = vsyncpa [#allocation11 + $0x1], 0 }
   0xe   :  { %21 = vsyncpa [#allocation14], 0 }
   0xf   :  { %22 = vsyncpa [#allocation6], 0 }
  0x10   :  { %24 = vsyncpa [#allocation6 + $0x1], 0  ;;  %s11768_s24 = smov 0   ;;  %s11770_s25 = smov 0  }
  0x11   :  { %s11772_s26 = smov 0   ;;  %s11774_s27 = smov 0  }
  0x12   :  { %s11776_s28 = smov 0   ;;  %s11778_s29 = smov 0  }
  0x13   :  { %s11780_s30 = smov 0   ;;  %s11782_s8 = smov 0  }
  0x14   :  { %s11784_s9 = smov 0   ;;  %s11786_s10 = smov 0  }
  0x15   :  { %s11788_s11 = smov 0  }
  0x16 LB: > { %13424 = sst [smem:[#allocation22_spill]] %s11671_s25  ;;  %s11822_s12 = sadd.s32 4294967295, %s11707_s11   ;;  %s11707_s11 = sphi %s11788_s11, %s30_s11   ;;  %s11703_s10 = sphi %s11786_s10, %s13504_s10   ;;  %s11699_s9 = sphi %s11784_s9, %s13503_s9   ;;  %s11695_s8 = sphi %s11782_s8, %s13502_s8   ;;  %s11691_s30 = sphi %s11780_s30, %s13496_s30   ;;  %s11687_s29 = sphi %s11778_s29, %s13501_s29   ;;  %s11683_s28 = sphi %s11776_s28, %s13500_s28   ;;  %s11679_s27 = sphi %s11774_s27, %s13495_s27   ;;  %s11675_s26 = sphi %s11772_s26, %s13499_s26   ;;  %s11671_s25 = sphi %s11770_s25, %s13498_s25   ;;  %s11667_s24 = sphi %s11768_s24, %s13494_s24  }
  0x17   : > { %13425 = sst [smem:[#allocation23_spill]] %s11679_s27  ;;  %s9552_s13 = sadd.s32 4294967294, %s11707_s11  }
  0x18   : > { %13426 = sst [smem:[#allocation24_spill]] %s11683_s28  ;;  %p64_p0 = scmp.ne.s32.totalorder %s11683_s28, %s11679_s27 }
  0x19   : > { %13427 = sst [smem:[#allocation25_spill]] %s11691_s30  ;;  %p13378_p1 = scmp.eq.s32.totalorder %s11822_s12, 0 }
  0x1a   : > { %13428 = sst [smem:[#allocation26_spill]] %s11695_s8  ;;  %p90_p2 = scmp.ne.s32.totalorder %s11671_s25, %s11667_s24 }
  0x1b   : > { %13429 = sst [smem:[#allocation27_spill]] %s11699_s9  ;;  %p11832_p4 = por %p13378_p1, %p64_p0 }
  0x1c   : > { %13430 = sst [smem:[#allocation28_spill]] %s11822_s12  ;;  %p242_p5 = scmp.eq.s32.totalorder %s9552_s13, 7 }
  0x1d   : > { %s13431_s14 = scalar_select %p11832_p4, 1, 0 }
  0x1e   : > { %p11838_p6 = por %p90_p2, %p13378_p1  ;;  %p9553_p7 = scmp.ge.s32.totalorder %s11707_s11, 1 }
  0x1f   : > { %13432 = sst [smem:[#allocation29_spill]] %s13431_s14  ;;  %p11843_p8 = por %p242_p5, %p64_p0 }
  0x20   : > { %s13433_s15 = scalar_select %p11838_p6, 1, 0 }
  0x21   : > { %s13435_s16 = scalar_select %p11843_p8, 1, 0 }
  0x22   : > { %13434 = sst [smem:[#allocation30_spill]] %s13433_s15  ;;  %p249_p9 = scmp.lt.s32.totalorder %s11707_s11, 9 }
  0x23   : > { %13436 = sst [smem:[#allocation31_spill]] %s13435_s16  ;;  %s11709_s18 = smov [#allocation13]  }
  0x24   : > { %p11848_p10 = pnand %p9553_p7, %p249_p9  ;;  %s261_s19 = sshll.u32 %s11709_s18, 4  ;;  %s262_s19 = int_to_ptr.vmem [resolvable:$true] %s261_s19 }
  0x25   : > { %s13440_s5 = sld [smem:[#allocation42_spill]] }
  0x26   : > { %s13437_s17 = scalar_select %p11848_p10, 1, 0 }
  0x27   : > { %p10991_p11 = pneg %p11848_p10 }
  0x28   : > { %13438 = sst [smem:[#allocation32_spill]] %s13437_s17 }
  0x29   : > { %p11856_p12 = pnand %p10991_p11, %p13378_p1 }
  0x2b   : > { %s13439_s20 = scalar_select %p11856_p12, 1, 0 }
  0x2c   : > { %s11367_s23 = scalar_lea.hbm %s13440_s5, 256  ;;  %p13393_p2 = pneg %p11856_p12 }
  0x2d   : > { %p11368_p0 = scmp.ne.s32.totalorder %s13440_s5, %s11367_s23  ;;  %p11374_p9 = scmp.lt.u32.totalorder %s11367_s23, %s13440_s5 }
  0x2f   : > { %p11370_p5 = pnand %p13393_p2, %p11368_p0 }
  0x31   : > { %p11371_p7 = pneg %p11370_p5 }
  0x33   : > { %p11376_p11 = pnand %p11374_p9, %p11371_p7 }
  0x35   : > { %11379 = shalt.err (!%p11376_p11)
}
  0x36   : > { %s11380_s27 = scalar_lea.vmem %s262_s19, 256  ;;  %p11388_p8 = scmp.lt.s32.totalorder %s262_s19, %s262_s19 }
  0x37   : > { %p11381_p1 = scmp.ne.s32.totalorder %s262_s19, %s11380_s27  ;;  %p11389_p6 = scmp.lt.s32.totalorder %s11380_s27, %s11380_s27 }
  0x39   : > { %p11383_p3 = pnand %p11381_p1, %p13393_p2  ;;  %p11390_p4 = por %p11389_p6, %p11388_p8 }
  0x3b   : > { %p11384_p13 = pneg %p11383_p3 }
  0x3d   : > { %p11391_p10 = pnand %p11390_p4, %p11384_p13 }
  0x3f   : > { %11394 = shalt.err (!%p11391_p10)
}
  0x40   : > { %s13386_s21 = smov 128   ;;  %s13389_s16 = smov 8  }
  0x41   : > { %10994 = dma.hbm_to_vmem [thread:$0]  (!%p11856_p12), %s13440_s5, 256, %s262_s19, [#allocation14], %s13386_s21, %s13386_s21, %s13389_s16  }
  0x42   : > { %p84_p1 = scmp.ne.s32.totalorder %s11675_s26, %s11671_s25  ;;  %p13392_p3 = scmp.lt.s32.totalorder %s11707_s11, 8 }
  0x43   : > { %s13391_s24 = sand.u32 1, %s11707_s11   ;;  %p13441_p4 = scmp.eq.s32.totalorder %s11707_s11, 0 }
  0x44   : > { %s11894_s13 = sand.u32 1, %s11675_s26   ;;  %s13385_s18 = sshll.u32 %s11703_s10, 8 }
  0x45   : > { %p86_p6 = por %p84_p1, %p13441_p4  ;;  %13442 = sst [smem:[#allocation33_spill]] %s11894_s13 }
  0x46   : > { %s13388_s7 = sshll.u32 %s11894_s13, 4  ;;  %s13443_s1 = sld [smem:[#allocation39_spill]] }
  0x47   : > { %p11907_p8 = pnand %p13392_p3, %p86_p6  ;;  %s313_s27 = scalar_lea.vmem [#allocation7], %s13388_s7 }
  0x48   : > { %s320_s22 = sshll.u32 %s313_s27, 4  ;;  %s11917_s23 = scalar_lea.sflag [#allocation8], %s13391_s24  ;;  %s11913_s22 = int_to_ptr.vmem [resolvable:$true] %s320_s22 }
  0x49   : > { %s13444_s19 = scalar_select %p11907_p8, 1, 0 }
  0x4a   : > { %13445 = sst [smem:[#allocation34_spill]] %s11917_s23  ;;  %p11923_p13 = pneg %p11907_p8 }
  0x4c   : > { %s11903_s15 = scalar_lea.hbm %s13443_s1, %s13385_s18  ;;  %s11400_s27 = scalar_lea.hbm %s13443_s1, 1024 }
  0x4d   : > { %s11395_s30 = scalar_lea.hbm %s11903_s15, 256  ;;  %p11401_p7 = scmp.lt.u32.totalorder %s11903_s15, %s13443_s1 }
  0x4e   : > { %p11396_p10 = scmp.ne.s32.totalorder %s11903_s15, %s11395_s30  ;;  %p11402_p9 = scmp.lt.u32.totalorder %s11400_s27, %s11395_s30 }
  0x4f   : > { %p11404_p1 = scmp.lt.u32.totalorder %s11395_s30, %s11903_s15 }
  0x50   : > { %p11398_p0 = pnand %p11923_p13, %p11396_p10  ;;  %p11403_p11 = por %p11402_p9, %p11401_p7 }
  0x52   : > { %p11399_p5 = pneg %p11398_p0  ;;  %p11405_p4 = por %p11404_p1, %p11403_p11 }
  0x54   : > { %p11406_p6 = pnand %p11405_p4, %p11399_p5 }
  0x56   : > { %11409 = shalt.err (!%p11406_p6)
}
  0x57   : > { %s11410_s24 = scalar_lea.vmem %s11913_s22, 256  ;;  %s11712_s21 = smov [#allocation7]  }
  0x58   : > { %p11411_p10 = scmp.ne.s32.totalorder %s11913_s22, %s11410_s24  ;;  %s11415_s18 = sshll.u32 %s11712_s21, 4  ;;  %s11416_s18 = int_to_ptr.vmem [resolvable:$false] %s11415_s18 }
  0x59   : > { %s11417_s7 = scalar_lea.vmem %s11416_s18, 512  ;;  %p11418_p2 = scmp.lt.s32.totalorder %s11913_s22, %s11416_s18 }
  0x5a   : > { %p11413_p0 = pnand %p11411_p10, %p11923_p13  ;;  %p11419_p12 = scmp.lt.s32.totalorder %s11417_s7, %s11410_s24 }
  0x5c   : > { %p11414_p3 = pneg %p11413_p0  ;;  %p11420_p7 = por %p11419_p12, %p11418_p2 }
  0x5e   : > { %p11421_p9 = pnand %p11420_p7, %p11414_p3 }
  0x60   : > { %11424 = shalt.err (!%p11421_p9)
}
  0x61   : > { %s13447_s16 = smov 8   ;;  %s13448_s30 = smov 128  }
  0x62   : > { %11004 = dma.hbm_to_vmem [thread:$0]  (!%p11907_p8), %s11903_s15, 256, %s11913_s22, %s11917_s23, %s13448_s30, %s13448_s30, %s13447_s16  }
  0x63   : > { %s13449_s27 = sshll.u32 %s11703_s10, 8  ;;  %s13450_s7 = sshll.u32 %s11894_s13, 4 }
  0x64   : > { %s11955_s18 = scalar_lea.hbm %s13370_s2, %s13449_s27  ;;  %s334_s1 = scalar_lea.vmem [#allocation9], %s13450_s7 }
  0x65   : > { %s341_s5 = sshll.u32 %s334_s1, 4  ;;  %s10968_s25 = smul.u32 72, %s11894_s13  ;;  %s11959_s5 = int_to_ptr.vmem [resolvable:$true] %s341_s5 }
  0x66   : > { %s10969_s14 = smul.u32 1152, %s11703_s10  ;;  %s11713_s17 = smov [#allocation15]  }
  0x67   : > { %s275_s4 = sshll.u32 %s11713_s17, 4  ;;  %s13451_s3 = sld [smem:[#allocation40_spill]]  ;;  %s11963_s4 = int_to_ptr.vmem [resolvable:$true] %s275_s4 }
  0x68   : > { %s355_s27 = scalar_lea.vmem [#allocation10], %s10968_s25  ;;  %s13452_s1 = sand.u32 1, %s11707_s11  }
  0x69   : > { %s362_s21 = sshll.u32 %s355_s27, 4  ;;  %s11974_s24 = scalar_lea.sflag [#allocation11], %s13452_s1  ;;  %s11970_s21 = int_to_ptr.vmem [resolvable:$true] %s362_s21 }
  0x6a   : > { %13453 = sst [smem:[#allocation35_spill]] %s11974_s24 }
  0x6d   : > { %s11968_s22 = scalar_lea.hbm %s13451_s3, %s10969_s14  ;;  %s11430_s14 = scalar_lea.hbm %s13451_s3, 4608 }
  0x6e   : > { %s11425_s7 = scalar_lea.hbm %s11968_s22, 1152  ;;  %p11431_p5 = scmp.lt.u32.totalorder %s11968_s22, %s13451_s3 }
  0x6f   : > { %p11426_p12 = scmp.ne.s32.totalorder %s11968_s22, %s11425_s7  ;;  %p11432_p11 = scmp.lt.u32.totalorder %s11430_s14, %s11425_s7 }
  0x70   : > { %p11434_p4 = scmp.lt.u32.totalorder %s11425_s7, %s11968_s22 }
  0x71   : > { %p11428_p2 = pnand %p11426_p12, %p11923_p13  ;;  %p11433_p1 = por %p11432_p11, %p11431_p5 }
  0x73   : > { %p11429_p3 = pneg %p11428_p2  ;;  %p11435_p6 = por %p11434_p4, %p11433_p1 }
  0x75   : > { %p11436_p10 = pnand %p11435_p6, %p11429_p3 }
  0x77   : > { %11439 = shalt.err (!%p11436_p10)
}
  0x78   : > { %s11440_s25 = scalar_lea.vmem %s11970_s21, 1152  ;;  %s11714_s27 = smov [#allocation10]  }
  0x79   : > { %p11441_p0 = scmp.ne.s32.totalorder %s11970_s21, %s11440_s25  ;;  %s11445_s1 = sshll.u32 %s11714_s27, 4  ;;  %s11446_s1 = int_to_ptr.vmem [resolvable:$false] %s11445_s1 }
  0x7a   : > { %s11447_s13 = scalar_lea.vmem %s11446_s1, 2304  ;;  %p11448_p12 = scmp.lt.s32.totalorder %s11970_s21, %s11446_s1 }
  0x7b   : > { %p11443_p7 = pnand %p11441_p0, %p11923_p13  ;;  %p11449_p2 = scmp.lt.s32.totalorder %s11447_s13, %s11440_s25 }
  0x7d   : > { %p11444_p9 = pneg %p11443_p7  ;;  %p11450_p5 = por %p11449_p2, %p11448_p12 }
  0x7f   : > { %p11451_p11 = pnand %p11450_p5, %p11444_p9 }
  0x81   : > { %11454 = shalt.err (!%p11451_p11)
}
  0x82   : > { %11010 = dma.hbm_to_vmem [thread:$0]  (!%p11907_p8), %s11968_s22, 1152, %s11970_s21, %s11974_s24, %s13448_s30, %s13448_s30, %s13447_s16  }
  0x83   : > { %s13454_s6 = sld [smem:[#allocation43_spill]]  ;;  %p13455_p1 = scmp.ne.s32.totalorder %s13439_s20, 0 }
  0x85   : > { %p13456_p4 = pneg %p13455_p1 }
  0x89   : > { %s11455_s0 = scalar_lea.hbm %s13454_s6, 128 }
  0x8a   : > { %p11456_p3 = scmp.ne.s32.totalorder %s13454_s6, %s11455_s0  ;;  %p11462_p0 = scmp.lt.u32.totalorder %s11455_s0, %s13454_s6 }
  0x8c   : > { %p11458_p6 = pnand %p11456_p3, %p13456_p4 }
  0x8e   : > { %p11459_p10 = pneg %p11458_p6 }
  0x90   : > { %p11464_p7 = pnand %p11462_p0, %p11459_p10 }
  0x92   : > { %11467 = shalt.err (!%p11464_p7)
}
  0x93   : > { %s11468_s22 = scalar_lea.vmem %s11963_s4, 128  ;;  %p13457_p12 = pmov %p13456_p4 }
  0x94   : > { %p11469_p9 = scmp.ne.s32.totalorder %s11963_s4, %s11468_s22  ;;  %p11476_p11 = scmp.lt.s32.totalorder %s11963_s4, %s11963_s4 }
  0x95   : > { %p11477_p3 = scmp.lt.s32.totalorder %s11468_s22, %s11468_s22 }
  0x96   : > { %p11471_p2 = pnand %p11469_p9, %p13457_p12 }
  0x97   : > { %p11478_p4 = por %p11477_p3, %p11476_p11 }
  0x98   : > { %p11472_p5 = pneg %p11471_p2 }
  0x9a   : > { %p11479_p6 = pnand %p11478_p4, %p11472_p5 }
  0x9c   : > { %11482 = shalt.err (!%p11479_p6)
}
  0x9d   : > { %10997 = dma.hbm_to_vmem [thread:$0]  (!%p13455_p1), %s13454_s6, 128, %s11963_s4, [#allocation14]  }
  0x9e   : > { %s42_s13 = sadd.s32 1, %s11703_s10  ;;  %s39_s20 = sadd.s32 1, %s11699_s9 }
  0x9f   : > { %s51_s7 = sadd.s32 1, %s11687_s29  ;;  %p40_p10 = scmp.ge.s32.totalorder %s39_s20, 2 }
  0xa0   : > { %p58_p0 = scmp.ne.s32.totalorder %s11687_s29, %s11683_s28  ;;  %s13406_s17 = sand.u32 1, %s11687_s29  }
  0xa1   : > { %s9558_s0 = sshll.u32 %s11699_s9, 4  ;;  %s13506_s20 = smov (%p40_p10, %s39_s20), 0 }
  0xa2   : > { %13458 = sst [smem:[#allocation36_spill]] %s13506_s20  ;;  %s13508_s13 = smov (!%p40_p10, %s42_s13), %s11703_s10 }
  0xa3   : > { %s47_s14 = ssub.s32 %s11699_s9, %s13506_s20  ;;  %p13459_p7 = scmp.eq.s32.totalorder %s11707_s11, 0 }
  0xa4   : > { %p44_p1 = scmp.ge.s32.totalorder %s13508_s13, 4  ;;  %p13461_p12 = scmp.eq.s32.totalorder %s11822_s12, 7 }
  0xa5   : > { %p12040_p9 = por %p13459_p7, %p58_p0  ;;  %s9557_s25 = sshll.u32 %s13406_s17, 7 }
  0xa6   : > { %p12046_p2 = por %p13461_p12, %p58_p0  ;;  %s13510_s13 = smov (%p44_p1, %s13508_s13), 0 }
  0xa7   : > { %s9559_s27 = sshll.u32 %s11703_s10, 5  ;;  %s46_s22 = ssub.s32 %s11703_s10, %s13510_s13 }
  0xa8   : > { %s13462_s15 = scalar_select %p12046_p2, 1, 0 }
  0xa9   : > { %s296_s21 = sadd.s32 %s9559_s27, %s9558_s0  ;;  %s48_s1 = sor.u32 %s47_s14, %s46_s22 }
  0xaa   : > { %13463 = sst [smem:[#allocation37_spill]] %s13462_s15  ;;  %p75_p5 = scmp.eq.s32.totalorder %s46_s22, 0 }
  0xab   : > { %p49_p11 = scmp.eq.s32.totalorder %s48_s1, 0  ;;  %s9560_s3 = sshll.u32 %s296_s21, 7 }
  0xac   : > { %s13464_s6 = sadd.s32 1, %s11675_s26  ;;  %s13465_s12 = sld [smem:[#allocation38_spill]] }
  0xad   : > { %s12060_s20 = scalar_select %p75_p5, %s11675_s26, %s13464_s6  }
  0xae   : > { %s12063_s9 = scalar_select %p49_p11, %s11687_s29, %s51_s7  }
  0xaf   : > { %s290_s24 = scalar_lea.vmem [#allocation4], %s9557_s25  ;;  %p13466_p3 = scmp.lt.s32.totalorder %s11707_s11, 8 }
  0xb0   : > { %s299_s23 = sshll.u32 %s290_s24, 4  ;;  %s11483_s14 = scalar_lea.hbm %s11955_s18, 256  ;;  %s12070_s23 = int_to_ptr.vmem [resolvable:$true] %s299_s23 }
  0xb1   : > { %p12076_p4 = pnand %p13466_p3, %p12040_p9  ;;  %p11484_p6 = scmp.ne.s32.totalorder %s11955_s18, %s11483_s14 }
  0xb2   : > { %s12068_s28 = scalar_lea.hbm %s13465_s12, %s9560_s3  ;;  %s11488_s3 = scalar_lea.hbm %s13370_s2, 1024 }
  0xb3   : > { %s13467_s0 = scalar_select %p12076_p4, 1, 0 }
  0xb4   : > { %p11486_p10 = pnand %p11484_p6, %p11923_p13  ;;  %p11489_p7 = scmp.lt.u32.totalorder %s11955_s18, %s13370_s2 }
  0xb5   : > { %p11490_p1 = scmp.lt.u32.totalorder %s11488_s3, %s11483_s14  ;;  %p11492_p5 = scmp.lt.u32.totalorder %s11483_s14, %s11955_s18 }
  0xb6   : > { %p11487_p0 = pneg %p11486_p10 }
  0xb7   : > { %p11491_p12 = por %p11490_p1, %p11489_p7 }
  0xb9   : > { %p11493_p9 = por %p11492_p5, %p11491_p12 }
  0xbb   : > { %p11494_p11 = pnand %p11493_p9, %p11487_p0 }
  0xbd   : > { %11497 = shalt.err (!%p11494_p11)
}
  0xbe   : > { %s11498_s24 = scalar_lea.vmem %s11959_s5, 256  ;;  %s11715_s4 = smov [#allocation9]  }
  0xbf   : > { %p11499_p3 = scmp.ne.s32.totalorder %s11959_s5, %s11498_s24  ;;  %s11503_s25 = sshll.u32 %s11715_s4, 4  ;;  %s11504_s25 = int_to_ptr.vmem [resolvable:$false] %s11503_s25 }
  0xc0   : > { %s11505_s27 = scalar_lea.vmem %s11504_s25, 512  ;;  %p11506_p2 = scmp.lt.s32.totalorder %s11959_s5, %s11504_s25 }
  0xc1   : > { %p11501_p6 = pnand %p11499_p3, %p11923_p13  ;;  %p11507_p4 = scmp.lt.s32.totalorder %s11505_s27, %s11498_s24 }
  0xc3   : > { %p11502_p10 = pneg %p11501_p6  ;;  %p11508_p7 = por %p11507_p4, %p11506_p2 }
  0xc5   : > { %p11509_p1 = pnand %p11508_p7, %p11502_p10 }
  0xc7   : > { %11512 = shalt.err (!%p11509_p1)
}
  0xc8   : > { %s13468_s22 = sld [smem:[#allocation34_spill]]  ;;  %s13469_s21 = sld [smem:[#allocation33_spill]] }
  0xc9   : > { %s13470_s14 = sand.u32 1, %s11687_s29   ;;  %s11513_s7 = scalar_lea.hbm %s12068_s28, 2048 }
  0xca   : > { %s12108_s6 = scalar_lea.sflag [#allocation5], %s13470_s14  ;;  %p11514_p2 = scmp.ne.s32.totalorder %s12068_s28, %s11513_s7 }
  0xcb   : > { %p13471_p4 = scmp.ne.s32.totalorder %s13467_s0, 0  ;;  %s11518_s15 = scalar_lea.hbm %s13465_s12, 16384 }
  0xcc   : > { %p11519_p9 = scmp.lt.u32.totalorder %s12068_s28, %s13465_s12  ;;  %p11520_p11 = scmp.lt.u32.totalorder %s11518_s15, %s11513_s7 }
  0xcd   : > { %p11515_p0 = pneg %p13471_p4  ;;  %p11522_p6 = scmp.lt.u32.totalorder %s11513_s7, %s12068_s28 }
  0xce   : > { %11007 = dma.hbm_to_vmem [thread:$0]  (!%p11907_p8), %s11955_s18, 256, %s11959_s5, %s13468_s22, %s13448_s30, %s13448_s30, %s13447_s16  }
  0xcf   : > { %s9568_s1 = sshll.u32 %s13469_s21, 3  ;;  %p11516_p12 = pnand %p11515_p0, %p11514_p2 }
  0xd0   : > { %p11521_p3 = por %p11520_p11, %p11519_p9 }
  0xd1   : > { %p11517_p5 = pneg %p11516_p12 }
  0xd2   : > { %p11523_p10 = por %p11522_p6, %p11521_p3 }
  0xd4   : > { %p11524_p7 = pnand %p11523_p10, %p11517_p5 }
  0xd6   : > { %11527 = shalt.err (!%p11524_p7)
}
  0xd7   : > { %s11528_s5 = scalar_lea.vmem %s12070_s23, 2048  ;;  %s11716_s18 = smov [#allocation4]  }
  0xd8   : > { %p11529_p1 = scmp.ne.s32.totalorder %s12070_s23, %s11528_s5  ;;  %s11533_s25 = sshll.u32 %s11716_s18, 4  ;;  %s11534_s25 = int_to_ptr.vmem [resolvable:$false] %s11533_s25 }
  0xd9   : > { %s11535_s27 = scalar_lea.vmem %s11534_s25, 4096  ;;  %p11536_p8 = scmp.lt.s32.totalorder %s12070_s23, %s11534_s25 }
  0xda   : > { %p11531_p2 = pnand %p11529_p1, %p11515_p0  ;;  %p11537_p9 = scmp.lt.s32.totalorder %s11535_s27, %s11528_s5 }
  0xdc   : > { %p11532_p12 = pneg %p11531_p2  ;;  %p11538_p11 = por %p11537_p9, %p11536_p8 }
  0xde   : > { %p11539_p3 = pnand %p11538_p11, %p11532_p12 }
  0xe0   : > { %11542 = shalt.err (!%p11539_p3)
}
  0xe1   : > { %11001 = dma.hbm_to_vmem [thread:$0]  (!%p13471_p4), %s12068_s28, 2048, %s12070_s23, %s12108_s6, %s13448_s30, %s13448_s30, %s13447_s16  }
  0xe2   : > { %s9569_s22 = sshll.u32 %s11703_s10, 7  ;;  %s13472_s3 = sld [smem:[#allocation41_spill]] }
  0xe3   : > { %s376_s0 = scalar_lea.vmem [#allocation12], %s9568_s1 }
  0xe4   : > { %s383_s15 = sshll.u32 %s376_s0, 4  ;;  %s384_s15 = int_to_ptr.vmem [resolvable:$true] %s383_s15 }
  0xe8   : > { %s12143_s17 = scalar_lea.hbm %s13472_s3, %s9569_s22  ;;  %s11548_s16 = scalar_lea.hbm %s13472_s3, 512 }
  0xe9   : > { %s11543_s24 = scalar_lea.hbm %s12143_s17, 128  ;;  %p11549_p4 = scmp.lt.u32.totalorder %s12143_s17, %s13472_s3 }
  0xea   : > { %p11544_p8 = scmp.ne.s32.totalorder %s12143_s17, %s11543_s24  ;;  %p11550_p6 = scmp.lt.u32.totalorder %s11548_s16, %s11543_s24 }
  0xeb   : > { %p11552_p7 = scmp.lt.u32.totalorder %s11543_s24, %s12143_s17 }
  0xec   : > { %p11546_p0 = pnand %p11544_p8, %p11923_p13  ;;  %p11551_p10 = por %p11550_p6, %p11549_p4 }
  0xee   : > { %p11547_p5 = pneg %p11546_p0  ;;  %p11553_p1 = por %p11552_p7, %p11551_p10 }
  0xf0   : > { %p11554_p2 = pnand %p11553_p1, %p11547_p5 }
  0xf2   : > { %11557 = shalt.err (!%p11554_p2)
}
  0xf3   : > { %s11558_s21 = scalar_lea.vmem %s384_s15, 128  ;;  %s11717_s1 = smov [#allocation12]  }
  0xf4   : > { %p11559_p12 = scmp.ne.s32.totalorder %s384_s15, %s11558_s21  ;;  %s11563_s4 = sshll.u32 %s11717_s1, 4  ;;  %s11564_s4 = int_to_ptr.vmem [resolvable:$false] %s11563_s4 }
  0xf5   : > { %s11565_s5 = scalar_lea.vmem %s11564_s4, 256  ;;  %p11566_p3 = scmp.lt.s32.totalorder %s384_s15, %s11564_s4 }
  0xf6   : > { %p11561_p9 = pnand %p11559_p12, %p11923_p13  ;;  %p11567_p8 = scmp.lt.s32.totalorder %s11565_s5, %s11558_s21 }
  0xf8   : > { %p11562_p11 = pneg %p11561_p9  ;;  %p11568_p0 = por %p11567_p8, %p11566_p3 }
  0xfa   : > { %p11569_p4 = pnand %p11568_p0, %p11562_p11 }
  0xfc   : > { %11572 = shalt.err (!%p11569_p4)
}
  0xfd   : > { %p13473_p6 = scmp.ne.s32.totalorder %s13444_s19, 0  ;;  %s13474_s18 = sld [smem:[#allocation35_spill]] }
  0xfe   : > { %s13475_s25 = sld [smem:[#allocation32_spill]] }
 0x103   : > { %11013 = dma.hbm_to_vmem [thread:$0]  (!%p13473_p6), %s12143_s17, 128, %s384_s15, %s13474_s18  }
 0x104   : > { %p13476_p5 = scmp.ne.s32.totalorder %s13475_s25, 0 }
 0x105   : > { %s13477_s8 = sld [smem:[#allocation24_spill]] (!%p13476_p5)  ;;  %s13478_s27 = sld [smem:[#allocation29_spill]] (!%p13476_p5) }
 0x106   : > { %392 = sbr.rel (%p13476_p5) target bundleno = 1678 (0x68e), region = 48 }
 0x10b   : > { %s12168_s22 = sand.u32 (!%p13476_p5), 1, %s13477_s8   ;;  %p13479_p13 = scmp.ne.s32.totalorder (!%p13476_p5), %s13478_s27, 0 }
 0x10c   : > { %s9571_s14 = sshll.u32 (!%p13476_p5), %s12168_s22, 7  ;;  %s395_s7 = scalar_lea.sflag (!%p13476_p5), [#allocation5], %s12168_s22 }
 0x10d   : > { %s12174_s0 = scalar_lea.vmem [#allocation4], %s9571_s14 }
 0x10e   : > { %11646 = dma.done.wait (%p13479_p13), %s395_s7, 2048  }
 0x10f   : > { %11648 = vsyncadd (%p13479_p13), %s395_s7, 4294965248  ;;  %s13480_s19 = sld [smem:[#allocation28_spill]]  ;;  %s13481_s17 = sld [smem:[#allocation22_spill]] }
 0x110   : > { %s13482_s15 = sld [smem:[#allocation30_spill]] }
 0x115   : > { %s403_s24 = sand.u32 1, %s13480_s19   ;;  %s405_s28 = sand.u32 1, %s13481_s17  }
 0x116   : > { %s9572_s23 = sshll.u32 %s405_s28, 4  ;;  %s404_s16 = scalar_lea.sflag [#allocation8], %s403_s24 }
 0x117   : > { %s12182_s30 = scalar_lea.vmem [#allocation7], %s9572_s23  ;;  %p13483_p10 = scmp.ne.s32.totalorder %s13482_s15, 0 }
 0x119   : > { %11650 = dma.done.wait (%p13483_p10), %s404_s16, 512  }
 0x11a   : > { %11652 = vsyncadd (%p13483_p10), %s404_s16, 4294966784  ;;  %s10970_s6 = smul.u32 72, %s405_s28  ;;  %s12188_s21 = scalar_lea.vmem [#allocation9], %s9572_s23 }
 0x11b   : > { %s422_s1 = scalar_lea.sflag [#allocation11], %s403_s24 }
 0x11c   : > { %s12190_s4 = scalar_lea.vmem [#allocation10], %s10970_s6 }
 0x11d   : > { %11654 = dma.done.wait (%p13483_p10), %s422_s1, 1280  }
 0x11e   : > { %11656 = vsyncadd (%p13483_p10), %s422_s1, 4294966016  ;;  %s9574_s5 = sshll.u32 %s405_s28, 3  ;;  %p13484_p7 = scmp.eq.s32.totalorder %s13480_s19, 0 }
 0x11f   : > { %s12196_s18 = scalar_lea.vmem [#allocation12], %s9574_s5 }
 0x120   : > { %11658 = dma.done.wait (%p13484_p7), [#allocation14], 384   ;;  %p13485_p1 = pmov %p13484_p7 }
 0x121   : > { %v11718_v0 = vmov 0   ;;  %vm546_vm0 = vcmask 1041409   ;;  %vm549_vm1 = vcmask 1042434   ;;  %vm552_vm2 = vcmask 1043459   ;;  %v502_v1 = vld [vmem:[%s12174_s0 + $0x8] sm:$0x1] }
 0x122   : > { %11660 = vsyncadd (%p13485_p1), [#allocation14], 4294966912  ;;  %11125 = vset.pattern.permute.xlu0 %v11718_v0  ;;  %11126 = vset.pattern.permute.xlu1 %v11718_v0  ;;  %vm555_vm3 = vcmask 1044484   ;;  %vm558_vm4 = vcmask 1045509   ;;  %v503_v2 = vld [vmem:[%s12174_s0 + $0x10] sm:$0x1] }
 0x123   : > { %v504_v3 = vld [vmem:[%s12174_s0 + $0x18] sm:$0x1]  ;;  %vm561_vm5 = vcmask 1046534   ;;  %v501_v4 = vld [vmem:[%s12174_s0] sm:$0x1]  ;;  %v545_v16 = vrot.slane %v502_v1, 7 }
 0x124   : > { %v505_v5 = vld [vmem:[%s12174_s0 + $0x20] sm:$0x1]  ;;  %v506_v6 = vld [vmem:[%s12174_s0 + $0x28] sm:$0x1]  ;;  %v507_v7 = vld [vmem:[%s12174_s0 + $0x30] sm:$0x1] }
 0x125   : > { %v508_v8 = vld [vmem:[%s12174_s0 + $0x38] sm:$0x1]  ;;  %v509_v9 = vld [vmem:[%s12174_s0 + $0x40] sm:$0x1]  ;;  %v510_v10 = vld [vmem:[%s12174_s0 + $0x48] sm:$0x1]  ;;  %v547_v24 = vsel %vm546_vm0, %v545_v16, %v501_v4 }
 0x126   : > { %v511_v11 = vld [vmem:[%s12174_s0 + $0x50] sm:$0x1]  ;;  %v512_v12 = vld [vmem:[%s12174_s0 + $0x58] sm:$0x1]  ;;  %v513_v13 = vld [vmem:[%s12174_s0 + $0x60] sm:$0x1] }
 0x127   : > { %v514_v14 = vld [vmem:[%s12174_s0 + $0x68] sm:$0x1]  ;;  %v515_v15 = vld [vmem:[%s12174_s0 + $0x70] sm:$0x1]  ;;  %v548_v17 = vrot.slane %v503_v2, 6  ;;  %v551_v18 = vrot.slane %v504_v3, 5 }
 0x128   : > { %vm582_vm6 = vcmask 130048   ;;  %v516_v19 = vld [vmem:[%s12174_s0 + $0x78] sm:$0x1]  ;;  %v554_v20 = vrot.slane %v505_v5, 4  ;;  %v557_v21 = vrot.slane %v506_v6, 3  ;;  %v560_v22 = vrot.slane %v507_v7, 2 }
 0x129   : > { %v566_v23 = vrot.slane %v510_v10, 7  ;;  %v568_v25 = vrot.slane %v511_v11, 6  ;;  %v570_v26 = vrot.slane %v512_v12, 5  ;;  %v572_v27 = vrot.slane %v513_v13, 4  ;;  %v686_v28 = vld [vmem:[%s12174_s0 + $0x9] sm:$0x1] }
 0x12a   : > { %v12221_v29 = vld [vmem:[%s12182_s30] sm:$0xff]  ;;  %v550_v30 = vsel %vm549_vm1, %v548_v17, %v547_v24  ;;  %v563_v31 = vrot.slane %v508_v8, 1  ;;  %v574_v33 = vrot.slane %v514_v14, 3  ;;  %v576_v36 = vrot.slane %v515_v15, 2  ;;  %v688_v43 = vld [vmem:[%s12174_s0 + $0x19] sm:$0x1] }
 0x12b   : > { %v567_v32 = vsel %vm546_vm0, %v566_v23, %v509_v9  ;;  %10084 = vmatprep.mubr.msk.f32.mxu0 %vm582_vm6, %v12221_v29  ;;  %10091 = vmatprep.mubr.msk.f32.mxu1 %vm582_vm6, %v12221_v29  ;;  %v553_v34 = vsel %vm552_vm2, %v551_v18, %v550_v30  ;;  %v685_v37 = vld [vmem:[%s12174_s0 + $0x1] sm:$0x1]  ;;  %v687_v38 = vld [vmem:[%s12174_s0 + $0x11] sm:$0x1]  ;;  %v729_v39 = vrot.slane %v686_v28, 7  ;;  %vm564_vm7 = vcmask 1047559  }
 0x12c   : > { %v569_v35 = vsel %vm549_vm1, %v568_v25, %v567_v32  ;;  %v556_v40 = vsel %vm555_vm3, %v554_v20, %v553_v34  ;;  %v578_v42 = vrot.slane %v516_v19, 1  ;;  %v689_v44 = vld [vmem:[%s12174_s0 + $0x21] sm:$0x1]  ;;  %v690_v47 = vld [vmem:[%s12174_s0 + $0x29] sm:$0x1]  ;;  %v731_v61 = vrot.slane %v687_v38, 6 }
 0x12d   : > { %v571_v41 = vsel %vm552_vm2, %v570_v26, %v569_v35  ;;  %v559_v45 = vsel %vm558_vm4, %v557_v21, %v556_v40  ;;  %v691_v48 = vld [vmem:[%s12174_s0 + $0x31] sm:$0x1]  ;;  %v694_v49 = vld [vmem:[%s12174_s0 + $0x49] sm:$0x1]  ;;  %v692_v52 = vld [vmem:[%s12174_s0 + $0x39] sm:$0x1]  ;;  %v730_v57 = vsel %vm546_vm0, %v729_v39, %v685_v37 }
 0x12e   : > { %v573_v46 = vsel %vm555_vm3, %v572_v27, %v571_v41  ;;  %v562_v50 = vsel %vm561_vm5, %v560_v22, %v559_v45  ;;  %v693_v53 = vld [vmem:[%s12174_s0 + $0x41] sm:$0x1]  ;;  %v695_v54 = vld [vmem:[%s12174_s0 + $0x51] sm:$0x1]  ;;  %v696_v55 = vld [vmem:[%s12174_s0 + $0x59] sm:$0x1]  ;;  %v732_v6 = vsel %vm549_vm1, %v731_v61, %v730_v57 }
 0x12f   : > { %v575_v51 = vsel %vm558_vm4, %v574_v33, %v573_v46  ;;  %v697_v56 = vld [vmem:[%s12174_s0 + $0x61] sm:$0x1]  ;;  %v565_v58 = vsel %vm564_vm7, %v563_v31, %v562_v50  ;;  %v698_v60 = vld [vmem:[%s12174_s0 + $0x69] sm:$0x1]  ;;  %v733_v62 = vrot.slane %v688_v43, 5  ;;  %v735_v3 = vrot.slane %v689_v44, 4 }
 0x130   : > { %v577_v59 = vsel %vm561_vm5, %v576_v36, %v575_v51  ;;  %v12254_v63 = vld [vmem:[%s12188_s21] sm:$0xff]  ;;  %v700_v2 = vld [vmem:[%s12174_s0 + $0x79] sm:$0x1]  ;;  %v737_v4 = vrot.slane %v690_v47, 3  ;;  %v739_v7 = vrot.slane %v691_v48, 2  ;;  %v743_v8 = vrot.slane %v694_v49, 7 }
 0x131   : > { %v579_v0 = vsel %vm564_vm7, %v578_v42, %v577_v59  ;;  %v699_v1 = vld [vmem:[%s12174_s0 + $0x71] sm:$0x1]  ;;  %521 = vperm.xlu0 %11125, %v12254_v63   ;;  %705 = vperm.xlu1 %11126, %v12254_v63   ;;  %v860_v9 = vld [vmem:[%s12174_s0 + $0xa] sm:$0x1]  ;;  %v734_v11 = vsel %vm552_vm2, %v733_v62, %v732_v6  ;;  %v745_v12 = vrot.slane %v695_v54, 6  ;;  %v747_v13 = vrot.slane %v696_v55, 5 }
 0x132   : > { %v10720_v5 = vpack.c.bf16 %v579_v0, %v565_v58  ;;  %v12264_v10 = vld [vmem:[%s12188_s21 + $0x8] sm:$0xff]  ;;  %v749_v14 = vrot.slane %v697_v56, 4  ;;  %v859_v16 = vld [vmem:[%s12174_s0 + $0x2] sm:$0x1]  ;;  %v736_v17 = vsel %vm555_vm3, %v735_v3, %v734_v11  ;;  %v741_v18 = vrot.slane %v692_v52, 1  ;;  %s11719_s25 = smov 1  }
 0x133   : > { %v12268_v15 = vld [vmem:[%s12182_s30 + $0x8] sm:$0xff]  ;;  %v744_v19 = vsel %vm546_vm0, %v743_v8, %v693_v53  ;;  %v751_v20 = vrot.slane %v698_v60, 3  ;;  %v861_v21 = vld [vmem:[%s12174_s0 + $0x12] sm:$0x1]  ;;  %v738_v23 = vsel %vm558_vm4, %v737_v4, %v736_v17  ;;  %v753_v25 = vrot.slane %v699_v1, 2  ;;  %s11723_s8 = smov 126  }
 0x134   : > { %10721 = vmatprep.subr.bf16.mxu0 %v10720_v5  ;;  %v862_v22 = vld [vmem:[%s12174_s0 + $0x1a] sm:$0x1]  ;;  %v746_v24 = vsel %vm549_vm1, %v745_v12, %v744_v19  ;;  %v863_v26 = vld [vmem:[%s12174_s0 + $0x22] sm:$0x1]  ;;  %v864_v27 = vld [vmem:[%s12174_s0 + $0x2a] sm:$0x1]  ;;  %v740_v30 = vsel %vm561_vm5, %v739_v7, %v738_v23 }
 0x135   : > { %10723 = vmatpush3.bf16.msra.mxu0 %v10720_v5  ;;  %v903_v28 = vrot.slane %v860_v9, 7  ;;  %526 = vperm.xlu0 %11125, %v12264_v10   ;;  %v748_v31 = vsel %vm552_vm2, %v747_v13, %v746_v24  ;;  %v755_v32 = vrot.slane %v700_v2, 1  ;;  %v865_v33 = vld [vmem:[%s12174_s0 + $0x32] sm:$0x1]  ;;  %v866_v34 = vld [vmem:[%s12174_s0 + $0x3a] sm:$0x1]  ;;  %v742_v40 = vsel %vm564_vm7, %v741_v18, %v740_v30 }
 0x136   : > { %710 = vperm.xlu1 %11126, %v12264_v10   ;;  %v750_v35 = vsel %vm555_vm3, %v749_v14, %v748_v31  ;;  %v867_v36 = vld [vmem:[%s12174_s0 + $0x42] sm:$0x1]  ;;  %v868_v37 = vld [vmem:[%s12174_s0 + $0x4a] sm:$0x1]  ;;  %v869_v38 = vld [vmem:[%s12174_s0 + $0x52] sm:$0x1] }
 0x137   : > { %v904_v39 = vsel %vm546_vm0, %v903_v28, %v859_v16  ;;  %v752_v41 = vsel %vm558_vm4, %v751_v20, %v750_v35  ;;  %v870_v42 = vld [vmem:[%s12174_s0 + $0x5a] sm:$0x1]  ;;  %v871_v43 = vld [vmem:[%s12174_s0 + $0x62] sm:$0x1]  ;;  %v905_v44 = vrot.slane %v861_v21, 6  ;;  %v907_v45 = vrot.slane %v862_v22, 5 }
 0x138   : > { %10085 = vmatmul.mubr.msk.f32.vlgmr.msra.gmra.mrb[0].mxu0 %vm582_vm6, %v12268_v15  ;;  %v754_v46 = vsel %vm561_vm5, %v753_v25, %v752_v41  ;;  %v872_v47 = vld [vmem:[%s12174_s0 + $0x6a] sm:$0x1]  ;;  %v909_v48 = vrot.slane %v863_v26, 4  ;;  %v911_v49 = vrot.slane %v864_v27, 3  ;;  %v913_v50 = vrot.slane %v865_v33, 2  ;;  %s11724_s27 = smov 127  }
 0x139   : > { %10098 = vmatprep.mubr.msk.f32.mxu0 %vm582_vm6, %v12221_v29  ;;  %879 = vperm.xlu0 %11125, %v12254_v63   ;;  %v756_v51 = vsel %vm564_vm7, %v755_v32, %v754_v46  ;;  %v873_v52 = vld [vmem:[%s12174_s0 + $0x72] sm:$0x1]  ;;  %v906_v53 = vsel %vm549_vm1, %v905_v44, %v904_v39  ;;  %v915_v54 = vrot.slane %v866_v34, 1  ;;  %v917_v55 = vrot.slane %v868_v37, 7  ;;  %v874_v57 = vld [vmem:[%s12174_s0 + $0x7a] sm:$0x1] }
 0x13a   : > { %884 = vperm.xlu1 %11126, %v12264_v10   ;;  %v10724_v56 = vpack.c.bf16 %v756_v51, %v742_v40  ;;  %v908_v58 = vsel %vm552_vm2, %v907_v45, %v906_v53  ;;  %v919_v59 = vrot.slane %v869_v38, 6  ;;  %v921_v60 = vrot.slane %v870_v42, 5  ;;  %v1034_v61 = vld [vmem:[%s12174_s0 + $0xb] sm:$0x1]  ;;  %v1035_v3 = vld [vmem:[%s12174_s0 + $0x13] sm:$0x1] }
 0x13b   : > { %v910_v62 = vsel %vm555_vm3, %v909_v48, %v908_v58  ;;  %v918_v0 = vsel %vm546_vm0, %v917_v55, %v867_v36  ;;  %v923_v1 = vrot.slane %v871_v43, 4  ;;  %v925_v2 = vrot.slane %v872_v47, 3  ;;  %v1036_v4 = vld [vmem:[%s12174_s0 + $0x1b] sm:$0x1]  ;;  %v1033_v8 = vld [vmem:[%s12174_s0 + $0x3] sm:$0x1] }
 0x13c   : > { %10725 = vmatprep.subr.bf16.mxu1 %v10724_v56  ;;  %v912_v5 = vsel %vm558_vm4, %v911_v49, %v910_v62  ;;  %v920_v6 = vsel %vm549_vm1, %v919_v59, %v918_v0  ;;  %v927_v7 = vrot.slane %v873_v52, 2  ;;  %v1037_v9 = vld [vmem:[%s12174_s0 + $0x23] sm:$0x1]  ;;  %v1038_v11 = vld [vmem:[%s12174_s0 + $0x2b] sm:$0x1]  ;;  %v929_v14 = vrot.slane %v874_v57, 1 }
 0x13d   : > { %1053 = vperm.xlu0 %11125, %v12254_v63   ;;  %10727 = vmatpush3.bf16.msra.mxu1 %v10724_v56  ;;  %v914_v12 = vsel %vm561_vm5, %v913_v50, %v912_v5  ;;  %v922_v13 = vsel %vm552_vm2, %v921_v60, %v920_v6  ;;  %v1039_v16 = vld [vmem:[%s12174_s0 + $0x33] sm:$0x1]  ;;  %v1040_v17 = vld [vmem:[%s12174_s0 + $0x3b] sm:$0x1]  ;;  %v1041_v20 = vld [vmem:[%s12174_s0 + $0x43] sm:$0x1] }
 0x13e   : > { %1058 = vperm.xlu1 %11126, %v12264_v10   ;;  %v916_v18 = vsel %vm564_vm7, %v915_v54, %v914_v12  ;;  %v924_v19 = vsel %vm555_vm3, %v923_v1, %v922_v13  ;;  %v1042_v21 = vld [vmem:[%s12174_s0 + $0x4b] sm:$0x1]  ;;  %v1043_v22 = vld [vmem:[%s12174_s0 + $0x53] sm:$0x1]  ;;  %v1044_v23 = vld [vmem:[%s12174_s0 + $0x5b] sm:$0x1] }
 0x13f   : > { %v926_v24 = vsel %vm558_vm4, %v925_v2, %v924_v19  ;;  %v1045_v25 = vld [vmem:[%s12174_s0 + $0x63] sm:$0x1]  ;;  %v1077_v26 = vrot.slane %v1034_v61, 7  ;;  %v1079_v27 = vrot.slane %v1035_v3, 6  ;;  %v1081_v28 = vrot.slane %v1036_v4, 5  ;;  %s13263_s7 = scalar_lea.vmem [#allocation16], %s9571_s14 }
 0x140   : > { %10092 = vmatmul.mubr.msk.f32.vlgmr.msra.gmra.mrb[0].mxu1 %vm582_vm6, %v12268_v15  ;;  %v928_v30 = vsel %vm561_vm5, %v927_v7, %v926_v24  ;;  %v1046_v31 = vld [vmem:[%s12174_s0 + $0x6b] sm:$0x1]  ;;  %v1083_v32 = vrot.slane %v1037_v9, 4  ;;  %v1085_v33 = vrot.slane %v1038_v11, 3  ;;  %v1087_v34 = vrot.slane %v1039_v16, 2  ;;  %s13487_s14 = sld [smem:[#allocation26_spill]] }
 0x141   : > { %1227 = vperm.xlu0 %11125, %v12254_v63   ;;  %v930_v35 = vsel %vm564_vm7, %v929_v14, %v928_v30  ;;  %v1047_v36 = vld [vmem:[%s12174_s0 + $0x73] sm:$0x1]  ;;  %v1078_v37 = vsel %vm546_vm0, %v1077_v26, %v1033_v8  ;;  %v1089_v38 = vrot.slane %v1040_v17, 1  ;;  %v1091_v39 = vrot.slane %v1042_v21, 7  ;;  %10105 = vmatprep.mubr.msk.f32.mxu1 %vm582_vm6, %v12221_v29  ;;  %v1048_v41 = vld [vmem:[%s12174_s0 + $0x7b] sm:$0x1] }
 0x142   : > { %1232 = vperm.xlu1 %11126, %v12264_v10   ;;  %v10728_v40 = vpack.c.bf16 %v930_v35, %v916_v18  ;;  %v1080_v42 = vsel %vm549_vm1, %v1079_v27, %v1078_v37  ;;  %v1093_v43 = vrot.slane %v1043_v22, 6  ;;  %v1095_v44 = vrot.slane %v1044_v23, 5  ;;  %v1207_v52 = vld [vmem:[%s12174_s0 + $0x4] sm:$0x1]  ;;  %v1208_v53 = vld [vmem:[%s12174_s0 + $0xc] sm:$0x1] }
 0x143   : > { %v1082_v45 = vsel %vm552_vm2, %v1081_v28, %v1080_v42  ;;  %v1092_v46 = vsel %vm546_vm0, %v1091_v39, %v1041_v20  ;;  %v1097_v47 = vrot.slane %v1045_v25, 4  ;;  %v1099_v48 = vrot.slane %v1046_v31, 3  ;;  %v1209_v54 = vld [vmem:[%s12174_s0 + $0x14] sm:$0x1]  ;;  %v1210_v58 = vld [vmem:[%s12174_s0 + $0x1c] sm:$0x1] }
 0x144   : > { %10729 = vmatprep.subr.bf16.mxu0 %v10728_v40  ;;  %v1084_v49 = vsel %vm555_vm3, %v1083_v32, %v1082_v45  ;;  %v1094_v50 = vsel %vm549_vm1, %v1093_v43, %v1092_v46  ;;  %v1101_v51 = vrot.slane %v1047_v36, 2  ;;  %v1103_v57 = vrot.slane %v1048_v41, 1  ;;  %v1211_v59 = vld [vmem:[%s12174_s0 + $0x24] sm:$0x1]  ;;  %v1212_v62 = vld [vmem:[%s12174_s0 + $0x2c] sm:$0x1] }
 0x145   : > { %v1086_v55 = vsel %vm558_vm4, %v1085_v33, %v1084_v49  ;;  %v1096_v56 = vsel %vm552_vm2, %v1095_v44, %v1094_v50  ;;  %10731 = vmatpush3.bf16.msra.mxu0 %v10728_v40  ;;  %v1213_v0 = vld [vmem:[%s12174_s0 + $0x34] sm:$0x1]  ;;  %v1214_v1 = vld [vmem:[%s12174_s0 + $0x3c] sm:$0x1]  ;;  %v1215_v4 = vld [vmem:[%s12174_s0 + $0x44] sm:$0x1] }
 0x146   : > { %v1088_v60 = vsel %vm561_vm5, %v1087_v34, %v1086_v55  ;;  %v1098_v61 = vsel %vm555_vm3, %v1097_v47, %v1096_v56  ;;  %v1216_v5 = vld [vmem:[%s12174_s0 + $0x4c] sm:$0x1]  ;;  %v1217_v6 = vld [vmem:[%s12174_s0 + $0x54] sm:$0x1]  ;;  %v1251_v7 = vrot.slane %v1208_v53, 7  ;;  %v1253_v8 = vrot.slane %v1209_v54, 6 }
 0x147   : > { %v1090_v2 = vsel %vm564_vm7, %v1089_v38, %v1088_v60  ;;  %v1100_v3 = vsel %vm558_vm4, %v1099_v48, %v1098_v61  ;;  %v1218_v11 = vld [vmem:[%s12174_s0 + $0x5c] sm:$0x1]  ;;  %v1219_v12 = vld [vmem:[%s12174_s0 + $0x64] sm:$0x1]  ;;  %v1255_v13 = vrot.slane %v1210_v58, 5  ;;  %v1257_v14 = vrot.slane %v1211_v59, 4 }
 0x148   : > { %v1102_v9 = vsel %vm561_vm5, %v1101_v51, %v1100_v3  ;;  %10099 = vmatmul.mubr.msk.f32.vlgmr.msra.gmra.mrb[2].mxu0 %vm582_vm6, %v12268_v15  ;;  %v1220_v17 = vld [vmem:[%s12174_s0 + $0x6c] sm:$0x1]  ;;  %v1221_v18 = vld [vmem:[%s12174_s0 + $0x74] sm:$0x1]  ;;  %v1252_v19 = vsel %vm546_vm0, %v1251_v7, %v1207_v52  ;;  %v1259_v20 = vrot.slane %v1212_v62, 3  ;;  %v1261_v21 = vrot.slane %v1213_v0, 2 }
 0x149   : > { %v1104_v16 = vsel %vm564_vm7, %v1103_v57, %v1102_v9  ;;  %10112 = vmatprep.mubr.msk.f32.mxu0 %vm582_vm6, %v12221_v29  ;;  %v1222_v23 = vld [vmem:[%s12174_s0 + $0x7c] sm:$0x1]  ;;  %v1254_v24 = vsel %vm549_vm1, %v1253_v8, %v1252_v19  ;;  %v1265_v25 = vrot.slane %v1216_v5, 7  ;;  %v1267_v26 = vrot.slane %v1217_v6, 6  ;;  %v1382_v27 = vld [vmem:[%s12174_s0 + $0xd] sm:$0x1] }
 0x14a   : > { %v10732_v22 = vpack.c.bf16 %v1104_v16, %v1090_v2  ;;  %v1256_v28 = vsel %vm552_vm2, %v1255_v13, %v1254_v24  ;;  %v1263_v30 = vrot.slane %v1214_v1, 1  ;;  %v1269_v31 = vrot.slane %v1218_v11, 5  ;;  %v1383_v33 = vld [vmem:[%s12174_s0 + $0x15] sm:$0x1]  ;;  %v1381_v37 = vld [vmem:[%s12174_s0 + $0x5] sm:$0x1] }
 0x14b   : > { %v1271_v32 = vrot.slane %v1219_v12, 4  ;;  %v1258_v34 = vsel %vm555_vm3, %v1257_v14, %v1256_v28  ;;  %v1266_v35 = vsel %vm546_vm0, %v1265_v25, %v1215_v4  ;;  %v1273_v36 = vrot.slane %v1220_v17, 3  ;;  %v1384_v38 = vld [vmem:[%s12174_s0 + $0x1d] sm:$0x1]  ;;  %v1385_v39 = vld [vmem:[%s12174_s0 + $0x25] sm:$0x1] }
 0x14c   : > { %10733 = vmatprep.subr.bf16.mxu1 %v10732_v22  ;;  %v1260_v40 = vsel %vm558_vm4, %v1259_v20, %v1258_v34  ;;  %v1268_v41 = vsel %vm549_vm1, %v1267_v26, %v1266_v35  ;;  %v1275_v42 = vrot.slane %v1221_v18, 2  ;;  %v1277_v43 = vrot.slane %v1222_v23, 1  ;;  %v1386_v44 = vld [vmem:[%s12174_s0 + $0x2d] sm:$0x1]  ;;  %v1387_v45 = vld [vmem:[%s12174_s0 + $0x35] sm:$0x1] }
 0x14d   : > { %10735 = vmatpush3.bf16.msra.mxu1 %v10732_v22  ;;  %v1262_v46 = vsel %vm561_vm5, %v1261_v21, %v1260_v40  ;;  %v1270_v47 = vsel %vm552_vm2, %v1269_v31, %v1268_v41  ;;  %v1388_v48 = vld [vmem:[%s12174_s0 + $0x3d] sm:$0x1]  ;;  %v1390_v49 = vld [vmem:[%s12174_s0 + $0x4d] sm:$0x1]  ;;  %v1391_v50 = vld [vmem:[%s12174_s0 + $0x55] sm:$0x1] }
 0x14e   : > { %v1264_v51 = vsel %vm564_vm7, %v1263_v30, %v1262_v46  ;;  %v1272_v52 = vsel %vm555_vm3, %v1271_v32, %v1270_v47  ;;  %v1389_v53 = vld [vmem:[%s12174_s0 + $0x45] sm:$0x1]  ;;  %v1392_v54 = vld [vmem:[%s12174_s0 + $0x5d] sm:$0x1]  ;;  %v1425_v56 = vrot.slane %v1382_v27, 7  ;;  %v1427_v57 = vrot.slane %v1383_v33, 6 }
 0x14f   : > { %v1393_v55 = vld [vmem:[%s12174_s0 + $0x65] sm:$0x1]  ;;  %v1274_v58 = vsel %vm558_vm4, %v1273_v36, %v1272_v52  ;;  %v1394_v59 = vld [vmem:[%s12174_s0 + $0x6d] sm:$0x1]  ;;  %v1429_v60 = vrot.slane %v1384_v38, 5  ;;  %v1431_v61 = vrot.slane %v1385_v39, 4 }
 0x150   : > { %10106 = vmatmul.mubr.msk.f32.vlgmr.msra.gmra.mrb[2].mxu1 %vm582_vm6, %v12268_v15  ;;  %v1433_v62 = vrot.slane %v1386_v44, 3  ;;  %v1276_v0 = vsel %vm561_vm5, %v1275_v42, %v1274_v58  ;;  %v1395_v1 = vld [vmem:[%s12174_s0 + $0x75] sm:$0x1]  ;;  %v1396_v2 = vld [vmem:[%s12174_s0 + $0x7d] sm:$0x1]  ;;  %v1426_v3 = vsel %vm546_vm0, %v1425_v56, %v1381_v37  ;;  %v1435_v4 = vrot.slane %v1387_v45, 2 }
 0x151   : > { %v1437_v5 = vrot.slane %v1388_v48, 1  ;;  %10119 = vmatprep.mubr.msk.f32.mxu1 %vm582_vm6, %v12221_v29  ;;  %v1278_v6 = vsel %vm564_vm7, %v1277_v43, %v1276_v0  ;;  %v1428_v7 = vsel %vm549_vm1, %v1427_v57, %v1426_v3  ;;  %v1439_v8 = vrot.slane %v1390_v49, 7  ;;  %v1555_v11 = vld [vmem:[%s12174_s0 + $0x6] sm:$0x1]  ;;  %v1556_v12 = vld [vmem:[%s12174_s0 + $0xe] sm:$0x1] }
 0x152   : > { %v1441_v9 = vrot.slane %v1391_v50, 6  ;;  %v10736_v13 = vpack.c.bf16 %v1278_v6, %v1264_v51  ;;  %v1430_v14 = vsel %vm552_vm2, %v1429_v60, %v1428_v7  ;;  %v1443_v16 = vrot.slane %v1392_v54, 5  ;;  %v1557_v18 = vld [vmem:[%s12174_s0 + $0x16] sm:$0x1]  ;;  %v1558_v19 = vld [vmem:[%s12174_s0 + $0x1e] sm:$0x1] }
 0x153   : > { %v1445_v17 = vrot.slane %v1393_v55, 4  ;;  %v1432_v20 = vsel %vm555_vm3, %v1431_v61, %v1430_v14  ;;  %v1440_v21 = vsel %vm546_vm0, %v1439_v8, %v1389_v53  ;;  %v1447_v22 = vrot.slane %v1394_v59, 3  ;;  %v1559_v23 = vld [vmem:[%s12174_s0 + $0x26] sm:$0x1]  ;;  %v1560_v24 = vld [vmem:[%s12174_s0 + $0x2e] sm:$0x1] }
 0x154   : > { %10737 = vmatprep.subr.bf16.mxu0 %v10736_v13  ;;  %v1434_v25 = vsel %vm558_vm4, %v1433_v62, %v1432_v20  ;;  %v1442_v26 = vsel %vm549_vm1, %v1441_v9, %v1440_v21  ;;  %v1449_v27 = vrot.slane %v1395_v1, 2  ;;  %v1561_v28 = vld [vmem:[%s12174_s0 + $0x36] sm:$0x1]  ;;  %v1562_v30 = vld [vmem:[%s12174_s0 + $0x3e] sm:$0x1]  ;;  %v1599_v31 = vrot.slane %v1556_v12, 7 }
 0x155   : > { %10739 = vmatpush3.bf16.msra.mxu0 %v10736_v13  ;;  %v1436_v32 = vsel %vm561_vm5, %v1435_v4, %v1434_v25  ;;  %v1444_v33 = vsel %vm552_vm2, %v1443_v16, %v1442_v26  ;;  %v1451_v34 = vrot.slane %v1396_v2, 1  ;;  %v1564_v35 = vld [vmem:[%s12174_s0 + $0x4e] sm:$0x1]  ;;  %v1565_v36 = vld [vmem:[%s12174_s0 + $0x56] sm:$0x1]  ;;  %v1601_v43 = vrot.slane %v1557_v18, 6 }
 0x156   : > { %v1438_v37 = vsel %vm564_vm7, %v1437_v5, %v1436_v32  ;;  %v1446_v38 = vsel %vm555_vm3, %v1445_v17, %v1444_v33  ;;  %v1563_v39 = vld [vmem:[%s12174_s0 + $0x46] sm:$0x1]  ;;  %v1566_v40 = vld [vmem:[%s12174_s0 + $0x5e] sm:$0x1]  ;;  %v1600_v42 = vsel %vm546_vm0, %v1599_v31, %v1555_v11  ;;  %v1568_v45 = vld [vmem:[%s12174_s0 + $0x6e] sm:$0x1] }
 0x157   : > { %v1567_v41 = vld [vmem:[%s12174_s0 + $0x66] sm:$0x1]  ;;  %v1448_v44 = vsel %vm558_vm4, %v1447_v22, %v1446_v38  ;;  %v1603_v46 = vrot.slane %v1558_v19, 5  ;;  %v1605_v47 = vrot.slane %v1559_v23, 4  ;;  %v1607_v48 = vrot.slane %v1560_v24, 3  ;;  %s9778_s17 = sshll.u32 %s13487_s14, 5 }
 0x158   : > { %10113 = vmatmul.mubr.msk.f32.vlgmr.msra.gmra.mrb[4].mxu0 %vm582_vm6, %v12268_v15  ;;  %v1450_v49 = vsel %vm561_vm5, %v1449_v27, %v1448_v44  ;;  %v1569_v50 = vld [vmem:[%s12174_s0 + $0x76] sm:$0x1]  ;;  %v1570_v51 = vld [vmem:[%s12174_s0 + $0x7e] sm:$0x1]  ;;  %v1602_v52 = vsel %vm549_vm1, %v1601_v43, %v1600_v42  ;;  %v1609_v53 = vrot.slane %v1561_v28, 2  ;;  %v1611_v54 = vrot.slane %v1562_v30, 1 }
 0x159   : > { %v1452_v55 = vsel %vm564_vm7, %v1451_v34, %v1450_v49  ;;  %v1604_v56 = vsel %vm552_vm2, %v1603_v46, %v1602_v52  ;;  %v1613_v57 = vrot.slane %v1564_v35, 7  ;;  %v1615_v58 = vrot.slane %v1565_v36, 6  ;;  %10126 = vmatprep.mubr.msk.f32.mxu0 %vm582_vm6, %v12221_v29  ;;  %v1729_v59 = vld [vmem:[%s12174_s0 + $0x7] sm:$0x1]  ;;  %v1730_v60 = vld [vmem:[%s12174_s0 + $0xf] sm:$0x1] }
 0x15a   : > { %v10740_v61 = vpack.c.bf16 %v1452_v55, %v1438_v37  ;;  %v1606_v62 = vsel %vm555_vm3, %v1605_v47, %v1604_v56  ;;  %v1617_v0 = vrot.slane %v1566_v40, 5  ;;  %v1619_v1 = vrot.slane %v1567_v41, 4  ;;  %v1731_v2 = vld [vmem:[%s12174_s0 + $0x17] sm:$0x1]  ;;  %v1732_v3 = vld [vmem:[%s12174_s0 + $0x1f] sm:$0x1] }
 0x15b   : > { %v1608_v4 = vsel %vm558_vm4, %v1607_v48, %v1606_v62  ;;  %v1614_v5 = vsel %vm546_vm0, %v1613_v57, %v1563_v39  ;;  %v1621_v6 = vrot.slane %v1568_v45, 3  ;;  %v1733_v7 = vld [vmem:[%s12174_s0 + $0x27] sm:$0x1]  ;;  %v1734_v8 = vld [vmem:[%s12174_s0 + $0x2f] sm:$0x1]  ;;  %v1623_v12 = vrot.slane %v1569_v50, 2 }
 0x15c   : > { %10741 = vmatprep.subr.bf16.mxu1 %v10740_v61  ;;  %v1610_v9 = vsel %vm561_vm5, %v1609_v53, %v1608_v4  ;;  %v1616_v11 = vsel %vm549_vm1, %v1615_v58, %v1614_v5  ;;  %v1735_v13 = vld [vmem:[%s12174_s0 + $0x37] sm:$0x1]  ;;  %v1736_v14 = vld [vmem:[%s12174_s0 + $0x3f] sm:$0x1]  ;;  %v1773_v16 = vrot.slane %v1730_v60, 7  ;;  %v1625_v19 = vrot.slane %v1570_v51, 1 }
 0x15d   : > { %10743 = vmatpush3.bf16.msra.mxu1 %v10740_v61  ;;  %v1612_v17 = vsel %vm564_vm7, %v1611_v54, %v1610_v9  ;;  %v1618_v18 = vsel %vm552_vm2, %v1617_v0, %v1616_v11  ;;  %v1737_v20 = vld [vmem:[%s12174_s0 + $0x47] sm:$0x1]  ;;  %v1738_v21 = vld [vmem:[%s12174_s0 + $0x4f] sm:$0x1]  ;;  %v1739_v23 = vld [vmem:[%s12174_s0 + $0x57] sm:$0x1] }
 0x15e   : > { %v1620_v22 = vsel %vm555_vm3, %v1619_v1, %v1618_v18  ;;  %v1740_v24 = vld [vmem:[%s12174_s0 + $0x5f] sm:$0x1]  ;;  %v1774_v25 = vsel %vm546_vm0, %v1773_v16, %v1729_v59  ;;  %v1775_v26 = vrot.slane %v1731_v2, 6  ;;  %v1777_v27 = vrot.slane %v1732_v3, 5  ;;  %v1741_v30 = vld [vmem:[%s12174_s0 + $0x67] sm:$0x1] }
 0x15f   : > { %v1622_v28 = vsel %vm558_vm4, %v1621_v6, %v1620_v22  ;;  %v1779_v31 = vrot.slane %v1733_v7, 4  ;;  %v1781_v32 = vrot.slane %v1734_v8, 3  ;;  %v1783_v33 = vrot.slane %v1735_v13, 2  ;;  %v1742_v35 = vld [vmem:[%s12174_s0 + $0x6f] sm:$0x1]  ;;  %s13488_s24 = sld [smem:[#allocation37_spill]] }
 0x160   : > { %10120 = vmatmul.mubr.msk.f32.vlgmr.msra.gmra.mrb[4].mxu1 %vm582_vm6, %v12268_v15  ;;  %v1624_v34 = vsel %vm561_vm5, %v1623_v12, %v1622_v28  ;;  %v1743_v36 = vld [vmem:[%s12174_s0 + $0x77] sm:$0x1]  ;;  %v1776_v37 = vsel %vm549_vm1, %v1775_v26, %v1774_v25  ;;  %v1785_v38 = vrot.slane %v1736_v14, 1  ;;  %v1787_v39 = vrot.slane %v1738_v21, 7  ;;  %v1744_v41 = vld [vmem:[%s12174_s0 + $0x7f] sm:$0x1] }
 0x161   : > { %v1626_v40 = vsel %vm564_vm7, %v1625_v19, %v1624_v34  ;;  %v1778_v42 = vsel %vm552_vm2, %v1777_v27, %v1776_v37  ;;  %v1789_v43 = vrot.slane %v1739_v23, 6  ;;  %v1791_v44 = vrot.slane %v1740_v24, 5  ;;  %10133 = vmatprep.mubr.msk.f32.mxu1 %vm582_vm6, %v12221_v29  ;;  %s13486_s0 = sld [smem:[#allocation25_spill]]  ;;  %s9356_s28 = sshll.u32 %s13263_s7, 4  ;;  %s13296_s28 = int_to_ptr.vmem [resolvable:$true] %s9356_s28 }
 0x162   : > { %v10744_v45 = vpack.c.bf16 %v1626_v40, %v1612_v17  ;;  %v1780_v46 = vsel %vm555_vm3, %v1779_v31, %v1778_v42  ;;  %v1788_v47 = vsel %vm546_vm0, %v1787_v39, %v1737_v20  ;;  %v1793_v48 = vrot.slane %v1741_v30, 4  ;;  %v12515_v20 = vld [vmem:[%s12190_s4] sm:$0xff]  ;;  %s13489_s6 = sld [smem:[#allocation44_spill]]  ;;  %s9341_s1 = scalar_lea.sflag [#allocation6], %s12168_s22 }
 0x163   : > { %v1782_v49 = vsel %vm558_vm4, %v1781_v32, %v1780_v46  ;;  %v1790_v50 = vsel %vm549_vm1, %v1789_v43, %v1788_v47  ;;  %v1795_v51 = vrot.slane %v1742_v35, 3  ;;  %v1797_v52 = vrot.slane %v1743_v36, 2  ;;  %s11725_s5 = smov [#allocation16]  }
 0x164   : > { %10745 = vmatprep.subr.bf16.mxu0 %v10744_v45  ;;  %v1784_v53 = vsel %vm561_vm5, %v1783_v33, %v1782_v49  ;;  %v1792_v54 = vsel %vm552_vm2, %v1791_v44, %v1790_v50  ;;  %v1799_v55 = vrot.slane %v1744_v41, 1  ;;  %vm493_vm8 = vcmask 80896  }
 0x165   : > { %10747 = vmatpush3.bf16.msra.mxu0 %v10744_v45  ;;  %v1794_v29 = vsel %vm555_vm3, %v1793_v48, %v1792_v54  ;;  %v1786_v56 = vsel %vm564_vm7, %v1785_v38, %v1784_v53  ;;  %v11720_v7 = vmov 0.0   ;;  %vm11722_vm9 = vmmov 0   ;;  %p13490_p12 = scmp.ne.s32.totalorder %s13488_s24, 0 }
 0x166   : > { %v1796_v57 = vsel %vm558_vm4, %v1795_v51, %v1794_v29  ;;  %494 = vst.msk [vmem:[#allocation2] sm:$0xff] %vm493_vm8, %v11720_v7  ;;  %495 = vst.msk [vmem:[#allocation2 + $0x8] sm:$0xff] %vm493_vm8, %v11720_v7  ;;  %vm674_vm10 = vcmask 7168   ;;  %vm677_vm11 = vcmask 72704   ;;  %vm2637_vm12 = vcmask 64512  }
 0x167   : > { %v1798_v58 = vsel %vm561_vm5, %v1797_v52, %v1796_v57  ;;  %497 = vst.msk [vmem:[#allocation2 + $0x90] sm:$0xff] %vm493_vm8, %v11720_v7  ;;  %498 = vst.msk [vmem:[#allocation2 + $0x98] sm:$0xff] %vm493_vm8, %v11720_v7  ;;  %s9777_s19 = sshll.u32 %s13486_s0, 4 }
 0x168   : > { %10127 = vmatmul.mubr.msk.f32.vlgmr.msra.gmra.mrb[6].mxu0 %vm582_vm6, %v12268_v15  ;;  %v1800_v59 = vsel %vm564_vm7, %v1799_v55, %v1798_v58  ;;  %s9353_s15 = sadd.s32 %s9778_s17, %s9777_s19 }
 0x169   : > { %v10748_v60 = vpack.c.bf16 %v1800_v59, %v1786_v56  ;;  %10140 = vmatprep.mubr.msk.f32.mxu0 %vm11722_vm9, %v11720_v7  ;;  %s9779_s23 = sshll.u32 %s9353_s15, 7 }
 0x16a   : > { %s13301_s21 = scalar_lea.hbm %s13489_s6, %s9779_s23 }
 0x16b   : > { %10749 = vmatprep.subr.bf16.mxu1 %v10748_v60 }
 0x16c   : > { %10751 = vmatpush3.bf16.msra.mxu1 %v10748_v60 }
 0x16d   : > { %v1901_v16 = vld [vmem:[#allocation2] sm:$0xff]  ;;  %v1902_v17 = vld [vmem:[#allocation2 + $0x8] sm:$0xff] }
 0x16e   : > { %v10756_v19 = vpack.c.bf16 %v1902_v17, %v1901_v16  ;;  %v11132_v46 = vpack.i.bf16 %v1902_v17, %v1901_v16 }
 0x16f   : > { %10134 = vmatmul.mubr.msk.f32.vlgmr.msra.gmra.mrb[6].mxu1 %vm582_vm6, %v12268_v15  ;;  %v11721_v15 = vmov 0.0|0.0  }
 0x170   : > { %10755 = vmatprep.subr.bf16.mxu1 %v11721_v15  ;;  %10147 = vmatprep.mubr.msk.f32.mxu1 %vm11722_vm9, %v11720_v7 }
 0x171   : > { %10752 = vmatprep.subr.bf16.mxu0 %v11721_v15  ;;  %10757 = vmatpush3.bf16.msra.mxu1 %v10756_v19 }
 0x172   : > { %10761 = vmatprep.subr.bf16.mxu1 %v11721_v15 }
 0x174   : > { %10148 = vmatmul.mubr.msk.f32.vlgmr.msra.gmra.mrb[8].mxu1 %vm582_vm6, %v12515_v20 }
 0x175   : > { %10161 = vmatprep.mubr.msk.f32.mxu1 %vm11722_vm9, %v11720_v7 }
 0x1b0   : > { %v522_v61 = vpop.permute.xlu0 %521  ;;  %v706_v4 = vpop.permute.xlu1 %705 }
 0x1b4   : > { %v527_v62 = vpop.permute.xlu0 %526 }
 0x1b5   : > { %v711_v8 = vpop.permute.xlu1 %710 }
 0x1b8   : > { %v880_v23 = vpop.permute.xlu0 %879 }
 0x1b9   : > { %v885_v21 = vpop.permute.xlu1 %884 }
 0x1bc   : > { %v1054_v32 = vpop.permute.xlu0 %1053 }
 0x1bd   : > { %v1059_v30 = vpop.permute.xlu1 %1058 }
 0x1c0   : > { %v1228_v40 = vpop.permute.xlu0 %1227 }
 0x1c1   : > { %v1233_v38 = vpop.permute.xlu1 %1232 }
 0x20b   : > { %v10086_v0 = vpop.f32.mrb[0].mxu0 }
 0x20c   : > { %v661_v1 = vadd.f32 %v10086_v0, %v527_v62  ;;  %v655_v2 = vpop.f32.mrb[1].mxu0 }
 0x20d   : > { %v656_v3 = vadd.f32 %v655_v2, %v522_v61 }
 0x20e   : > { %v665_v5 = vmax.f32 %v661_v1, 0.0 }
 0x20f   : > { %v664_v6 = vmax.f32 %v656_v3, 0.0  ;;  %v12562_v3 = vld [vmem:[%s12190_s4 + $0x18] sm:$0xff] }
 0x210   : > { %670 = vrot.lane.b32.xlu1 %v665_v5, %s11719_s25 }
 0x211   : > { %668 = vrot.lane.b32.xlu0 %v664_v6, %s11719_s25 }
 0x213   : > { %v10093_v9 = vpop.f32.mrb[0].mxu1 }
 0x214   : > { %v837_v11 = vadd.f32 %v10093_v9, %v711_v8  ;;  %v831_v12 = vpop.f32.mrb[1].mxu1 }
 0x215   : > { %v832_v13 = vadd.f32 %v831_v12, %v706_v4 }
 0x216   : > { %v841_v14 = vmax.f32 %v837_v11, 0.0 }
 0x217   : > { %v840_v18 = vmax.f32 %v832_v13, 0.0 }
 0x218   : > { %846 = vrot.lane.b32.xlu1 %v841_v14, %s11719_s25 }
 0x219   : > { %844 = vrot.lane.b32.xlu0 %v840_v18, %s11719_s25 }
 0x21b   : > { %v10100_v22 = vpop.f32.mrb[2].mxu0 }
 0x21c   : > { %v1011_v24 = vadd.f32 %v10100_v22, %v885_v21  ;;  %v1005_v25 = vpop.f32.mrb[3].mxu0  ;;  %1406 = vperm.xlu1 %11126, %v12264_v10  }
 0x21d   : > { %v1006_v26 = vadd.f32 %v1005_v25, %v880_v23  ;;  %1401 = vperm.xlu0 %11125, %v12254_v63  }
 0x21e   : > { %v1015_v27 = vmax.f32 %v1011_v24, 0.0 }
 0x21f   : > { %v1014_v28 = vmax.f32 %v1006_v26, 0.0 }
 0x220   : > { %1020 = vrot.lane.b32.xlu1 %v1015_v27, %s11719_s25 }
 0x221   : > { %1018 = vrot.lane.b32.xlu0 %v1014_v28, %s11719_s25 }
 0x223   : > { %v10107_v31 = vpop.f32.mrb[2].mxu1 }
 0x224   : > { %v1185_v33 = vadd.f32 %v10107_v31, %v1059_v30  ;;  %v1179_v34 = vpop.f32.mrb[3].mxu1  ;;  %1580 = vperm.xlu1 %11126, %v12264_v10  }
 0x225   : > { %v1180_v35 = vadd.f32 %v1179_v34, %v1054_v32  ;;  %1575 = vperm.xlu0 %11125, %v12254_v63  }
 0x226   : > { %v1189_v36 = vmax.f32 %v1185_v33, 0.0 }
 0x227   : > { %v1188_v37 = vmax.f32 %v1180_v35, 0.0 }
 0x228   : > { %1194 = vrot.lane.b32.xlu1 %v1189_v36, %s11719_s25 }
 0x229   : > { %1192 = vrot.lane.b32.xlu0 %v1188_v37, %s11719_s25 }
 0x22b   : > { %v10114_v39 = vpop.f32.mrb[4].mxu0 }
 0x22c   : > { %1754 = vperm.xlu1 %11126, %v12264_v10   ;;  %v1359_v41 = vadd.f32 %v10114_v39, %v1233_v38  ;;  %v1353_v42 = vpop.f32.mrb[5].mxu0 }
 0x22d   : > { %1749 = vperm.xlu0 %11125, %v12254_v63   ;;  %v1354_v43 = vadd.f32 %v1353_v42, %v1228_v40 }
 0x22e   : > { %v1363_v44 = vmax.f32 %v1359_v41, 0.0 }
 0x22f   : > { %v1362_v45 = vmax.f32 %v1354_v43, 0.0 }
 0x230   : > { %1368 = vrot.lane.b32.xlu1 %v1363_v44, %s11719_s25 }
 0x231   : > { %1366 = vrot.lane.b32.xlu0 %v1362_v45, %s11719_s25 }
 0x233   : > { %v10121_v47 = vpop.f32.mrb[4].mxu1 }
 0x234   : > { %11133 = vrot.lane.b32.xlu1 %v11132_v46, %s11723_s8  ;;  %v1527_v48 = vpop.f32.mrb[5].mxu1 }
 0x235   : > { %11128 = vrot.lane.b32.xlu0 %v11132_v46, %s11724_s27 }
 0x23b   : > { %v12536_v10 = vpop.f32.mrb[6].mxu0 }
 0x23c   : > { %v12538_v49 = vpop.f32.mrb[7].mxu0 }
 0x242   : > { %v12540_v63 = vpop.f32.mrb[6].mxu1 }
 0x243   : > { %v12542_v50 = vpop.f32.mrb[7].mxu1 }
 0x282   : > { %v671_v51 = vpop.permute.xlu1 %670 }
 0x283   : > { %v676_v52 = vsel %vm674_vm10, 0.0, %v671_v51  ;;  %v669_v53 = vpop.permute.xlu0 %668 }
 0x284   : > { %v679_v54 = vsel %vm677_vm11, %v676_v52, 0.0  ;;  %v675_v55 = vsel %vm674_vm10, 0.0, %v669_v53 }
 0x285   : > { %682 = vst.msk [vmem:[#allocation2 + $0x18] sm:$0xff] %vm493_vm8, %v679_v54  ;;  %v678_v29 = vsel %vm677_vm11, %v675_v55, 0.0 }
 0x286   : > { %681 = vst.msk [vmem:[#allocation2 + $0x10] sm:$0xff] %vm493_vm8, %v678_v29 }
 0x28a   : > { %v847_v56 = vpop.permute.xlu1 %846 }
 0x28b   : > { %v851_v57 = vsel %vm674_vm10, 0.0, %v847_v56  ;;  %v845_v58 = vpop.permute.xlu0 %844 }
 0x28c   : > { %v2143_v59 = vld [vmem:[#allocation2 + $0x18] sm:$0xff]  ;;  %v853_v60 = vsel %vm677_vm11, %v851_v57, 0.0  ;;  %v850_v61 = vsel %vm674_vm10, 0.0, %v845_v58 }
 0x28d   : > { %v2142_v62 = vld [vmem:[#allocation2 + $0x10] sm:$0xff]  ;;  %856 = vst.msk [vmem:[#allocation2 + $0x28] sm:$0xff] %vm493_vm8, %v853_v60  ;;  %v852_v0 = vsel %vm677_vm11, %v850_v61, 0.0 }
 0x28e   : > { %v11142_v1 = vpack.i.bf16 %v2143_v59, %v2142_v62  ;;  %v12555_v2 = vpack.c.bf16 %v2143_v59, %v2142_v62  ;;  %855 = vst.msk [vmem:[#allocation2 + $0x20] sm:$0xff] %vm493_vm8, %v852_v0 }
 0x290   : > { %11143 = vrot.lane.b32.xlu1 %v11142_v1, %s11723_s8  ;;  %11138 = vrot.lane.b32.xlu0 %v11142_v1, %s11724_s27 }
 0x291   : > { %10763 = vmatpush3.bf16.msra.mxu1 %v12555_v2 }
 0x292   : > { %10767 = vmatprep.subr.bf16.mxu1 %v11721_v15 }
 0x294   : > { %10162 = vmatmul.mubr.msk.f32.vlgmr.msra.gmra.mrb[10].mxu1 %vm582_vm6, %v12562_v3  ;;  %v2387_v4 = vld [vmem:[#allocation2 + $0x28] sm:$0xff] }
 0x295   : > { %10175 = vmatprep.mubr.msk.f32.mxu1 %vm11722_vm9, %v11720_v7  ;;  %v2386_v5 = vld [vmem:[#allocation2 + $0x20] sm:$0xff] }
 0x296   : > { %v12569_v6 = vpack.i.bf16 %v2387_v4, %v2386_v5  ;;  %v12571_v8 = vpack.c.bf16 %v2387_v4, %v2386_v5 }
 0x298   : > { %11153 = vrot.lane.b32.xlu1 %v12569_v6, %s11723_s8 }
 0x29b   : > { %v1407_v9 = vpop.permute.xlu1 %1406 }
 0x29c   : > { %v1533_v11 = vadd.f32 %v10121_v47, %v1407_v9  ;;  %v1402_v12 = vpop.permute.xlu0 %1401 }
 0x29d   : > { %v1528_v13 = vadd.f32 %v1527_v48, %v1402_v12 }
 0x29e   : > { %v1537_v14 = vmax.f32 %v1533_v11, 0.0 }
 0x29f   : > { %v1536_v16 = vmax.f32 %v1528_v13, 0.0  ;;  %v1021_v17 = vpop.permute.xlu1 %1020 }
 0x2a0   : > { %v1025_v18 = vsel %vm674_vm10, 0.0, %v1021_v17  ;;  %v1019_v19 = vpop.permute.xlu0 %1018  ;;  %1542 = vrot.lane.b32.xlu1 %v1537_v14, %s11719_s25 }
 0x2a1   : > { %v1027_v21 = vsel %vm677_vm11, %v1025_v18, 0.0  ;;  %v1024_v22 = vsel %vm674_vm10, 0.0, %v1019_v19  ;;  %1540 = vrot.lane.b32.xlu0 %v1536_v16, %s11719_s25  ;;  %v12660_v19 = vld [vmem:[%s12190_s4 + $0x20] sm:$0xff] }
 0x2a2   : > { %1030 = vst.msk [vmem:[#allocation2 + $0x38] sm:$0xff] %vm493_vm8, %v1027_v21  ;;  %v1026_v23 = vsel %vm677_vm11, %v1024_v22, 0.0  ;;  %v12663_v21 = vld [vmem:[%s12190_s4 + $0x28] sm:$0xff] }
 0x2a3   : > { %1029 = vst.msk [vmem:[#allocation2 + $0x30] sm:$0xff] %vm493_vm8, %v1026_v23  ;;  %v1581_v24 = vpop.permute.xlu1 %1580  ;;  %v12675_v23 = vld [vmem:[%s12190_s4 + $0x30] sm:$0xff] }
 0x2a4   : > { %v1576_v25 = vpop.permute.xlu0 %1575  ;;  %11163 = vrot.lane.b32.xlu1 %v11142_v1, %s11723_s8  ;;  %v1707_v35 = vadd.f32 %v12536_v10, %v1581_v24 }
 0x2a5   : > { %11148 = vrot.lane.b32.xlu0 %v12569_v6, %s11724_s27  ;;  %v1702_v36 = vadd.f32 %v12538_v49, %v1576_v25 }
 0x2a6   : > { %v1711_v41 = vmax.f32 %v1707_v35, 0.0 }
 0x2a7   : > { %v1195_v26 = vpop.permute.xlu1 %1194  ;;  %v1710_v42 = vmax.f32 %v1702_v36, 0.0 }
 0x2a8   : > { %v1199_v27 = vsel %vm674_vm10, 0.0, %v1195_v26  ;;  %v1193_v28 = vpop.permute.xlu0 %1192  ;;  %11173 = vrot.lane.b32.xlu1 %v12569_v6, %s11723_s8 }
 0x2a9   : > { %v1201_v30 = vsel %vm677_vm11, %v1199_v27, 0.0  ;;  %v1198_v31 = vsel %vm674_vm10, 0.0, %v1193_v28  ;;  %11158 = vrot.lane.b32.xlu0 %v11142_v1, %s11724_s27  ;;  %v3120_v32 = vld [vmem:[#allocation2 + $0x38] sm:$0xff]  ;;  %v12622_v1 = vld [vmem:[%s12190_s4 + $0x8] sm:$0xff]  ;;  %v12685_v27 = vld [vmem:[%s12190_s4 + $0x40] sm:$0xff] }
 0x2aa   : > { %1204 = vst.msk [vmem:[#allocation2 + $0x48] sm:$0xff] %vm493_vm8, %v1201_v30  ;;  %v1200_v33 = vsel %vm677_vm11, %v1198_v31, 0.0  ;;  %v3119_v34 = vld [vmem:[#allocation2 + $0x30] sm:$0xff] }
 0x2ab   : > { %1203 = vst.msk [vmem:[#allocation2 + $0x40] sm:$0xff] %vm493_vm8, %v1200_v33  ;;  %v1755_v37 = vpop.permute.xlu1 %1754  ;;  %v11182_v38 = vpack.i.bf16 %v3120_v32, %v3119_v34  ;;  %v12597_v39 = vpack.c.bf16 %v3120_v32, %v3119_v34 }
 0x2ac   : > { %v1750_v40 = vpop.permute.xlu0 %1749  ;;  %v1881_v59 = vadd.f32 %v12540_v63, %v1755_v37 }
 0x2ad   : > { %11183 = vrot.lane.b32.xlu1 %v11182_v38, %s11723_s8  ;;  %11168 = vrot.lane.b32.xlu0 %v12569_v6, %s11724_s27  ;;  %v1876_v61 = vadd.f32 %v12542_v50, %v1750_v40  ;;  %v12633_v50 = vld [vmem:[%s12190_s4 + $0x10] sm:$0xff] }
 0x2ae   : > { %v1885_v63 = vmax.f32 %v1881_v59, 0.0 }
 0x2af   : > { %v1369_v43 = vpop.permute.xlu1 %1368  ;;  %v1884_v5 = vmax.f32 %v1876_v61, 0.0 }
 0x2b0   : > { %v1373_v44 = vsel %vm674_vm10, 0.0, %v1369_v43  ;;  %v1367_v45 = vpop.permute.xlu0 %1366 }
 0x2b1   : > { %v1375_v46 = vsel %vm677_vm11, %v1373_v44, 0.0  ;;  %v1372_v47 = vsel %vm674_vm10, 0.0, %v1367_v45  ;;  %1716 = vrot.lane.b32.xlu1 %v1711_v41, %s11719_s25  ;;  %1714 = vrot.lane.b32.xlu0 %v1710_v42, %s11719_s25  ;;  %v3850_v48 = vld [vmem:[#allocation2 + $0x48] sm:$0xff] }
 0x2b2   : > { %1378 = vst.msk [vmem:[#allocation2 + $0x58] sm:$0xff] %vm493_vm8, %v1375_v46  ;;  %v1374_v10 = vsel %vm677_vm11, %v1372_v47, 0.0  ;;  %v3849_v49 = vld [vmem:[#allocation2 + $0x40] sm:$0xff] }
 0x2b3   : > { %1377 = vst.msk [vmem:[#allocation2 + $0x50] sm:$0xff] %vm493_vm8, %v1374_v10  ;;  %v12610_v51 = vpack.c.bf16 %v3850_v48, %v3849_v49  ;;  %v11134_v53 = vpop.permute.xlu1 %11133  ;;  %v11212_v62 = vpack.i.bf16 %v3850_v48, %v3849_v49  ;;  %v12711_v46 = vld [vmem:[%s12190_s4 + $0x38] sm:$0xff] }
 0x2b4   : > { %v11129_v52 = vpop.permute.xlu0 %11128  ;;  %v11136_v56 = vunpack.i.h.bf16 %v11134_v53  ;;  %v11135_v57 = vunpack.i.l.bf16 %v11134_v53 }
 0x2b5   : > { %11193 = vrot.lane.b32.xlu1 %v12569_v6, %s11723_s8  ;;  %11178 = vrot.lane.b32.xlu0 %v11182_v38, %s11724_s27  ;;  %v11131_v54 = vunpack.i.h.bf16 %v11129_v52  ;;  %v11130_v55 = vunpack.i.l.bf16 %v11129_v52 }
 0x2b6   : > { %v10759_v0 = vpack.c.bf16 %v11136_v56, %v11135_v57 }
 0x2b7   : > { %v10753_v29 = vpack.c.bf16 %v11131_v54, %v11130_v55 }
 0x2b9   : > { %11203 = vrot.lane.b32.xlu1 %v11182_v38, %s11723_s8  ;;  %11188 = vrot.lane.b32.xlu0 %v12569_v6, %s11724_s27  ;;  %v4580_v58 = vld [vmem:[#allocation2 + $0x58] sm:$0xff] }
 0x2ba   : > { %v4579_v60 = vld [vmem:[#allocation2 + $0x50] sm:$0xff]  ;;  %10754 = vmatpush3.bf16.msra.mxu0 %v10753_v29 }
 0x2bb   : > { %10758 = vmatprep.subr.bf16.mxu0 %v11721_v15  ;;  %v12624_v4 = vpack.c.bf16 %v4580_v58, %v4579_v60  ;;  %v12646_v6 = vpack.i.bf16 %v4580_v58, %v4579_v60 }
 0x2bd   : > { %11213 = vrot.lane.b32.xlu1 %v11212_v62, %s11723_s8  ;;  %11198 = vrot.lane.b32.xlu0 %v11182_v38, %s11724_s27 }
 0x2be   : > { %10141 = vmatmul.mubr.msk.f32.vlgmr.msra.gmra.mrb[8].mxu0 %vm582_vm6, %v12622_v1 }
 0x2bf   : > { %10760 = vmatpush3.bf16.msra.mxu0 %v10759_v0  ;;  %10154 = vmatprep.mubr.msk.f32.mxu0 %vm11722_vm9, %v11720_v7 }
 0x2c0   : > { %10764 = vmatprep.subr.bf16.mxu0 %v11721_v15 }
 0x2c1   : > { %1890 = vrot.lane.b32.xlu1 %v1885_v63, %s11719_s25  ;;  %1888 = vrot.lane.b32.xlu0 %v1884_v5, %s11719_s25 }
 0x2c2   : > { %10155 = vmatmul.mubr.msk.f32.vlgmr.msra.gmra.mrb[10].mxu0 %vm582_vm6, %v12633_v50 }
 0x2c3   : > { %10168 = vmatprep.mubr.msk.f32.mxu0 %vm11722_vm9, %v11720_v7 }
 0x2c5   : > { %11223 = vrot.lane.b32.xlu1 %v11182_v38, %s11723_s8  ;;  %11208 = vrot.lane.b32.xlu0 %v11212_v62, %s11724_s27 }
 0x2c9   : > { %11233 = vrot.lane.b32.xlu1 %v11212_v62, %s11723_s8  ;;  %11218 = vrot.lane.b32.xlu0 %v11182_v38, %s11724_s27 }
 0x2cd   : > { %11243 = vrot.lane.b32.xlu1 %v12646_v6, %s11723_s8  ;;  %11228 = vrot.lane.b32.xlu0 %v11212_v62, %s11724_s27 }
 0x2d1   : > { %11253 = vrot.lane.b32.xlu1 %v11212_v62, %s11723_s8  ;;  %11238 = vrot.lane.b32.xlu0 %v12646_v6, %s11724_s27 }
 0x2d5   : > { %11263 = vrot.lane.b32.xlu1 %v12646_v6, %s11723_s8  ;;  %11248 = vrot.lane.b32.xlu0 %v11212_v62, %s11724_s27 }
 0x2d9   : > { %11258 = vrot.lane.b32.xlu0 %v12646_v6, %s11724_s27 }
 0x302   : > { %v11144_v9 = vpop.permute.xlu1 %11143  ;;  %v11139_v11 = vpop.permute.xlu0 %11138 }
 0x303   : > { %v11146_v12 = vunpack.i.h.bf16 %v11144_v9  ;;  %v11145_v13 = vunpack.i.l.bf16 %v11144_v9  ;;  %v11141_v14 = vunpack.i.h.bf16 %v11139_v11  ;;  %v11140_v16 = vunpack.i.l.bf16 %v11139_v11 }
 0x305   : > { %v10768_v17 = vpack.c.bf16 %v11146_v12, %v11145_v13  ;;  %v10765_v18 = vpack.c.bf16 %v11141_v14, %v11140_v16 }
 0x307   : > { %10766 = vmatpush3.bf16.msra.mxu0 %v10765_v18  ;;  %10769 = vmatpush3.bf16.msra.mxu1 %v10768_v17 }
 0x308   : > { %10770 = vmatprep.subr.bf16.mxu0 %v11721_v15  ;;  %10773 = vmatprep.subr.bf16.mxu1 %v11721_v15 }
 0x30a   : > { %10169 = vmatmul.mubr.msk.f32.vlgmr.msra.gmra.mrb[12].mxu0 %vm582_vm6, %v12660_v19  ;;  %10176 = vmatmul.mubr.msk.f32.vlgmr.msra.gmra.mrb[12].mxu1 %vm582_vm6, %v12663_v21  ;;  %v11154_v22 = vpop.permute.xlu1 %11153 }
 0x30b   : > { %10772 = vmatpush3.bf16.msra.mxu0 %v12571_v8  ;;  %10182 = vmatprep.mubr.msk.f32.mxu0 %vm11722_vm9, %v11720_v7  ;;  %v11156_v24 = vunpack.i.h.bf16 %v11154_v22  ;;  %v11155_v25 = vunpack.i.l.bf16 %v11154_v22 }
 0x30c   : > { %10776 = vmatprep.subr.bf16.mxu0 %v11721_v15  ;;  %10189 = vmatprep.mubr.msk.f32.mxu1 %vm11722_vm9, %v11720_v7 }
 0x30d   : > { %v10777_v26 = vpack.c.bf16 %v11156_v24, %v11155_v25 }
 0x30e   : > { %10183 = vmatmul.mubr.msk.f32.vlgmr.msra.gmra.mrb[14].mxu0 %vm582_vm6, %v12675_v23 }
 0x30f   : > { %10196 = vmatprep.mubr.msk.f32.mxu0 %vm11722_vm9, %v11720_v7  ;;  %10778 = vmatpush3.bf16.msra.mxu0 %v10777_v26 }
 0x310   : > { %10782 = vmatprep.subr.bf16.mxu0 %v11721_v15 }
 0x312   : > { %v1543_v28 = vpop.permute.xlu1 %1542  ;;  %10197 = vmatmul.mubr.msk.f32.vlgmr.msra.gmra.mrb[16].mxu0 %vm582_vm6, %v12685_v27 }
 0x313   : > { %v1547_v30 = vsel %vm674_vm10, 0.0, %v1543_v28  ;;  %v1541_v31 = vpop.permute.xlu0 %1540  ;;  %10784 = vmatpush3.bf16.msra.mxu0 %v12555_v2  ;;  %10210 = vmatprep.mubr.msk.f32.mxu0 %vm11722_vm9, %v11720_v7 }
 0x314   : > { %v1549_v32 = vsel %vm677_vm11, %v1547_v30, 0.0  ;;  %v1546_v33 = vsel %vm674_vm10, 0.0, %v1541_v31  ;;  %10788 = vmatprep.subr.bf16.mxu0 %v11721_v15 }
 0x315   : > { %1552 = vst.msk [vmem:[#allocation2 + $0x68] sm:$0xff] %vm493_vm8, %v1549_v32  ;;  %v1548_v34 = vsel %vm677_vm11, %v1546_v33, 0.0 }
 0x316   : > { %1551 = vst.msk [vmem:[#allocation2 + $0x60] sm:$0xff] %vm493_vm8, %v1548_v34  ;;  %v11164_v35 = vpop.permute.xlu1 %11163  ;;  %10211 = vmatmul.mubr.msk.f32.vlgmr.msra.gmra.mrb[18].mxu0 %vm582_vm6, %v12515_v20 }
 0x317   : > { %v11149_v2 = vpop.permute.xlu0 %11148  ;;  %10790 = vmatpush3.bf16.msra.mxu0 %v12571_v8  ;;  %10224 = vmatprep.mubr.msk.f32.mxu0 %vm11722_vm9, %v11720_v7  ;;  %v11166_v54 = vunpack.i.h.bf16 %v11164_v35  ;;  %v11165_v55 = vunpack.i.l.bf16 %v11164_v35 }
 0x318   : > { %v11151_v36 = vunpack.i.h.bf16 %v11149_v2  ;;  %v11150_v37 = vunpack.i.l.bf16 %v11149_v2  ;;  %10794 = vmatprep.subr.bf16.mxu0 %v11721_v15 }
 0x319   : > { %v10786_v57 = vpack.c.bf16 %v11166_v54, %v11165_v55 }
 0x31a   : > { %v10774_v38 = vpack.c.bf16 %v11151_v36, %v11150_v37  ;;  %v11174_v40 = vpop.permute.xlu1 %11173  ;;  %10225 = vmatmul.mubr.msk.f32.vlgmr.msra.gmra.mrb[20].mxu0 %vm582_vm6, %v12562_v3 }
 0x31b   : > { %v11176_v41 = vunpack.i.h.bf16 %v11174_v40  ;;  %v11175_v42 = vunpack.i.l.bf16 %v11174_v40  ;;  %v11159_v43 = vpop.permute.xlu0 %11158  ;;  %10238 = vmatprep.mubr.msk.f32.mxu0 %vm11722_vm9, %v11720_v7 }
 0x31c   : > { %v11161_v44 = vunpack.i.h.bf16 %v11159_v43  ;;  %v11160_v45 = vunpack.i.l.bf16 %v11159_v43  ;;  %10775 = vmatpush3.bf16.msra.mxu1 %v10774_v38  ;;  %v5310_v47 = vld [vmem:[#allocation2 + $0x68] sm:$0xff] }
 0x31d   : > { %v10795_v48 = vpack.c.bf16 %v11176_v41, %v11175_v42  ;;  %10779 = vmatprep.subr.bf16.mxu1 %v11721_v15  ;;  %v5309_v10 = vld [vmem:[#allocation2 + $0x60] sm:$0xff] }
 0x31e   : > { %v10780_v49 = vpack.c.bf16 %v11161_v44, %v11160_v45  ;;  %v12714_v52 = vpack.i.bf16 %v5310_v47, %v5309_v10  ;;  %v12716_v53 = vpack.c.bf16 %v5310_v47, %v5309_v10 }
 0x31f   : > { %v11184_v29 = vpop.permute.xlu1 %11183  ;;  %v11169_v56 = vpop.permute.xlu0 %11168  ;;  %10190 = vmatmul.mubr.msk.f32.vlgmr.msra.gmra.mrb[14].mxu1 %vm582_vm6, %v12711_v46  ;;  %10796 = vmatpush3.bf16.msra.mxu0 %v10795_v48 }
 0x320   : > { %11273 = vrot.lane.b32.xlu1 %v12714_v52, %s11723_s8  ;;  %11268 = vrot.lane.b32.xlu0 %v12714_v52, %s11724_s27  ;;  %v11171_v58 = vunpack.i.h.bf16 %v11169_v56  ;;  %v11170_v59 = vunpack.i.l.bf16 %v11169_v56  ;;  %v11186_v16 = vunpack.i.h.bf16 %v11184_v29  ;;  %v11185_v17 = vunpack.i.l.bf16 %v11184_v29 }
 0x321   : > { %10781 = vmatpush3.bf16.msra.mxu1 %v10780_v49  ;;  %10203 = vmatprep.mubr.msk.f32.mxu1 %vm11722_vm9, %v11720_v7 }
 0x322   : > { %10785 = vmatprep.subr.bf16.mxu1 %v11721_v15  ;;  %10800 = vmatprep.subr.bf16.mxu0 %v11721_v15  ;;  %v10792_v9 = vpack.c.bf16 %v11171_v58, %v11170_v59  ;;  %v10804_v32 = vpack.c.bf16 %v11186_v16, %v11185_v17  ;;  %v12864_v16 = vld [vmem:[#allocation2 + $0x90] sm:$0xff]  ;;  %v12866_v17 = vld [vmem:[#allocation2 + $0x98] sm:$0xff] }
 0x323   : > { %v1717_v60 = vpop.permute.xlu1 %1716  ;;  %v1715_v61 = vpop.permute.xlu0 %1714  ;;  %10239 = vmatmul.mubr.msk.f32.vlgmr.msra.gmra.mrb[22].mxu0 %vm582_vm6, %v12663_v21 }
 0x324   : > { %v1721_v62 = vsel %vm674_vm10, 0.0, %v1717_v60  ;;  %v1720_v0 = vsel %vm674_vm10, 0.0, %v1715_v61  ;;  %10204 = vmatmul.mubr.msk.f32.vlgmr.msra.gmra.mrb[16].mxu1 %vm582_vm6, %v12622_v1  ;;  %11283 = vrot.lane.b32.xlu1 %v12646_v6, %s11723_s8 }
 0x325   : > { %v1723_v63 = vsel %vm677_vm11, %v1721_v62, 0.0  ;;  %v1722_v5 = vsel %vm677_vm11, %v1720_v0, 0.0  ;;  %11278 = vrot.lane.b32.xlu0 %v12646_v6, %s11724_s27  ;;  %10787 = vmatpush3.bf16.msra.mxu1 %v10786_v57 }
 0x326   : > { %1726 = vst.msk [vmem:[#allocation2 + $0x78] sm:$0xff] %vm493_vm8, %v1723_v63  ;;  %1725 = vst.msk [vmem:[#allocation2 + $0x70] sm:$0xff] %vm493_vm8, %v1722_v5  ;;  %10217 = vmatprep.mubr.msk.f32.mxu1 %vm11722_vm9, %v11720_v7  ;;  %10791 = vmatprep.subr.bf16.mxu1 %v11721_v15 }
 0x327   : > { %v11194_v11 = vpop.permute.xlu1 %11193  ;;  %v11179_v12 = vpop.permute.xlu0 %11178  ;;  %10252 = vmatprep.mubr.msk.f32.mxu0 %vm11722_vm9, %v11720_v7 }
 0x328   : > { %v11181_v13 = vunpack.i.h.bf16 %v11179_v12  ;;  %v11180_v14 = vunpack.i.l.bf16 %v11179_v12  ;;  %10218 = vmatmul.mubr.msk.f32.vlgmr.msra.gmra.mrb[18].mxu1 %vm582_vm6, %v12633_v50  ;;  %11293 = vrot.lane.b32.xlu1 %v12714_v52, %s11723_s8  ;;  %v11196_v2 = vunpack.i.h.bf16 %v11194_v11  ;;  %v11195_v36 = vunpack.i.l.bf16 %v11194_v11 }
 0x329   : > { %11288 = vrot.lane.b32.xlu0 %v12714_v52, %s11724_s27  ;;  %10793 = vmatpush3.bf16.msra.mxu1 %v10792_v9 }
 0x32a   : > { %v10801_v6 = vpack.c.bf16 %v11181_v13, %v11180_v14  ;;  %10231 = vmatprep.mubr.msk.f32.mxu1 %vm11722_vm9, %v11720_v7  ;;  %10797 = vmatprep.subr.bf16.mxu1 %v11721_v15  ;;  %v10813_v42 = vpack.c.bf16 %v11196_v2, %v11195_v36 }
 0x32b   : > { %v12756_v18 = vpop.permute.xlu1 %11203  ;;  %v11189_v22 = vpop.permute.xlu0 %11188 }
 0x32c   : > { %v11191_v24 = vunpack.i.h.bf16 %v11189_v22  ;;  %v11190_v25 = vunpack.i.l.bf16 %v11189_v22  ;;  %10232 = vmatmul.mubr.msk.f32.vlgmr.msra.gmra.mrb[20].mxu1 %vm582_vm6, %v12660_v19  ;;  %10802 = vmatpush3.bf16.msra.mxu0 %v10801_v6  ;;  %v11206_v48 = vunpack.i.h.bf16 %v12756_v18  ;;  %v11205_v10 = vunpack.i.l.bf16 %v12756_v18 }
 0x32d   : > { %10799 = vmatpush3.bf16.msra.mxu1 %v12597_v39  ;;  %10245 = vmatprep.mubr.msk.f32.mxu1 %vm11722_vm9, %v11720_v7  ;;  %v6039_v26 = vld [vmem:[#allocation2 + $0x70] sm:$0xff]  ;;  %v6040_v28 = vld [vmem:[#allocation2 + $0x78] sm:$0xff] }
 0x32e   : > { %v10807_v30 = vpack.c.bf16 %v11191_v24, %v11190_v25  ;;  %10803 = vmatprep.subr.bf16.mxu1 %v11721_v15  ;;  %10806 = vmatprep.subr.bf16.mxu0 %v11721_v15  ;;  %v12765_v31 = vpack.i.bf16 %v6040_v28, %v6039_v26  ;;  %v12771_v35 = vpack.c.bf16 %v6040_v28, %v6039_v26 }
 0x32f   : > { %v12767_v33 = vpop.permute.xlu1 %11213  ;;  %v11199_v34 = vpop.permute.xlu0 %11198  ;;  %10253 = vmatmul.mubr.msk.f32.vlgmr.msra.gmra.mrb[24].mxu0 %vm582_vm6, %v12711_v46  ;;  %v11362_v26 = vpack.i.bf16 %v12866_v17, %v12864_v16 }
 0x330   : > { %10246 = vmatmul.mubr.msk.f32.vlgmr.msra.gmra.mrb[22].mxu1 %vm582_vm6, %v12675_v23  ;;  %11303 = vrot.lane.b32.xlu1 %v12765_v31, %s11723_s8  ;;  %v11201_v45 = vunpack.i.h.bf16 %v11199_v34  ;;  %v11200_v47 = vunpack.i.l.bf16 %v11199_v34  ;;  %v11216_v57 = vunpack.i.h.bf16 %v12767_v33  ;;  %v11215_v58 = vunpack.i.l.bf16 %v12767_v33  ;;  %v4090_v34 = vld [vmem:[%s12196_s18] sm:$0xff]  ;;  %s11577_s18 = sshll.u32 %s11725_s5, 4  ;;  %s11578_s18 = int_to_ptr.vmem [resolvable:$false] %s11577_s18 }
 0x331   : > { %11298 = vrot.lane.b32.xlu0 %v12765_v31, %s11724_s27  ;;  %10805 = vmatpush3.bf16.msra.mxu1 %v10804_v32  ;;  %s11579_s25 = scalar_lea.vmem %s11578_s18, 4096  ;;  %p11580_p3 = scmp.lt.s32.totalorder %s13296_s28, %s11578_s18 }
 0x332   : > { %10808 = vmatpush3.bf16.msra.mxu0 %v10807_v30  ;;  %10259 = vmatprep.mubr.msk.f32.mxu1 %vm11722_vm9, %v11720_v7  ;;  %v10819_v49 = vpack.c.bf16 %v11201_v45, %v11200_v47  ;;  %v10831_v0 = vpack.c.bf16 %v11216_v57, %v11215_v58 }
 0x333   : > { %v1891_v37 = vpop.permute.xlu1 %1890  ;;  %v1889_v38 = vpop.permute.xlu0 %1888  ;;  %10266 = vmatprep.mubr.msk.f32.mxu0 %vm11722_vm9, %v11720_v7  ;;  %10809 = vmatprep.subr.bf16.mxu1 %v11721_v15 }
 0x334   : > { %v1895_v40 = vsel %vm674_vm10, 0.0, %v1891_v37  ;;  %v1894_v41 = vsel %vm674_vm10, 0.0, %v1889_v38  ;;  %10260 = vmatmul.mubr.msk.f32.vlgmr.msra.gmra.mrb[24].mxu1 %vm582_vm6, %v12685_v27  ;;  %10812 = vmatprep.subr.bf16.mxu0 %v11721_v15 }
 0x335   : > { %v1897_v43 = vsel %vm677_vm11, %v1895_v40, 0.0  ;;  %v1896_v44 = vsel %vm677_vm11, %v1894_v41, 0.0  ;;  %11313 = vrot.lane.b32.xlu1 %v12714_v52, %s11723_s8  ;;  %11308 = vrot.lane.b32.xlu0 %v12714_v52, %s11724_s27  ;;  %v10822_v52 = vpack.c.bf16 %v11206_v48, %v11205_v10 }
 0x336   : > { %1900 = vst.msk [vmem:[#allocation2 + $0x88] sm:$0xff] %vm493_vm8, %v1897_v43  ;;  %1899 = vst.msk [vmem:[#allocation2 + $0x80] sm:$0xff] %vm493_vm8, %v1896_v44  ;;  %10267 = vmatmul.mubr.msk.f32.vlgmr.msra.gmra.mrb[26].mxu0 %vm582_vm6, %v12622_v1  ;;  %10811 = vmatpush3.bf16.msra.mxu1 %v12571_v8 }
 0x337   : > { %10814 = vmatpush3.bf16.msra.mxu0 %v10813_v42  ;;  %10273 = vmatprep.mubr.msk.f32.mxu1 %vm11722_vm9, %v11720_v7  ;;  %v11209_v8 = vpop.permute.xlu0 %11208  ;;  %v11224_v9 = vpop.permute.xlu1 %11223 }
 0x338   : > { %10280 = vmatprep.mubr.msk.f32.mxu0 %vm11722_vm9, %v11720_v7  ;;  %10815 = vmatprep.subr.bf16.mxu1 %v11721_v15  ;;  %v11211_v29 = vunpack.i.h.bf16 %v11209_v8  ;;  %v11210_v56 = vunpack.i.l.bf16 %v11209_v8  ;;  %v11226_v12 = vunpack.i.h.bf16 %v11224_v9  ;;  %v11225_v13 = vunpack.i.l.bf16 %v11224_v9 }
 0x339   : > { %10274 = vmatmul.mubr.msk.f32.vlgmr.msra.gmra.mrb[26].mxu1 %vm582_vm6, %v12515_v20  ;;  %10818 = vmatprep.subr.bf16.mxu0 %v11721_v15 }
 0x33a   : > { %11323 = vrot.lane.b32.xlu1 %v12765_v31, %s11723_s8  ;;  %11318 = vrot.lane.b32.xlu0 %v12765_v31, %s11724_s27  ;;  %v10828_v62 = vpack.c.bf16 %v11211_v29, %v11210_v56  ;;  %v10840_v18 = vpack.c.bf16 %v11226_v12, %v11225_v13  ;;  %v2056_v56 = vpop.f32.mrb[8].mxu1 }
 0x33b   : > { %10281 = vmatmul.mubr.msk.f32.vlgmr.msra.gmra.mrb[28].mxu0 %vm582_vm6, %v12633_v50  ;;  %10817 = vmatpush3.bf16.msra.mxu1 %v12597_v39  ;;  %v11219_v61 = vpop.permute.xlu0 %11218  ;;  %v11234_v6 = vpop.permute.xlu1 %11233 }
 0x33c   : > { %10820 = vmatpush3.bf16.msra.mxu0 %v10819_v49  ;;  %10287 = vmatprep.mubr.msk.f32.mxu1 %vm11722_vm9, %v11720_v7  ;;  %v11221_v63 = vunpack.i.h.bf16 %v11219_v61  ;;  %v11220_v5 = vunpack.i.l.bf16 %v11219_v61  ;;  %v11236_v24 = vunpack.i.h.bf16 %v11234_v6  ;;  %v11235_v25 = vunpack.i.l.bf16 %v11234_v6 }
 0x33d   : > { %10294 = vmatprep.mubr.msk.f32.mxu0 %vm11722_vm9, %v11720_v7  ;;  %10821 = vmatprep.subr.bf16.mxu1 %v11721_v15  ;;  %v6769_v54 = vld [vmem:[#allocation2 + $0x80] sm:$0xff]  ;;  %v6770_v55 = vld [vmem:[#allocation2 + $0x88] sm:$0xff] }
 0x33e   : > { %10288 = vmatmul.mubr.msk.f32.vlgmr.msra.gmra.mrb[28].mxu1 %vm582_vm6, %v12562_v3  ;;  %10824 = vmatprep.subr.bf16.mxu0 %v11721_v15  ;;  %v11332_v59 = vpack.i.bf16 %v6770_v55, %v6769_v54  ;;  %v12829_v60 = vpack.c.bf16 %v6770_v55, %v6769_v54  ;;  %v10834_v11 = vpack.c.bf16 %v11221_v63, %v11220_v5  ;;  %v12926_v54 = vld [vmem:[%s12190_s4] sm:$0xff] }
 0x33f   : > { %10295 = vmatmul.mubr.msk.f32.vlgmr.msra.gmra.mrb[30].mxu0 %vm582_vm6, %v12660_v19  ;;  %10823 = vmatpush3.bf16.msra.mxu1 %v10822_v52  ;;  %v11229_v14 = vpop.permute.xlu0 %11228  ;;  %v11244_v33 = vpop.permute.xlu1 %11243 }
 0x340   : > { %10826 = vmatpush3.bf16.msra.mxu0 %v12610_v51  ;;  %10301 = vmatprep.mubr.msk.f32.mxu1 %vm11722_vm9, %v11720_v7  ;;  %v11230_v22 = vunpack.i.l.bf16 %v11229_v14  ;;  %v11246_v36 = vunpack.i.h.bf16 %v11244_v33  ;;  %v11245_v37 = vunpack.i.l.bf16 %v11244_v33 }
 0x341   : > { %10308 = vmatprep.mubr.msk.f32.mxu0 %vm11722_vm9, %v11720_v7  ;;  %10827 = vmatprep.subr.bf16.mxu1 %v11721_v15 }
 0x342   : > { %10302 = vmatmul.mubr.msk.f32.vlgmr.msra.gmra.mrb[30].mxu1 %vm582_vm6, %v12663_v21  ;;  %10830 = vmatprep.subr.bf16.mxu0 %v11721_v15  ;;  %v10858_v43 = vpack.c.bf16 %v11246_v36, %v11245_v37 }
 0x343   : > { %11333 = vrot.lane.b32.xlu1 %v11332_v59, %s11723_s8  ;;  %11328 = vrot.lane.b32.xlu0 %v11332_v59, %s11724_s27  ;;  %v11239_v28 = vpop.permute.xlu0 %11238  ;;  %v11254_v42 = vpop.permute.xlu1 %11253 }
 0x344   : > { %10309 = vmatmul.mubr.msk.f32.vlgmr.msra.gmra.mrb[32].mxu0 %vm582_vm6, %v12675_v23  ;;  %10829 = vmatpush3.bf16.msra.mxu1 %v10828_v62  ;;  %v11240_v32 = vunpack.i.l.bf16 %v11239_v28  ;;  %v11256_v45 = vunpack.i.h.bf16 %v11254_v42  ;;  %v11255_v47 = vunpack.i.l.bf16 %v11254_v42 }
 0x345   : > { %10832 = vmatpush3.bf16.msra.mxu0 %v10831_v0  ;;  %10315 = vmatprep.mubr.msk.f32.mxu1 %vm11722_vm9, %v11720_v7 }
 0x346   : > { %10322 = vmatprep.mubr.msk.f32.mxu0 %vm11722_vm9, %v11720_v7  ;;  %10833 = vmatprep.subr.bf16.mxu1 %v11721_v15  ;;  %v10867_v10 = vpack.c.bf16 %v11256_v45, %v11255_v47 }
 0x347   : > { %10316 = vmatmul.mubr.msk.f32.vlgmr.msra.gmra.mrb[32].mxu1 %vm582_vm6, %v12711_v46  ;;  %10836 = vmatprep.subr.bf16.mxu0 %v11721_v15  ;;  %v11249_v2 = vpop.permute.xlu0 %11248  ;;  %v11264_v49 = vpop.permute.xlu1 %11263 }
 0x348   : > { %11343 = vrot.lane.b32.xlu1 %v12765_v31, %s11723_s8  ;;  %11338 = vrot.lane.b32.xlu0 %v12765_v31, %s11724_s27  ;;  %v11241_v31 = vunpack.i.h.bf16 %v11239_v28  ;;  %v11251_v40 = vunpack.i.h.bf16 %v11249_v2  ;;  %v11250_v41 = vunpack.i.l.bf16 %v11249_v2  ;;  %v11266_v55 = vunpack.i.h.bf16 %v11264_v49 }
 0x349   : > { %10323 = vmatmul.mubr.msk.f32.vlgmr.msra.gmra.mrb[34].mxu0 %vm582_vm6, %v12685_v27  ;;  %10835 = vmatpush3.bf16.msra.mxu1 %v10834_v11  ;;  %v11265_v29 = vunpack.i.l.bf16 %v11264_v49 }
 0x34a   : > { %10838 = vmatpush3.bf16.msra.mxu0 %v12597_v39  ;;  %10329 = vmatprep.mubr.msk.f32.mxu1 %vm11722_vm9, %v11720_v7  ;;  %v11231_v39 = vunpack.i.h.bf16 %v11229_v14  ;;  %v10855_v38 = vpack.c.bf16 %v11241_v31, %v11240_v32  ;;  %v10861_v44 = vpack.c.bf16 %v11251_v40, %v11250_v41 }
 0x34b   : > { %10336 = vmatprep.mubr.msk.f32.mxu0 %vm11722_vm9, %v11720_v7  ;;  %10839 = vmatprep.subr.bf16.mxu1 %v11721_v15  ;;  %v11259_v48 = vpop.permute.xlu0 %11258  ;;  %v10876_v61 = vpack.c.bf16 %v11266_v55, %v11265_v29 }
 0x34c   : > { %10330 = vmatmul.mubr.msk.f32.vlgmr.msra.gmra.mrb[34].mxu1 %vm582_vm6, %v12622_v1  ;;  %10842 = vmatprep.subr.bf16.mxu0 %v11721_v15  ;;  %v10846_v30 = vpack.c.bf16 %v11231_v39, %v11230_v22  ;;  %v11261_v8 = vunpack.i.h.bf16 %v11259_v48  ;;  %v11260_v52 = vunpack.i.l.bf16 %v11259_v48 }
 0x34d   : > { %11353 = vrot.lane.b32.xlu1 %v11332_v59, %s11723_s8  ;;  %11348 = vrot.lane.b32.xlu0 %v11332_v59, %s11724_s27 }
 0x34e   : > { %10337 = vmatmul.mubr.msk.f32.vlgmr.msra.gmra.mrb[36].mxu0 %vm582_vm6, %v12515_v20  ;;  %10841 = vmatpush3.bf16.msra.mxu1 %v10840_v18  ;;  %v10849_v20 = vpack.c.bf16 %v11236_v24, %v11235_v25  ;;  %v10873_v57 = vpack.c.bf16 %v11261_v8, %v11260_v52 }
 0x34f   : > { %10844 = vmatpush3.bf16.msra.mxu0 %v12610_v51  ;;  %10343 = vmatprep.mubr.msk.f32.mxu1 %vm11722_vm9, %v11720_v7 }
 0x350   : > { %10350 = vmatprep.mubr.msk.f32.mxu0 %vm11722_vm9, %v11720_v7  ;;  %10845 = vmatprep.subr.bf16.mxu1 %v11721_v15 }
 0x351   : > { %10344 = vmatmul.mubr.msk.f32.vlgmr.msra.gmra.mrb[36].mxu1 %vm582_vm6, %v12633_v50  ;;  %10848 = vmatprep.subr.bf16.mxu0 %v11721_v15 }
 0x352   : > { %11363 = vrot.lane.b32.xlu1 %v11362_v26, %s11723_s8  ;;  %11358 = vrot.lane.b32.xlu0 %v11362_v26, %s11724_s27 }
 0x353   : > { %10351 = vmatmul.mubr.msk.f32.vlgmr.msra.gmra.mrb[38].mxu0 %vm582_vm6, %v12562_v3  ;;  %10847 = vmatpush3.bf16.msra.mxu1 %v10846_v30 }
 0x354   : > { %10850 = vmatpush3.bf16.msra.mxu0 %v10849_v20  ;;  %10357 = vmatprep.mubr.msk.f32.mxu1 %vm11722_vm9, %v11720_v7 }
 0x355   : > { %10364 = vmatprep.mubr.msk.f32.mxu0 %vm11722_vm9, %v11720_v7  ;;  %10851 = vmatprep.subr.bf16.mxu1 %v11721_v15 }
 0x356   : > { %10358 = vmatmul.mubr.msk.f32.vlgmr.msra.gmra.mrb[38].mxu1 %vm582_vm6, %v12660_v19  ;;  %10854 = vmatprep.subr.bf16.mxu0 %v11721_v15 }
 0x357   : > { %4093 = vperm.xlu1 %11126, %v4090_v34   ;;  %3363 = vperm.xlu0 %11125, %v4090_v34  }
 0x358   : > { %10365 = vmatmul.mubr.msk.f32.vlgmr.msra.gmra.mrb[40].mxu0 %vm582_vm6, %v12663_v21  ;;  %10853 = vmatpush3.bf16.msra.mxu1 %v12624_v4 }
 0x359   : > { %10856 = vmatpush3.bf16.msra.mxu0 %v10855_v38  ;;  %10371 = vmatprep.mubr.msk.f32.mxu1 %vm11722_vm9, %v11720_v7 }
 0x35a   : > { %10378 = vmatprep.mubr.msk.f32.mxu0 %vm11722_vm9, %v11720_v7  ;;  %10857 = vmatprep.subr.bf16.mxu1 %v11721_v15 }
 0x35b   : > { %10372 = vmatmul.mubr.msk.f32.vlgmr.msra.gmra.mrb[40].mxu1 %vm582_vm6, %v12675_v23  ;;  %10860 = vmatprep.subr.bf16.mxu0 %v11721_v15 }
 0x35c   : > { %4823 = vperm.xlu1 %11126, %v4090_v34   ;;  %2633 = vperm.xlu0 %11125, %v4090_v34  }
 0x35d   : > { %10379 = vmatmul.mubr.msk.f32.vlgmr.msra.gmra.mrb[42].mxu0 %vm582_vm6, %v12711_v46  ;;  %10859 = vmatpush3.bf16.msra.mxu1 %v10858_v43 }
 0x35e   : > { %10862 = vmatpush3.bf16.msra.mxu0 %v10861_v44  ;;  %10385 = vmatprep.mubr.msk.f32.mxu1 %vm11722_vm9, %v11720_v7 }
 0x35f   : > { %10392 = vmatprep.mubr.msk.f32.mxu0 %vm11722_vm9, %v11720_v7  ;;  %10863 = vmatprep.subr.bf16.mxu1 %v11721_v15 }
 0x360   : > { %10386 = vmatmul.mubr.msk.f32.vlgmr.msra.gmra.mrb[42].mxu1 %vm582_vm6, %v12685_v27  ;;  %10866 = vmatprep.subr.bf16.mxu0 %v11721_v15 }
 0x361   : > { %6283 = vperm.xlu1 %11126, %v4090_v34   ;;  %5553 = vperm.xlu0 %11125, %v4090_v34  }
 0x362   : > { %10393 = vmatmul.mubr.msk.f32.vlgmr.msra.gmra.mrb[44].mxu0 %vm582_vm6, %v12622_v1  ;;  %10865 = vmatpush3.bf16.msra.mxu1 %v12610_v51  ;;  %v10149_v51 = vpop.f32.mrb[9].mxu1 }
 0x363   : > { %10868 = vmatpush3.bf16.msra.mxu0 %v10867_v10  ;;  %10399 = vmatprep.mubr.msk.f32.mxu1 %vm11722_vm9, %v11720_v7 }
 0x364   : > { %10406 = vmatprep.mubr.msk.f32.mxu0 %vm11722_vm9, %v11720_v7  ;;  %10869 = vmatprep.subr.bf16.mxu1 %v11721_v15 }
 0x365   : > { %10872 = vmatprep.subr.bf16.mxu0 %v11721_v15  ;;  %7743 = vperm.xlu1 %11126, %v4090_v34  }
 0x366   : > { %7013 = vperm.xlu0 %11125, %v4090_v34   ;;  %10400 = vmatmul.mubr.msk.f32.vlgmr.msra.gmra.mrb[44].mxu1 %vm582_vm6, %v12926_v54 }
 0x367   : > { %10407 = vmatmul.mubr.msk.f32.vlgmr.msra.gmra.mrb[46].mxu0 %vm582_vm6, %v12633_v50  ;;  %10871 = vmatpush3.bf16.msra.mxu1 %v12624_v4  ;;  %v2215_v58 = vpop.f32.mrb[10].mxu1 }
 0x368   : > { %10874 = vmatpush3.bf16.msra.mxu0 %v10873_v57  ;;  %10413 = vmatprep.mubr.msk.f32.mxu1 %vm11722_vm9, %v11720_v7  ;;  %v10163_v59 = vpop.f32.mrb[11].mxu1 }
 0x369   : > { %10420 = vmatprep.mubr.msk.f32.mxu0 %vm11722_vm9, %v11720_v7  ;;  %10875 = vmatprep.subr.bf16.mxu1 %v11721_v15 }
 0x36a   : > { %10878 = vmatprep.subr.bf16.mxu0 %v11721_v15  ;;  %10414 = vmatmul.mubr.msk.f32.vlgmr.msra.gmra.mrb[46].mxu1 %vm582_vm6, %v12562_v3 }
 0x36b   : > { %10421 = vmatmul.mubr.msk.f32.vlgmr.msra.gmra.mrb[48].mxu0 %vm582_vm6, %v12660_v19  ;;  %10877 = vmatpush3.bf16.msra.mxu1 %v10876_v61 }
 0x36c   : > { %10880 = vmatpush3.bf16.msra.mxu0 %v12716_v53  ;;  %10427 = vmatprep.mubr.msk.f32.mxu1 %vm11722_vm9, %v11720_v7 }
 0x36d   : > { %10434 = vmatprep.mubr.msk.f32.mxu0 %vm11722_vm9, %v11720_v7  ;;  %10881 = vmatprep.subr.bf16.mxu1 %v11721_v15 }
 0x36e   : > { %10428 = vmatmul.mubr.msk.f32.vlgmr.msra.gmra.mrb[48].mxu1 %vm582_vm6, %v12663_v21  ;;  %10884 = vmatprep.subr.bf16.mxu0 %v11721_v15 }
 0x36f   : > { %10435 = vmatmul.mubr.msk.f32.vlgmr.msra.gmra.mrb[50].mxu0 %vm582_vm6, %v12675_v23  ;;  %10441 = vmatprep.mubr.msk.f32.mxu1 %vm11722_vm9, %v11720_v7 }
 0x370   : > { %10448 = vmatprep.mubr.msk.f32.mxu0 %vm11722_vm9, %v11720_v7 }
 0x391   : > { %v1983_v62 = vpop.f32.mrb[8].mxu0 }
 0x392   : > { %v11274_v0 = vpop.permute.xlu1 %11273  ;;  %v11269_v63 = vpop.permute.xlu0 %11268  ;;  %v2057_v5 = vadd.f32 %v2056_v56, %v1983_v62  ;;  %v13014_v56 = vld [vmem:[%s12190_s4 + $0x8] sm:$0xff] }
 0x393   : > { %v11276_v9 = vunpack.i.h.bf16 %v11274_v0  ;;  %v11275_v11 = vunpack.i.l.bf16 %v11274_v0  ;;  %v11271_v12 = vunpack.i.h.bf16 %v11269_v63  ;;  %v11270_v13 = vunpack.i.l.bf16 %v11269_v63  ;;  %v10142_v14 = vpop.f32.mrb[9].mxu0 }
 0x395   : > { %v10885_v6 = vpack.c.bf16 %v11276_v9, %v11275_v11  ;;  %v10882_v18 = vpack.c.bf16 %v11271_v12, %v11270_v13  ;;  %v2137_v39 = vpop.f32.mrb[10].mxu0 }
 0x396   : > { %v11284_v22 = vpop.permute.xlu1 %11283  ;;  %v2141_v24 = vadd.f32 %v2137_v39, %v2057_v5  ;;  %v10156_v25 = vpop.f32.mrb[11].mxu0 }
 0x397   : > { %v11279_v26 = vpop.permute.xlu0 %11278  ;;  %10883 = vmatpush3.bf16.msra.mxu1 %v10882_v18  ;;  %10886 = vmatpush3.bf16.msra.mxu0 %v10885_v6  ;;  %v11286_v31 = vunpack.i.h.bf16 %v11284_v22  ;;  %v11285_v32 = vunpack.i.l.bf16 %v11284_v22  ;;  %v13059_v6 = vld [vmem:[%s12190_s4 + $0x28] sm:$0xff]  ;;  %v13062_v18 = vld [vmem:[%s12190_s4 + $0x30] sm:$0xff] }
 0x398   : > { %v11281_v28 = vunpack.i.h.bf16 %v11279_v26  ;;  %v11280_v30 = vunpack.i.l.bf16 %v11279_v26  ;;  %10887 = vmatprep.subr.bf16.mxu1 %v11721_v15  ;;  %10890 = vmatprep.subr.bf16.mxu0 %v11721_v15  ;;  %v12964_v20 = vadd.f32 %v2215_v58, %v2141_v24 }
 0x399   : > { %v10894_v38 = vpack.c.bf16 %v11286_v31, %v11285_v32 }
 0x39a   : > { %v10888_v33 = vpack.c.bf16 %v11281_v28, %v11280_v30  ;;  %v11294_v34 = vpop.permute.xlu1 %11293  ;;  %10442 = vmatmul.mubr.msk.f32.vlgmr.msra.gmra.mrb[50].mxu1 %vm582_vm6, %v12711_v46  ;;  %10449 = vmatmul.mubr.msk.f32.vlgmr.msra.gmra.mrb[52].mxu0 %vm582_vm6, %v12685_v27  ;;  %v9711_v30 = vld [vmem:[%s12190_s4 + $0x40] sm:$0xff] }
 0x39b   : > { %v11289_v2 = vpop.permute.xlu0 %11288  ;;  %10892 = vmatpush3.bf16.msra.mxu0 %v12624_v4  ;;  %10455 = vmatprep.mubr.msk.f32.mxu1 %vm11722_vm9, %v11720_v7  ;;  %v11296_v36 = vunpack.i.h.bf16 %v11294_v34  ;;  %v11295_v37 = vunpack.i.l.bf16 %v11294_v34 }
 0x39c   : > { %10889 = vmatpush3.bf16.msra.mxu1 %v10888_v33  ;;  %10462 = vmatprep.mubr.msk.f32.mxu0 %vm11722_vm9, %v11720_v7  ;;  %v11291_v40 = vunpack.i.h.bf16 %v11289_v2  ;;  %v11290_v41 = vunpack.i.l.bf16 %v11289_v2 }
 0x39d   : > { %10893 = vmatprep.subr.bf16.mxu1 %v11721_v15  ;;  %10896 = vmatprep.subr.bf16.mxu0 %v11721_v15  ;;  %v10903_v4 = vpack.c.bf16 %v11296_v36, %v11295_v37 }
 0x39e   : > { %10463 = vmatmul.mubr.msk.f32.vlgmr.msra.gmra.mrb[54].mxu0 %vm582_vm6, %v12926_v54  ;;  %v10900_v42 = vpack.c.bf16 %v11291_v40, %v11290_v41 }
 0x39f   : > { %10456 = vmatmul.mubr.msk.f32.vlgmr.msra.gmra.mrb[52].mxu1 %vm582_vm6, %v12622_v1  ;;  %10898 = vmatpush3.bf16.msra.mxu0 %v12716_v53 }
 0x3a0   : > { %10895 = vmatpush3.bf16.msra.mxu1 %v10894_v38  ;;  %10469 = vmatprep.mubr.msk.f32.mxu1 %vm11722_vm9, %v11720_v7 }
 0x3a1   : > { %10476 = vmatprep.mubr.msk.f32.mxu0 %vm11722_vm9, %v11720_v7  ;;  %10899 = vmatprep.subr.bf16.mxu1 %v11721_v15 }
 0x3a2   : > { %v11304_v43 = vpop.permute.xlu1 %11303  ;;  %10477 = vmatmul.mubr.msk.f32.vlgmr.msra.gmra.mrb[56].mxu0 %vm582_vm6, %v12562_v3  ;;  %10902 = vmatprep.subr.bf16.mxu0 %v11721_v15 }
 0x3a3   : > { %v11299_v1 = vpop.permute.xlu0 %11298  ;;  %10470 = vmatmul.mubr.msk.f32.vlgmr.msra.gmra.mrb[54].mxu1 %vm582_vm6, %v12633_v50  ;;  %10904 = vmatpush3.bf16.msra.mxu0 %v10903_v4  ;;  %v11306_v47 = vunpack.i.h.bf16 %v11304_v43  ;;  %v11305_v3 = vunpack.i.l.bf16 %v11304_v43 }
 0x3a4   : > { %v11301_v44 = vunpack.i.h.bf16 %v11299_v1  ;;  %v11300_v45 = vunpack.i.l.bf16 %v11299_v1  ;;  %10901 = vmatpush3.bf16.msra.mxu1 %v10900_v42  ;;  %10483 = vmatprep.mubr.msk.f32.mxu1 %vm11722_vm9, %v11720_v7 }
 0x3a5   : > { %10490 = vmatprep.mubr.msk.f32.mxu0 %vm11722_vm9, %v11720_v7  ;;  %10905 = vmatprep.subr.bf16.mxu1 %v11721_v15 }
 0x3a6   : > { %v10909_v48 = vpack.c.bf16 %v11301_v44, %v11300_v45  ;;  %10491 = vmatmul.mubr.msk.f32.vlgmr.msra.gmra.mrb[58].mxu0 %vm582_vm6, %v12663_v21  ;;  %10908 = vmatprep.subr.bf16.mxu0 %v11721_v15  ;;  %v10912_v21 = vpack.c.bf16 %v11306_v47, %v11305_v3  ;;  %v10960_v45 = vpack.c.bf16 %v12866_v17, %v12864_v16  ;;  %v9726_v16 = vld [vmem:[%s12190_s4 + $0x38] sm:$0xff] }
 0x3a7   : > { %v11314_v50 = vpop.permute.xlu1 %11313  ;;  %v11309_v10 = vpop.permute.xlu0 %11308  ;;  %10484 = vmatmul.mubr.msk.f32.vlgmr.msra.gmra.mrb[56].mxu1 %vm582_vm6, %v12660_v19  ;;  %10504 = vmatprep.mubr.msk.f32.mxu0 %vm11722_vm9, %v11720_v7 }
 0x3a8   : > { %v11311_v49 = vunpack.i.h.bf16 %v11309_v10  ;;  %v11310_v8 = vunpack.i.l.bf16 %v11309_v10  ;;  %10907 = vmatpush3.bf16.msra.mxu1 %v12771_v35  ;;  %10910 = vmatpush3.bf16.msra.mxu0 %v10909_v48  ;;  %v11316_v52 = vunpack.i.h.bf16 %v11314_v50  ;;  %v11315_v55 = vunpack.i.l.bf16 %v11314_v50 }
 0x3a9   : > { %10497 = vmatprep.mubr.msk.f32.mxu1 %vm11722_vm9, %v11720_v7  ;;  %10911 = vmatprep.subr.bf16.mxu1 %v11721_v15 }
 0x3aa   : > { %v10915_v29 = vpack.c.bf16 %v11311_v49, %v11310_v8  ;;  %10914 = vmatprep.subr.bf16.mxu0 %v11721_v15  ;;  %v10921_v57 = vpack.c.bf16 %v11316_v52, %v11315_v55 }
 0x3ab   : > { %10498 = vmatmul.mubr.msk.f32.vlgmr.msra.gmra.mrb[58].mxu1 %vm582_vm6, %v12675_v23  ;;  %10505 = vmatmul.mubr.msk.f32.vlgmr.msra.gmra.mrb[60].mxu0 %vm582_vm6, %v12711_v46  ;;  %v13028_v23 = vld [vmem:[%s12190_s4 + $0x10] sm:$0xff] }
 0x3ac   : > { %v11319_v19 = vpop.permute.xlu0 %11318  ;;  %10913 = vmatpush3.bf16.msra.mxu1 %v10912_v21  ;;  %10916 = vmatpush3.bf16.msra.mxu0 %v10915_v29  ;;  %v11324_v51 = vpop.permute.xlu1 %11323 }
 0x3ad   : > { %10511 = vmatprep.mubr.msk.f32.mxu1 %vm11722_vm9, %v11720_v7  ;;  %10518 = vmatprep.mubr.msk.f32.mxu0 %vm11722_vm9, %v11720_v7  ;;  %v11321_v58 = vunpack.i.h.bf16 %v11319_v19  ;;  %v11320_v59 = vunpack.i.l.bf16 %v11319_v19  ;;  %v11326_v61 = vunpack.i.h.bf16 %v11324_v51  ;;  %v11325_v62 = vunpack.i.l.bf16 %v11324_v51 }
 0x3ae   : > { %10917 = vmatprep.subr.bf16.mxu1 %v11721_v15  ;;  %10920 = vmatprep.subr.bf16.mxu0 %v11721_v15 }
 0x3af   : > { %10512 = vmatmul.mubr.msk.f32.vlgmr.msra.gmra.mrb[60].mxu1 %vm582_vm6, %v12685_v27  ;;  %10519 = vmatmul.mubr.msk.f32.vlgmr.msra.gmra.mrb[62].mxu0 %vm582_vm6, %v13014_v56  ;;  %v10927_v0 = vpack.c.bf16 %v11321_v58, %v11320_v59  ;;  %v13042_v27 = vld [vmem:[%s12190_s4 + $0x18] sm:$0xff]  ;;  %v10930_v63 = vpack.c.bf16 %v11326_v61, %v11325_v62 }
 0x3b0   : > { %10919 = vmatpush3.bf16.msra.mxu1 %v12716_v53  ;;  %10922 = vmatpush3.bf16.msra.mxu0 %v10921_v57  ;;  %v13045_v53 = vld [vmem:[%s12190_s4 + $0x20] sm:$0xff]  ;;  %s11573_s4 = scalar_lea.vmem %s13296_s28, 2048 }
 0x3b1   : > { %10525 = vmatprep.mubr.msk.f32.mxu1 %vm11722_vm9, %v11720_v7  ;;  %10532 = vmatprep.mubr.msk.f32.mxu0 %vm11722_vm9, %v11720_v7  ;;  %p11574_p2 = scmp.ne.s32.totalorder %s13296_s28, %s11573_s4  ;;  %p11581_p8 = scmp.lt.s32.totalorder %s11579_s25, %s11573_s4 }
 0x3b2   : > { %10923 = vmatprep.subr.bf16.mxu1 %v11721_v15  ;;  %10926 = vmatprep.subr.bf16.mxu0 %v11721_v15 }
 0x3b3   : > { %10526 = vmatmul.mubr.msk.f32.vlgmr.msra.gmra.mrb[62].mxu1 %vm582_vm6, %v12926_v54  ;;  %10533 = vmatmul.mubr.msk.f32.vlgmr.msra.gmra.mrb[64].mxu0 %vm582_vm6, %v13028_v23  ;;  %p11575_p9 = pnand %p11574_p2, %p13490_p12  ;;  %p11582_p0 = por %p11581_p8, %p11580_p3 }
 0x3b4   : > { %10925 = vmatpush3.bf16.msra.mxu1 %v12771_v35  ;;  %10928 = vmatpush3.bf16.msra.mxu0 %v10927_v0 }
 0x3b5   : > { %v11334_v5 = vpop.permute.xlu1 %11333  ;;  %v11329_v9 = vpop.permute.xlu0 %11328  ;;  %10539 = vmatprep.mubr.msk.f32.mxu1 %vm11722_vm9, %v11720_v7  ;;  %10546 = vmatprep.mubr.msk.f32.mxu0 %vm11722_vm9, %v11720_v7  ;;  %p11576_p11 = pneg %p11575_p9 }
 0x3b6   : > { %v11336_v11 = vunpack.i.h.bf16 %v11334_v5  ;;  %v11335_v12 = vunpack.i.l.bf16 %v11334_v5  ;;  %v11331_v13 = vunpack.i.h.bf16 %v11329_v9  ;;  %v11330_v14 = vunpack.i.l.bf16 %v11329_v9  ;;  %10929 = vmatprep.subr.bf16.mxu1 %v11721_v15  ;;  %10932 = vmatprep.subr.bf16.mxu0 %v11721_v15 }
 0x3b7   : > { %10540 = vmatmul.mubr.msk.f32.vlgmr.msra.gmra.mrb[64].mxu1 %vm582_vm6, %v13042_v27  ;;  %10547 = vmatmul.mubr.msk.f32.vlgmr.msra.gmra.mrb[66].mxu0 %vm582_vm6, %v13045_v53  ;;  %p11583_p4 = pnand %p11582_p0, %p11576_p11 }
 0x3b8   : > { %10931 = vmatpush3.bf16.msra.mxu1 %v10930_v63  ;;  %10934 = vmatpush3.bf16.msra.mxu0 %v12829_v60  ;;  %v10939_v39 = vpack.c.bf16 %v11336_v11, %v11335_v12  ;;  %v10936_v22 = vpack.c.bf16 %v11331_v13, %v11330_v14 }
 0x3b9   : > { %10553 = vmatprep.mubr.msk.f32.mxu1 %vm11722_vm9, %v11720_v7  ;;  %10560 = vmatprep.mubr.msk.f32.mxu0 %vm11722_vm9, %v11720_v7 }
 0x3ba   : > { %v11344_v24 = vpop.permute.xlu1 %11343  ;;  %v11339_v25 = vpop.permute.xlu0 %11338  ;;  %10935 = vmatprep.subr.bf16.mxu1 %v11721_v15  ;;  %10938 = vmatprep.subr.bf16.mxu0 %v11721_v15 }
 0x3bb   : > { %v11341_v26 = vunpack.i.h.bf16 %v11339_v25  ;;  %v11340_v28 = vunpack.i.l.bf16 %v11339_v25  ;;  %10554 = vmatmul.mubr.msk.f32.vlgmr.msra.gmra.mrb[66].mxu1 %vm582_vm6, %v13059_v6  ;;  %10561 = vmatmul.mubr.msk.f32.vlgmr.msra.gmra.mrb[68].mxu0 %vm582_vm6, %v13062_v18  ;;  %v11346_v31 = vunpack.i.h.bf16 %v11344_v24  ;;  %v11345_v32 = vunpack.i.l.bf16 %v11344_v24 }
 0x3bc   : > { %10937 = vmatpush3.bf16.msra.mxu1 %v10936_v22  ;;  %10940 = vmatpush3.bf16.msra.mxu0 %v10939_v39 }
 0x3bd   : > { %10567 = vmatprep.mubr.msk.f32.mxu1 %vm11722_vm9, %v11720_v7  ;;  %10574 = vmatprep.mubr.msk.f32.mxu0 %vm11722_vm9, %v11720_v7  ;;  %v10942_v33 = vpack.c.bf16 %v11341_v26, %v11340_v28  ;;  %v10948_v36 = vpack.c.bf16 %v11346_v31, %v11345_v32 }
 0x3be   : > { %10941 = vmatprep.subr.bf16.mxu1 %v11721_v15  ;;  %10944 = vmatprep.subr.bf16.mxu0 %v11721_v15 }
 0x3bf   : > { %v11354_v34 = vpop.permute.xlu1 %11353  ;;  %v11349_v2 = vpop.permute.xlu0 %11348  ;;  %10568 = vmatmul.mubr.msk.f32.vlgmr.msra.gmra.mrb[68].mxu1 %vm582_vm6, %v12711_v46  ;;  %10575 = vmatmul.mubr.msk.f32.vlgmr.msra.gmra.mrb[70].mxu0 %vm582_vm6, %v9711_v30 }
 0x3c0   : > { %10943 = vmatpush3.bf16.msra.mxu1 %v10942_v33  ;;  %10946 = vmatpush3.bf16.msra.mxu0 %v12771_v35  ;;  %v11356_v37 = vunpack.i.h.bf16 %v11354_v34  ;;  %v11355_v38 = vunpack.i.l.bf16 %v11354_v34  ;;  %v11351_v40 = vunpack.i.h.bf16 %v11349_v2  ;;  %v11350_v41 = vunpack.i.l.bf16 %v11349_v2 }
 0x3c1   : > { %10581 = vmatprep.mubr.msk.f32.mxu1 %vm11722_vm9, %v11720_v7  ;;  %10588 = vmatprep.mubr.msk.f32.mxu0 %vm11722_vm9, %v11720_v7 }
 0x3c2   : > { %10947 = vmatprep.subr.bf16.mxu1 %v11721_v15  ;;  %10950 = vmatprep.subr.bf16.mxu0 %v11721_v15  ;;  %v10957_v43 = vpack.c.bf16 %v11356_v37, %v11355_v38  ;;  %v10954_v1 = vpack.c.bf16 %v11351_v40, %v11350_v41 }
 0x3c3   : > { %10582 = vmatmul.mubr.msk.f32.vlgmr.msra.gmra.mrb[70].mxu1 %vm582_vm6, %v13014_v56  ;;  %10589 = vmatmul.mubr.msk.f32.vlgmr.msra.gmra.mrb[72].mxu0 %vm582_vm6, %v12926_v54 }
 0x3c4   : > { %10949 = vmatpush3.bf16.msra.mxu1 %v10948_v36  ;;  %10952 = vmatpush3.bf16.msra.mxu0 %v12829_v60  ;;  %v11359_v46 = vpop.permute.xlu0 %11358  ;;  %v11364_v42 = vpop.permute.xlu1 %11363 }
 0x3c5   : > { %10595 = vmatprep.mubr.msk.f32.mxu1 %vm11722_vm9, %v11720_v7  ;;  %10602 = vmatprep.mubr.msk.f32.mxu0 %vm11722_vm9, %v11720_v7  ;;  %v11361_v35 = vunpack.i.h.bf16 %v11359_v46  ;;  %v11360_v4 = vunpack.i.l.bf16 %v11359_v46  ;;  %v11366_v54 = vunpack.i.h.bf16 %v11364_v42  ;;  %v11365_v44 = vunpack.i.l.bf16 %v11364_v42 }
 0x3c6   : > { %10953 = vmatprep.subr.bf16.mxu1 %v11721_v15  ;;  %10956 = vmatprep.subr.bf16.mxu0 %v11721_v15 }
 0x3c7   : > { %10596 = vmatmul.mubr.msk.f32.vlgmr.msra.gmra.mrb[72].mxu1 %vm582_vm6, %v13028_v23  ;;  %10603 = vmatmul.mubr.msk.f32.vlgmr.msra.gmra.mrb[74].mxu0 %vm582_vm6, %v13042_v27  ;;  %v10963_v60 = vpack.c.bf16 %v11361_v35, %v11360_v4  ;;  %v10966_v47 = vpack.c.bf16 %v11366_v54, %v11365_v44 }
 0x3c8   : > { %10955 = vmatpush3.bf16.msra.mxu1 %v10954_v1  ;;  %10958 = vmatpush3.bf16.msra.mxu0 %v10957_v43 }
 0x3c9   : > { %10609 = vmatprep.mubr.msk.f32.mxu1 %vm11722_vm9, %v11720_v7  ;;  %10616 = vmatprep.mubr.msk.f32.mxu0 %vm11722_vm9, %v11720_v7 }
 0x3ca   : > { %10959 = vmatprep.subr.bf16.mxu1 %v11721_v15  ;;  %10962 = vmatprep.subr.bf16.mxu0 %v11721_v15 }
 0x3cb   : > { %10610 = vmatmul.mubr.msk.f32.vlgmr.msra.gmra.mrb[74].mxu1 %vm582_vm6, %v13045_v53  ;;  %10617 = vmatmul.mubr.msk.f32.vlgmr.msra.gmra.mrb[76].mxu0 %vm582_vm6, %v13059_v6 }
 0x3cc   : > { %10961 = vmatpush3.bf16.msra.mxu1 %v10960_v45  ;;  %10964 = vmatpush3.bf16.msra.mxu0 %v10963_v60 }
 0x3cd   : > { %10623 = vmatprep.mubr.msk.f32.mxu1 %vm11722_vm9, %v11720_v7  ;;  %10630 = vmatprep.mubr.msk.f32.mxu0 %vm11722_vm9, %v11720_v7 }
 0x3ce   : > { %10965 = vmatprep.subr.bf16.mxu1 %v11721_v15 }
 0x3cf   : > { %10624 = vmatmul.mubr.msk.f32.vlgmr.msra.gmra.mrb[76].mxu1 %vm582_vm6, %v13062_v18  ;;  %10631 = vmatmul.mubr.msk.f32.vlgmr.msra.gmra.mrb[78].mxu0 %vm582_vm6, %v9726_v16 }
 0x3d0   : > { %10967 = vmatpush3.bf16.msra.mxu1 %v10966_v47  ;;  %10637 = vmatprep.mubr.msk.f32.mxu1 %vm11722_vm9, %v11720_v7 }
 0x3d3   : > { %10638 = vmatmul.mubr.msk.f32.vlgmr.msra.gmra.mrb[78].mxu1 %vm582_vm6, %v9711_v30 }
 0x3d6   : > { %v3364_v51 = vpop.permute.xlu0 %3363 }
 0x3db   : > { %v2634_v61 = vpop.permute.xlu0 %2633 }
 0x3dd   : > { %v2299_v17 = vpop.f32.mrb[12].mxu0  ;;  %v2381_v3 = vpop.f32.mrb[12].mxu1 }
 0x3de   : > { %v2303_v48 = vadd.f32 %v2299_v17, %v12964_v20  ;;  %v10170_v50 = vpop.f32.mrb[13].mxu0  ;;  %v10177_v10 = vpop.f32.mrb[13].mxu1 }
 0x3e0   : > { %v2385_v49 = vadd.f32 %v2381_v3, %v2303_v48 }
 0x3e1   : > { %v2459_v8 = vpop.f32.mrb[14].mxu0 }
 0x3e2   : > { %v2463_v15 = vadd.f32 %v2459_v8, %v2385_v49  ;;  %v10184_v21 = vpop.f32.mrb[15].mxu0 }
 0x3e5   : > { %v2625_v52 = vpop.f32.mrb[16].mxu0 }
 0x3e6   : > { %v10198_v55 = vpop.f32.mrb[17].mxu0 }
 0x3e9   : > { %v2793_v29 = vpop.f32.mrb[18].mxu0 }
 0x3ea   : > { %v10212_v19 = vpop.f32.mrb[19].mxu0 }
 0x3ed   : > { %v2950_v56 = vpop.f32.mrb[20].mxu0 }
 0x3ee   : > { %v10226_v57 = vpop.f32.mrb[21].mxu0 }
 0x3f2   : > { %v2543_v7 = vpop.f32.mrb[14].mxu1 }
 0x3f3   : > { %v2547_v58 = vadd.f32 %v2543_v7, %v2463_v15  ;;  %v10191_v59 = vpop.f32.mrb[15].mxu1  ;;  %v4094_v15 = vpop.permute.xlu1 %4093 }
 0x3f5   : > { %v2629_v23 = vadd.f32 %v2625_v52, %v2547_v58 }
 0x3f6   : > { %v3114_v20 = vpop.f32.mrb[22].mxu0 }
 0x3f7   : > { %v2636_v62 = vadd.f32 %v2634_v61, %v2629_v23  ;;  %v2720_v0 = vpop.f32.mrb[16].mxu1  ;;  %v10240_v27 = vpop.f32.mrb[23].mxu0 }
 0x3f8   : > { %v2794_v53 = vadd.f32 %v2793_v29, %v2720_v0  ;;  %v10205_v63 = vpop.f32.mrb[17].mxu1 }
 0x3f9   : > { %2638 = vst.msk [vmem:[#allocation3] sm:$0xff] %vm2637_vm12, %v2636_v62 }
 0x3fb   : > { %v2873_v5 = vpop.f32.mrb[18].mxu1 }
 0x3fc   : > { %v2877_v9 = vadd.f32 %v2873_v5, %v2794_v53  ;;  %v10219_v11 = vpop.f32.mrb[19].mxu1 }
 0x3fe   : > { %v2954_v12 = vadd.f32 %v2950_v56, %v2877_v9 }
 0x3ff   : > { %v3033_v13 = vpop.f32.mrb[20].mxu1 }
 0x400   : > { %v3037_v14 = vadd.f32 %v3033_v13, %v2954_v12  ;;  %v10233_v6 = vpop.f32.mrb[21].mxu1 }
 0x402   : > { %v3118_v18 = vadd.f32 %v3114_v20, %v3037_v14  ;;  %v3274_v39 = vpop.f32.mrb[24].mxu0 }
 0x403   : > { %v3191_v22 = vpop.f32.mrb[22].mxu1  ;;  %v10254_v24 = vpop.f32.mrb[25].mxu0 }
 0x404   : > { %v3195_v25 = vadd.f32 %v3191_v22, %v3118_v18  ;;  %v10247_v26 = vpop.f32.mrb[23].mxu1 }
 0x405   : > { %v13134_v26 = vld [vmem:[#allocation13] sm:$0xff] }
 0x406   : > { %v3278_v28 = vadd.f32 %v3274_v39, %v3195_v25  ;;  %v4824_v39 = vpop.permute.xlu1 %4823  ;;  %10642 = vmatprep.mubr.msk.f32.mxu0 %vm2637_vm12, %v13134_v26 }
 0x407   : > { %v3355_v30 = vpop.f32.mrb[24].mxu1 }
 0x408   : > { %v3359_v31 = vadd.f32 %v3355_v30, %v3278_v28  ;;  %v10261_v32 = vpop.f32.mrb[25].mxu1 }
 0x409   : > { %v3450_v33 = vpop.f32.mrb[26].mxu0 }
 0x40a   : > { %v3366_v34 = vadd.f32 %v3364_v51, %v3359_v31  ;;  %v10268_v2 = vpop.f32.mrb[27].mxu0 }
 0x40c   : > { %3368 = vst.msk [vmem:[#allocation3 + $0x8] sm:$0xff] %vm2637_vm12, %v3366_v34  ;;  %v3523_v36 = vpop.f32.mrb[26].mxu1 }
 0x40d   : > { %v3524_v37 = vadd.f32 %v3523_v36, %v3450_v33  ;;  %v10275_v38 = vpop.f32.mrb[27].mxu1 }
 0x40e   : > { %v3603_v40 = vpop.f32.mrb[28].mxu0 }
 0x40f   : > { %v3607_v41 = vadd.f32 %v3603_v40, %v3524_v37  ;;  %v10282_v46 = vpop.f32.mrb[29].mxu0 }
 0x411   : > { %v3680_v35 = vpop.f32.mrb[28].mxu1 }
 0x412   : > { %v3684_v4 = vadd.f32 %v3680_v35, %v3607_v41  ;;  %v3763_v42 = vpop.f32.mrb[30].mxu0  ;;  %v10289_v43 = vpop.f32.mrb[29].mxu1 }
 0x413   : > { %v10296_v1 = vpop.f32.mrb[31].mxu0 }
 0x414   : > { %v3767_v60 = vadd.f32 %v3763_v42, %v3684_v4 }
 0x415   : > { %v3844_v54 = vpop.f32.mrb[30].mxu1 }
 0x416   : > { %v3848_v44 = vadd.f32 %v3844_v54, %v3767_v60  ;;  %v10303_v45 = vpop.f32.mrb[31].mxu1 }
 0x417   : > { %v3921_v47 = vpop.f32.mrb[32].mxu0 }
 0x418   : > { %v3925_v16 = vadd.f32 %v3921_v47, %v3848_v44  ;;  %v10310_v17 = vpop.f32.mrb[33].mxu0 }
 0x419   : > { %v5554_v17 = vpop.permute.xlu0 %5553 }
 0x41a   : > { %v4004_v3 = vpop.f32.mrb[32].mxu1 }
 0x41b   : > { %v4008_v48 = vadd.f32 %v4004_v3, %v3925_v16  ;;  %v10317_v50 = vpop.f32.mrb[33].mxu1 }
 0x41c   : > { %v4085_v10 = vpop.f32.mrb[34].mxu0 }
 0x41d   : > { %v4089_v49 = vadd.f32 %v4085_v10, %v4008_v48  ;;  %v10324_v8 = vpop.f32.mrb[35].mxu0 }
 0x41f   : > { %v4096_v21 = vadd.f32 %v4094_v15, %v4089_v49  ;;  %v4180_v52 = vpop.f32.mrb[34].mxu1 }
 0x420   : > { %v10331_v55 = vpop.f32.mrb[35].mxu1 }
 0x421   : > { %4098 = vst.msk [vmem:[#allocation3 + $0x10] sm:$0xff] %vm2637_vm12, %v4096_v21  ;;  %v4253_v29 = vpop.f32.mrb[36].mxu0 }
 0x422   : > { %v4254_v19 = vadd.f32 %v4253_v29, %v4180_v52  ;;  %v10338_v56 = vpop.f32.mrb[37].mxu0 }
 0x424   : > { %v4333_v57 = vpop.f32.mrb[36].mxu1 }
 0x425   : > { %v4337_v51 = vadd.f32 %v4333_v57, %v4254_v19  ;;  %v10345_v7 = vpop.f32.mrb[37].mxu1 }
 0x426   : > { %v4410_v58 = vpop.f32.mrb[38].mxu0 }
 0x427   : > { %v4414_v59 = vadd.f32 %v4410_v58, %v4337_v51  ;;  %v10352_v23 = vpop.f32.mrb[39].mxu0 }
 0x429   : > { %v4493_v61 = vpop.f32.mrb[38].mxu1 }
 0x42a   : > { %v4497_v20 = vadd.f32 %v4493_v61, %v4414_v59  ;;  %v10359_v62 = vpop.f32.mrb[39].mxu1 }
 0x42b   : > { %v4574_v0 = vpop.f32.mrb[40].mxu0 }
 0x42c   : > { %v4578_v27 = vadd.f32 %v4574_v0, %v4497_v20  ;;  %v10366_v53 = vpop.f32.mrb[41].mxu0 }
 0x42e   : > { %v4651_v63 = vpop.f32.mrb[40].mxu1 }
 0x42f   : > { %v4655_v5 = vadd.f32 %v4651_v63, %v4578_v27  ;;  %v10373_v9 = vpop.f32.mrb[41].mxu1 }
 0x430   : > { %v4734_v11 = vpop.f32.mrb[42].mxu0 }
 0x431   : > { %v4738_v12 = vadd.f32 %v4734_v11, %v4655_v5  ;;  %v10380_v13 = vpop.f32.mrb[43].mxu0 }
 0x433   : > { %v4815_v14 = vpop.f32.mrb[42].mxu1 }
 0x434   : > { %v4819_v6 = vadd.f32 %v4815_v14, %v4738_v12  ;;  %v10387_v18 = vpop.f32.mrb[43].mxu1  ;;  %v6284_v12 = vpop.permute.xlu1 %6283 }
 0x435   : > { %v4910_v22 = vpop.f32.mrb[44].mxu0 }
 0x436   : > { %v4826_v24 = vadd.f32 %v4824_v39, %v4819_v6  ;;  %v10394_v25 = vpop.f32.mrb[45].mxu0 }
 0x438   : > { %4828 = vst.msk [vmem:[#allocation3 + $0x18] sm:$0xff] %vm2637_vm12, %v4826_v24 }
 0x439   : > { %v4983_v28 = vpop.f32.mrb[44].mxu1 }
 0x43a   : > { %v4984_v30 = vadd.f32 %v4983_v28, %v4910_v22  ;;  %v10401_v31 = vpop.f32.mrb[45].mxu1  ;;  %v5063_v32 = vpop.f32.mrb[46].mxu0 }
 0x43b   : > { %v10408_v33 = vpop.f32.mrb[47].mxu0 }
 0x43c   : > { %v5067_v34 = vadd.f32 %v5063_v32, %v4984_v30 }
 0x43d   : > { %v5140_v2 = vpop.f32.mrb[46].mxu1 }
 0x43e   : > { %v5144_v36 = vadd.f32 %v5140_v2, %v5067_v34  ;;  %v10415_v37 = vpop.f32.mrb[47].mxu1  ;;  %v5223_v38 = vpop.f32.mrb[48].mxu0 }
 0x43f   : > { %v10422_v40 = vpop.f32.mrb[49].mxu0 }
 0x440   : > { %v5227_v41 = vadd.f32 %v5223_v38, %v5144_v36 }
 0x441   : > { %v5304_v46 = vpop.f32.mrb[48].mxu1 }
 0x442   : > { %v5308_v35 = vadd.f32 %v5304_v46, %v5227_v41  ;;  %v10429_v4 = vpop.f32.mrb[49].mxu1  ;;  %v5381_v42 = vpop.f32.mrb[50].mxu0 }
 0x443   : > { %v10436_v43 = vpop.f32.mrb[51].mxu0 }
 0x444   : > { %v5385_v1 = vadd.f32 %v5381_v42, %v5308_v35  ;;  %v7014_v43 = vpop.permute.xlu0 %7013 }
 0x46d   : > { %v5464_v60 = vpop.f32.mrb[50].mxu1  ;;  %v5545_v54 = vpop.f32.mrb[52].mxu0 }
 0x46e   : > { %v5468_v44 = vadd.f32 %v5464_v60, %v5385_v1  ;;  %v10443_v45 = vpop.f32.mrb[51].mxu1  ;;  %v10450_v47 = vpop.f32.mrb[53].mxu0 }
 0x470   : > { %v5549_v16 = vadd.f32 %v5545_v54, %v5468_v44 }
 0x471   : > { %v5713_v3 = vpop.f32.mrb[54].mxu0 }
 0x472   : > { %v5556_v48 = vadd.f32 %v5554_v17, %v5549_v16  ;;  %v5640_v50 = vpop.f32.mrb[52].mxu1  ;;  %v10464_v10 = vpop.f32.mrb[55].mxu0 }
 0x473   : > { %v5714_v49 = vadd.f32 %v5713_v3, %v5640_v50  ;;  %v10457_v8 = vpop.f32.mrb[53].mxu1 }
 0x474   : > { %5558 = vst.msk [vmem:[#allocation3 + $0x20] sm:$0xff] %vm2637_vm12, %v5556_v48 }
 0x475   : > { %v5870_v15 = vpop.f32.mrb[56].mxu0 }
 0x476   : > { %v5793_v21 = vpop.f32.mrb[54].mxu1  ;;  %v10478_v52 = vpop.f32.mrb[57].mxu0 }
 0x477   : > { %v5797_v55 = vadd.f32 %v5793_v21, %v5714_v49  ;;  %v10471_v29 = vpop.f32.mrb[55].mxu1 }
 0x479   : > { %v5874_v19 = vadd.f32 %v5870_v15, %v5797_v55  ;;  %v6034_v56 = vpop.f32.mrb[58].mxu0 }
 0x47a   : > { %v5953_v57 = vpop.f32.mrb[56].mxu1  ;;  %v10492_v51 = vpop.f32.mrb[59].mxu0 }
 0x47b   : > { %v5957_v7 = vadd.f32 %v5953_v57, %v5874_v19  ;;  %v10485_v58 = vpop.f32.mrb[57].mxu1 }
 0x47d   : > { %v6038_v59 = vadd.f32 %v6034_v56, %v5957_v7 }
 0x47e   : > { %v6111_v23 = vpop.f32.mrb[58].mxu1  ;;  %v6194_v61 = vpop.f32.mrb[60].mxu0 }
 0x47f   : > { %v6115_v20 = vadd.f32 %v6111_v23, %v6038_v59  ;;  %v10499_v62 = vpop.f32.mrb[59].mxu1  ;;  %v10506_v0 = vpop.f32.mrb[61].mxu0  ;;  %v7752_v23 = vld [vmem:[#allocation3 + $0x8] sm:$0x1] }
 0x480   : > { %v7950_v62 = vld [vmem:[#allocation3 + $0x9] sm:$0x1]  ;;  %v8149_v0 = vld [vmem:[#allocation3 + $0xa] sm:$0x1] }
 0x481   : > { %v6198_v27 = vadd.f32 %v6194_v61, %v6115_v20 }
 0x482   : > { %v6275_v53 = vpop.f32.mrb[60].mxu1  ;;  %v6370_v63 = vpop.f32.mrb[62].mxu0 }
 0x483   : > { %v6279_v5 = vadd.f32 %v6275_v53, %v6198_v27  ;;  %v10513_v9 = vpop.f32.mrb[61].mxu1  ;;  %v10520_v11 = vpop.f32.mrb[63].mxu0  ;;  %v7753_v53 = vld [vmem:[#allocation3 + $0x10] sm:$0x1] }
 0x484   : > { %v7744_v27 = vpop.permute.xlu1 %7743  ;;  %v7754_v11 = vld [vmem:[#allocation3 + $0x18] sm:$0x1] }
 0x485   : > { %v6286_v13 = vadd.f32 %v6284_v12, %v6279_v5  ;;  %v13142_v5 = vld [vmem:[#allocation3 + $0xb] sm:$0x1]  ;;  %v8150_v12 = vld [vmem:[#allocation3 + $0x12] sm:$0x1] }
 0x486   : > { %v6443_v14 = vpop.f32.mrb[62].mxu1  ;;  %v6523_v6 = vpop.f32.mrb[64].mxu0 }
 0x487   : > { %6288 = vst.msk [vmem:[#allocation3 + $0x28] sm:$0xff] %vm2637_vm12, %v6286_v13  ;;  %v6444_v18 = vadd.f32 %v6443_v14, %v6370_v63  ;;  %v10527_v39 = vpop.f32.mrb[63].mxu1  ;;  %v10534_v22 = vpop.f32.mrb[65].mxu0  ;;  %v7951_v63 = vld [vmem:[#allocation3 + $0x11] sm:$0x1]  ;;  %v7767_v14 = vrot.slane %v7752_v23, 7 }
 0x488   : > { %v7755_v13 = vld [vmem:[#allocation3 + $0x20] sm:$0x1]  ;;  %v7769_v22 = vrot.slane %v7753_v53, 6  ;;  %v8351_v23 = vld [vmem:[#allocation3 + $0x23] sm:$0x1] }
 0x489   : > { %v6527_v24 = vadd.f32 %v6523_v6, %v6444_v18  ;;  %v7952_v6 = vld [vmem:[#allocation3 + $0x19] sm:$0x1]  ;;  %v7965_v18 = vrot.slane %v7950_v62, 7  ;;  %v7751_v39 = vld [vmem:[#allocation3] sm:$0x1] }
 0x48a   : > { %v6600_v25 = vpop.f32.mrb[64].mxu1  ;;  %v6683_v28 = vpop.f32.mrb[66].mxu0 }
 0x48b   : > { %v6604_v30 = vadd.f32 %v6600_v25, %v6527_v24  ;;  %v10541_v31 = vpop.f32.mrb[65].mxu1  ;;  %v10548_v32 = vpop.f32.mrb[67].mxu0  ;;  %v7949_v24 = vld [vmem:[#allocation3 + $0x1] sm:$0x1]  ;;  %v7967_v25 = vrot.slane %v7951_v63, 6 }
 0x48c   : > { %v8363_v31 = vrot.slane %v13142_v5, 7 }
 0x48d   : > { %v6687_v33 = vadd.f32 %v6683_v28, %v6604_v30  ;;  %v8164_v28 = vrot.slane %v8149_v0, 7  ;;  %v13145_v30 = vld [vmem:[#allocation3 + $0x13] sm:$0x1]  ;;  %v8347_v0 = vld [vmem:[#allocation3 + $0x3] sm:$0x1] }
 0x48e   : > { %v6764_v34 = vpop.f32.mrb[66].mxu1  ;;  %v6841_v2 = vpop.f32.mrb[68].mxu0  ;;  %v7756_v32 = vld [vmem:[#allocation3 + $0x28] sm:$0x1] }
 0x48f   : > { %v6768_v36 = vadd.f32 %v6764_v34, %v6687_v33  ;;  %v10555_v37 = vpop.f32.mrb[67].mxu1  ;;  %v10562_v38 = vpop.f32.mrb[69].mxu0  ;;  %v7771_v33 = vrot.slane %v7754_v11, 5  ;;  %v8148_v34 = vld [vmem:[#allocation3 + $0x2] sm:$0x1] }
 0x490   : > { %v7773_v38 = vrot.slane %v7755_v13, 4 }
 0x491   : > { %v6845_v40 = vadd.f32 %v6841_v2, %v6768_v36  ;;  %v8151_v2 = vld [vmem:[#allocation3 + $0x1a] sm:$0x1]  ;;  %v8166_v36 = vrot.slane %v8150_v12, 6 }
 0x492   : > { %v6924_v41 = vpop.f32.mrb[68].mxu1  ;;  %v7005_v46 = vpop.f32.mrb[70].mxu0 }
 0x493   : > { %v6928_v35 = vadd.f32 %v6924_v41, %v6845_v40  ;;  %v10569_v4 = vpop.f32.mrb[69].mxu1  ;;  %v10576_v42 = vpop.f32.mrb[71].mxu0  ;;  %v7953_v40 = vld [vmem:[#allocation3 + $0x21] sm:$0x1]  ;;  %v7969_v41 = vrot.slane %v7952_v6, 5 }
 0x494   : > { %v7966_v42 = vsel %vm546_vm0, %v7965_v18, %v7949_v24  ;;  %v8548_v6 = vld [vmem:[#allocation3 + $0x14] sm:$0x1]  ;;  %v8369_v24 = vrot.slane %v8351_v23, 4  ;;  %v8947_v23 = vld [vmem:[#allocation3 + $0x1e] sm:$0x1] }
 0x495   : > { %v7009_v1 = vadd.f32 %v7005_v46, %v6928_v35  ;;  %v7768_v46 = vsel %vm546_vm0, %v7767_v14, %v7751_v39  ;;  %v7954_v35 = vld [vmem:[#allocation3 + $0x29] sm:$0x1] }
 0x496   : > { %v7100_v60 = vpop.f32.mrb[70].mxu1  ;;  %v7173_v54 = vpop.f32.mrb[72].mxu0 }
 0x497   : > { %v7016_v44 = vadd.f32 %v7014_v43, %v7009_v1  ;;  %v7174_v45 = vadd.f32 %v7173_v54, %v7100_v60  ;;  %v10583_v47 = vpop.f32.mrb[71].mxu1  ;;  %v10590_v16 = vpop.f32.mrb[73].mxu0  ;;  %v8152_v43 = vld [vmem:[#allocation3 + $0x22] sm:$0x1]  ;;  %v7770_v1 = vsel %vm549_vm1, %v7769_v22, %v7768_v46  ;;  %v7775_v60 = vrot.slane %v7756_v32, 3 }
 0x498   : > { %v8165_v54 = vsel %vm546_vm0, %v8164_v28, %v8148_v34  ;;  %v7968_v16 = vsel %vm549_vm1, %v7967_v25, %v7966_v42  ;;  %v8549_v25 = vld [vmem:[#allocation3 + $0x1c] sm:$0x1]  ;;  %v8564_v46 = vrot.slane %v8548_v6, 6  ;;  %v9144_v6 = vld [vmem:[#allocation3 + $0xf] sm:$0x1] }
 0x499   : > { %7018 = vst.msk [vmem:[#allocation3 + $0x30] sm:$0xff] %vm2637_vm12, %v7016_v44  ;;  %v13152_v44 = vld [vmem:[#allocation3 + $0x1b] sm:$0x1] }
 0x49a   : > { %v7253_v17 = vpop.f32.mrb[72].mxu1  ;;  %v7330_v3 = vpop.f32.mrb[74].mxu0  ;;  %v8367_v53 = vrot.slane %v13152_v44, 5 }
 0x49b   : > { %v7257_v48 = vadd.f32 %v7253_v17, %v7174_v45  ;;  %v10597_v50 = vpop.f32.mrb[73].mxu1  ;;  %v10604_v10 = vpop.f32.mrb[75].mxu0  ;;  %v8365_v45 = vrot.slane %v13145_v30, 6  ;;  %v7971_v17 = vrot.slane %v7953_v40, 4  ;;  %v8546_v40 = vld [vmem:[#allocation3 + $0x4] sm:$0x1] }
 0x49c   : > { %v7772_v50 = vsel %vm552_vm2, %v7771_v33, %v7770_v1  ;;  %v7973_v10 = vrot.slane %v7954_v35, 3  ;;  %v8364_v33 = vsel %vm546_vm0, %v8363_v31, %v8347_v0  ;;  %v8746_v35 = vld [vmem:[#allocation3 + $0xd] sm:$0x1]  ;;  %v8747_v1 = vld [vmem:[#allocation3 + $0x15] sm:$0x1] }
 0x49d   : > { %v7334_v49 = vadd.f32 %v7330_v3, %v7257_v48  ;;  %v8153_v3 = vld [vmem:[#allocation3 + $0x2a] sm:$0x1]  ;;  %v8168_v48 = vrot.slane %v8151_v2, 5  ;;  %v8550_v2 = vld [vmem:[#allocation3 + $0x24] sm:$0x1] }
 0x49e   : > { %v7413_v8 = vpop.f32.mrb[74].mxu1  ;;  %v7494_v15 = vpop.f32.mrb[76].mxu0  ;;  %v8568_v44 = vrot.slane %v8550_v2, 4  ;;  %v8948_v0 = vld [vmem:[#allocation3 + $0x26] sm:$0x1] }
 0x49f   : > { %v7417_v21 = vadd.f32 %v7413_v8, %v7334_v49  ;;  %v10611_v52 = vpop.f32.mrb[75].mxu1  ;;  %v10618_v55 = vpop.f32.mrb[77].mxu0 }
 0x4a0   : > { %v7757_v37 = vld [vmem:[#allocation3 + $0x30] sm:$0x1]  ;;  %v7955_v4 = vld [vmem:[#allocation3 + $0x31] sm:$0x1]  ;;  %v8154_v8 = vld [vmem:[#allocation3 + $0x32] sm:$0x1]  ;;  %v7774_v55 = vsel %vm555_vm3, %v7773_v38, %v7772_v50 }
 0x4a1   : > { %v7498_v29 = vadd.f32 %v7494_v15, %v7417_v21  ;;  %v7777_v47 = vrot.slane %v7757_v37, 2  ;;  %v7975_v49 = vrot.slane %v7955_v4, 2  ;;  %v8170_v15 = vrot.slane %v8152_v43, 4  ;;  %v13157_v21 = vld [vmem:[#allocation3 + $0xc] sm:$0x1] }
 0x4a2   : > { %v7571_v19 = vpop.f32.mrb[76].mxu1  ;;  %v7654_v56 = vpop.f32.mrb[78].mxu0  ;;  %v8174_v62 = vrot.slane %v8154_v8, 2  ;;  %v8353_v14 = vld [vmem:[#allocation3 + $0x33] sm:$0x1]  ;;  %v8562_v28 = vrot.slane %v13157_v21, 7  ;;  %v8366_v37 = vsel %vm549_vm1, %v8365_v45, %v8364_v33 }
 0x4a3   : > { %v7575_v57 = vadd.f32 %v7571_v19, %v7498_v29  ;;  %v10625_v51 = vpop.f32.mrb[77].mxu1  ;;  %v10632_v7 = vpop.f32.mrb[79].mxu0  ;;  %v7970_v19 = vsel %vm552_vm2, %v7969_v41, %v7968_v16  ;;  %v8373_v38 = vrot.slane %v8353_v14, 2  ;;  %v8551_v41 = vld [vmem:[#allocation3 + $0x2c] sm:$0x1]  ;;  %v8368_v31 = vsel %vm552_vm2, %v8367_v53, %v8366_v37 }
 0x4a4   : > { %v7776_v51 = vsel %vm558_vm4, %v7775_v60, %v7774_v55  ;;  %v8552_v42 = vld [vmem:[#allocation3 + $0x34] sm:$0x1]  ;;  %v8566_v43 = vrot.slane %v8549_v25, 5  ;;  %v8370_v60 = vsel %vm555_vm3, %v8369_v24, %v8368_v31  ;;  %v8748_v45 = vld [vmem:[#allocation3 + $0x1d] sm:$0x1]  ;;  %v8563_v16 = vsel %vm546_vm0, %v8562_v28, %v8546_v40 }
 0x4a5   : > { %v7658_v58 = vadd.f32 %v7654_v56, %v7575_v57  ;;  %v8167_v57 = vsel %vm549_vm1, %v8166_v36, %v8165_v54  ;;  %v8745_v8 = vld [vmem:[#allocation3 + $0x5] sm:$0x1]  ;;  %v8763_v21 = vrot.slane %v8747_v1, 6  ;;  %v8950_v24 = vld [vmem:[#allocation3 + $0x36] sm:$0x1]  ;;  %v8964_v25 = vrot.slane %v8947_v23, 5 }
 0x4a6   : > { %v7735_v59 = vpop.f32.mrb[78].mxu1  ;;  %v8169_v12 = vsel %vm552_vm2, %v8168_v48, %v8167_v57  ;;  %v8761_v48 = vrot.slane %v8746_v35, 7  ;;  %v8765_v57 = vrot.slane %v8748_v45, 5  ;;  %v9145_v28 = vld [vmem:[#allocation3 + $0x17] sm:$0x1]  ;;  %v8966_v33 = vrot.slane %v8948_v0, 4 }
 0x4a7   : > { %v7739_v61 = vadd.f32 %v7735_v59, %v7658_v58  ;;  %v10639_v20 = vpop.f32.mrb[79].mxu1  ;;  %v8172_v59 = vrot.slane %v8153_v3, 3  ;;  %v8171_v39 = vsel %vm555_vm3, %v8170_v15, %v8169_v12  ;;  %v8749_v3 = vld [vmem:[#allocation3 + $0x25] sm:$0x1]  ;;  %v8750_v15 = vld [vmem:[#allocation3 + $0x2d] sm:$0x1] }
 0x4a8   : > { %v7972_v20 = vsel %vm555_vm3, %v7971_v17, %v7970_v19  ;;  %v8570_v17 = vrot.slane %v8551_v41, 3  ;;  %v8944_v12 = vld [vmem:[#allocation3 + $0x6] sm:$0x1]  ;;  %v9159_v40 = vrot.slane %v9144_v6, 7  ;;  %v8970_v35 = vrot.slane %v8950_v24, 2 }
 0x4a9   : > { %v7746_v9 = vadd.f32 %v7744_v27, %v7739_v61  ;;  %v7778_v61 = vsel %vm561_vm5, %v7777_v47, %v7776_v51  ;;  %v8352_v27 = vld [vmem:[#allocation3 + $0x2b] sm:$0x1]  ;;  %v7974_v11 = vsel %vm558_vm4, %v7973_v10, %v7972_v20  ;;  %v8173_v32 = vsel %vm558_vm4, %v8172_v59, %v8171_v39  ;;  %v8946_v51 = vld [vmem:[#allocation3 + $0x16] sm:$0x1]  ;;  %v9149_v1 = vld [vmem:[#allocation3 + $0x37] sm:$0x1] }
 0x4aa   : > { %v7976_v18 = vsel %vm561_vm5, %v7975_v49, %v7974_v11  ;;  %v8371_v34 = vrot.slane %v8352_v27, 3  ;;  %v8175_v36 = vsel %vm561_vm5, %v8174_v62, %v8173_v32  ;;  %v8565_v10 = vsel %vm549_vm1, %v8564_v46, %v8563_v16 }
 0x4ab   : > { %7748 = vst.msk [vmem:[#allocation3 + $0x38] sm:$0xff] %vm2637_vm12, %v7746_v9  ;;  %v13167_v9 = vld [vmem:[#allocation13 + $0x8] sm:$0xff]  ;;  %v8572_v49 = vrot.slane %v8552_v42, 2  ;;  %v8767_v59 = vrot.slane %v8749_v3, 4  ;;  %v8762_v20 = vsel %vm546_vm0, %v8761_v48, %v8745_v8  ;;  %v8769_v62 = vrot.slane %v8750_v15, 3 }
 0x4ac   : > { %v8372_v47 = vsel %vm558_vm4, %v8371_v34, %v8370_v60  ;;  %v8962_v14 = vrot.slane %v8946_v51, 6  ;;  %v9146_v34 = vld [vmem:[#allocation3 + $0x1f] sm:$0x1]  ;;  %v9161_v31 = vrot.slane %v9145_v28, 6 }
 0x4ad   : > { %v8374_v50 = vsel %vm561_vm5, %v8373_v38, %v8372_v47  ;;  %v9147_v38 = vld [vmem:[#allocation3 + $0x27] sm:$0x1]  ;;  %v9163_v60 = vrot.slane %v9146_v34, 5 }
 0x4ae   : > { %v9165_v47 = vrot.slane %v9147_v38, 4 }
 0x4b2   : > { %v7758_v52 = vld [vmem:[#allocation3 + $0x38] sm:$0x1]  ;;  %v7956_v29 = vld [vmem:[#allocation3 + $0x39] sm:$0x1]  ;;  %v8155_v56 = vld [vmem:[#allocation3 + $0x3a] sm:$0x1] }
 0x4b3   : > { %v7779_v7 = vrot.slane %v7758_v52, 1  ;;  %v7977_v58 = vrot.slane %v7956_v29, 1  ;;  %v8176_v13 = vrot.slane %v8155_v56, 1  ;;  %v8354_v22 = vld [vmem:[#allocation3 + $0x3b] sm:$0x1]  ;;  %v8567_v29 = vsel %vm552_vm2, %v8566_v43, %v8565_v10 }
 0x4b4   : > { %v8375_v4 = vrot.slane %v8354_v22, 1  ;;  %v8553_v54 = vld [vmem:[#allocation3 + $0x3c] sm:$0x1]  ;;  %v8945_v52 = vld [vmem:[#allocation3 + $0xe] sm:$0x1]  ;;  %v9169_v10 = vrot.slane %v9149_v1, 2 }
 0x4b5   : > { %v7780_v63 = vsel %vm564_vm7, %v7779_v7, %v7778_v61  ;;  %v7978_v30 = vsel %vm564_vm7, %v7977_v58, %v7976_v18  ;;  %v8177_v5 = vsel %vm564_vm7, %v8176_v13, %v8175_v36  ;;  %v8574_v19 = vrot.slane %v8553_v54, 1  ;;  %v8751_v56 = vld [vmem:[#allocation3 + $0x35] sm:$0x1]  ;;  %v8752_v58 = vld [vmem:[#allocation3 + $0x3d] sm:$0x1] }
 0x4b6   : > { %10640 = vmatprep.subr.mxu0 %v7780_v63  ;;  %v8376_v55 = vsel %vm564_vm7, %v8375_v4, %v8374_v50  ;;  %v8569_v7 = vsel %vm555_vm3, %v8568_v44, %v8567_v29  ;;  %v8960_v27 = vrot.slane %v8945_v52, 7  ;;  %v8771_v11 = vrot.slane %v8751_v56, 2  ;;  %v8949_v13 = vld [vmem:[#allocation3 + $0x2e] sm:$0x1]  ;;  %v8951_v32 = vld [vmem:[#allocation3 + $0x3e] sm:$0x1] }
 0x4b7   : > { %10641 = vmatpush3.msra.mxu0 %v7780_v63  ;;  %v8571_v61 = vsel %vm558_vm4, %v8570_v17, %v8569_v7  ;;  %v8764_v63 = vsel %vm549_vm1, %v8763_v21, %v8762_v20  ;;  %v8773_v22 = vrot.slane %v8752_v58, 1  ;;  %v8968_v37 = vrot.slane %v8949_v13, 3  ;;  %v9143_v44 = vld [vmem:[#allocation3 + $0x7] sm:$0x1]  ;;  %v9150_v45 = vld [vmem:[#allocation3 + $0x3f] sm:$0x1] }
 0x4b8   : > { %10643 = vmatmul.mubr.msk.f32.vlgmr.msra.gmra.mrb[80].mxu0 %vm2637_vm12, %v13167_v9  ;;  %10650 = vmatprep.subr.mxu0 %v7978_v30  ;;  %v8573_v53 = vsel %vm561_vm5, %v8572_v49, %v8571_v61  ;;  %v8766_v39 = vsel %vm552_vm2, %v8765_v57, %v8764_v63  ;;  %v8961_v36 = vsel %vm546_vm0, %v8960_v27, %v8944_v12  ;;  %v8972_v43 = vrot.slane %v8951_v32, 1 }
 0x4b9   : > { %10651 = vmatpush3.msra.mxu0 %v7978_v30  ;;  %10652 = vmatprep.mubr.msk.f32.mxu0 %vm2637_vm12, %v13134_v26  ;;  %v8575_v18 = vsel %vm564_vm7, %v8574_v19, %v8573_v53  ;;  %v8768_v30 = vsel %vm555_vm3, %v8767_v59, %v8766_v39  ;;  %v8963_v46 = vsel %vm549_vm1, %v8962_v14, %v8961_v36  ;;  %v9171_v15 = vrot.slane %v9150_v45, 1  ;;  %v7863_v19 = vld [vmem:[#allocation15] sm:$0xff] }
 0x4ba   : > { %10660 = vmatprep.subr.mxu0 %v8177_v5  ;;  %v8770_v2 = vsel %vm558_vm4, %v8769_v62, %v8768_v30  ;;  %v8965_v42 = vsel %vm552_vm2, %v8964_v25, %v8963_v46  ;;  %v9160_v17 = vsel %vm546_vm0, %v9159_v40, %v9143_v44  ;;  %10645 = vmatprep.subr.mxu1 %v7863_v19 }
 0x4bb   : > { %v8772_v41 = vsel %vm561_vm5, %v8771_v11, %v8770_v2  ;;  %v8967_v54 = vsel %vm555_vm3, %v8966_v33, %v8965_v42  ;;  %v9162_v50 = vsel %vm549_vm1, %v9161_v31, %v9160_v17  ;;  %10646 = vmatpush3.msra.mxu1 %v7863_v19 }
 0x4bc   : > { %10653 = vmatmul.mubr.msk.f32.vlgmr.msra.gmra.mrb[82].mxu0 %vm2637_vm12, %v13167_v9  ;;  %v8774_v4 = vsel %vm564_vm7, %v8773_v22, %v8772_v41  ;;  %v8969_v16 = vsel %vm558_vm4, %v8968_v37, %v8967_v54  ;;  %v9164_v8 = vsel %vm552_vm2, %v9163_v60, %v9162_v50  ;;  %10655 = vmatprep.subr.mxu1 %v7863_v19 }
 0x4bd   : > { %10661 = vmatpush3.msra.mxu0 %v8177_v5  ;;  %10662 = vmatprep.mubr.msk.f32.mxu0 %vm2637_vm12, %v13134_v26  ;;  %v9148_v5 = vld [vmem:[#allocation3 + $0x2f] sm:$0x1]  ;;  %v8971_v48 = vsel %vm561_vm5, %v8970_v35, %v8969_v16  ;;  %v9166_v21 = vsel %vm555_vm3, %v9165_v47, %v9164_v8 }
 0x4be   : > { %10670 = vmatprep.subr.mxu0 %v8376_v55  ;;  %v9167_v3 = vrot.slane %v9148_v5, 3  ;;  %v8973_v49 = vsel %vm564_vm7, %v8972_v43, %v8971_v48 }
 0x4c0   : > { %10663 = vmatmul.mubr.msk.f32.vlgmr.msra.gmra.mrb[84].mxu0 %vm2637_vm12, %v13167_v9  ;;  %v9168_v52 = vsel %vm558_vm4, %v9167_v3, %v9166_v21 }
 0x4c1   : > { %10671 = vmatpush3.msra.mxu0 %v8376_v55  ;;  %10672 = vmatprep.mubr.msk.f32.mxu0 %vm2637_vm12, %v13134_v26  ;;  %v9170_v55 = vsel %vm561_vm5, %v9169_v10, %v9168_v52 }
 0x4c2   : > { %10680 = vmatprep.subr.mxu0 %v8575_v18  ;;  %v9172_v29 = vsel %vm564_vm7, %v9171_v15, %v9170_v55 }
 0x4c4   : > { %10673 = vmatmul.mubr.msk.f32.vlgmr.msra.gmra.mrb[86].mxu0 %vm2637_vm12, %v13167_v9 }
 0x4c5   : > { %10681 = vmatpush3.msra.mxu0 %v8575_v18  ;;  %10682 = vmatprep.mubr.msk.f32.mxu0 %vm2637_vm12, %v13134_v26 }
 0x4c6   : > { %10690 = vmatprep.subr.mxu0 %v8774_v4 }
 0x4c8   : > { %10683 = vmatmul.mubr.msk.f32.vlgmr.msra.gmra.mrb[88].mxu0 %vm2637_vm12, %v13167_v9 }
 0x4c9   : > { %10691 = vmatpush3.msra.mxu0 %v8774_v4  ;;  %10692 = vmatprep.mubr.msk.f32.mxu0 %vm2637_vm12, %v13134_v26 }
 0x4ca   : > { %10700 = vmatprep.subr.mxu0 %v8973_v49 }
 0x4cc   : > { %10693 = vmatmul.mubr.msk.f32.vlgmr.msra.gmra.mrb[90].mxu0 %vm2637_vm12, %v13167_v9 }
 0x4cd   : > { %10701 = vmatpush3.msra.mxu0 %v8973_v49  ;;  %10702 = vmatprep.mubr.msk.f32.mxu0 %vm2637_vm12, %v13134_v26 }
 0x4ce   : > { %10710 = vmatprep.subr.mxu0 %v9172_v29 }
 0x4d0   : > { %10703 = vmatmul.mubr.msk.f32.vlgmr.msra.gmra.mrb[92].mxu0 %vm2637_vm12, %v13167_v9 }
 0x4d1   : > { %10711 = vmatpush3.msra.mxu0 %v9172_v29  ;;  %10712 = vmatprep.mubr.msk.f32.mxu0 %vm2637_vm12, %v13134_v26 }
 0x4d4   : > { %10713 = vmatmul.mubr.msk.f32.vlgmr.msra.gmra.mrb[94].mxu0 %vm2637_vm12, %v13167_v9 }
 0x58b   : > { %v10644_v56 = vpop.f32.mrb[80].mxu0 }
 0x58c   : > { %v7854_v57 = vpop.f32.mrb[81].mxu0 }
 0x58d   : > { %10647 = vmatprep.mubr.msk.f32.mxu1 %vm2637_vm12, %v7854_v57 }
 0x58e   : > { %10648 = vmatmul.mubr.msk.f32.vlgmr.msra.gmra.mrb[80].mxu1 %vm2637_vm12, %v10644_v56 }
 0x58f   : > { %v10654_v51 = vpop.f32.mrb[82].mxu0  ;;  %10656 = vmatpush3.msra.mxu1 %v7863_v19 }
 0x590   : > { %v8052_v7 = vpop.f32.mrb[83].mxu0  ;;  %10665 = vmatprep.subr.mxu1 %v7863_v19 }
 0x591   : > { %10657 = vmatprep.mubr.msk.f32.mxu1 %vm2637_vm12, %v8052_v7 }
 0x592   : > { %10658 = vmatmul.mubr.msk.f32.vlgmr.msra.gmra.mrb[82].mxu1 %vm2637_vm12, %v10654_v51 }
 0x593   : > { %v10664_v26 = vpop.f32.mrb[84].mxu0  ;;  %10666 = vmatpush3.msra.mxu1 %v7863_v19 }
 0x594   : > { %v8251_v9 = vpop.f32.mrb[85].mxu0  ;;  %10675 = vmatprep.subr.mxu1 %v7863_v19 }
 0x595   : > { %10667 = vmatprep.mubr.msk.f32.mxu1 %vm2637_vm12, %v8251_v9 }
 0x596   : > { %10668 = vmatmul.mubr.msk.f32.vlgmr.msra.gmra.mrb[84].mxu1 %vm2637_vm12, %v10664_v26 }
 0x597   : > { %v10674_v58 = vpop.f32.mrb[86].mxu0  ;;  %10676 = vmatpush3.msra.mxu1 %v7863_v19 }
 0x598   : > { %v8450_v59 = vpop.f32.mrb[87].mxu0  ;;  %10685 = vmatprep.subr.mxu1 %v7863_v19 }
 0x599   : > { %10677 = vmatprep.mubr.msk.f32.mxu1 %vm2637_vm12, %v8450_v59 }
 0x59a   : > { %10678 = vmatmul.mubr.msk.f32.vlgmr.msra.gmra.mrb[86].mxu1 %vm2637_vm12, %v10674_v58 }
 0x59b   : > { %v10684_v23 = vpop.f32.mrb[88].mxu0  ;;  %10686 = vmatpush3.msra.mxu1 %v7863_v19 }
 0x59c   : > { %v8649_v61 = vpop.f32.mrb[89].mxu0  ;;  %10695 = vmatprep.subr.mxu1 %v7863_v19 }
 0x59d   : > { %10687 = vmatprep.mubr.msk.f32.mxu1 %vm2637_vm12, %v8649_v61 }
 0x59e   : > { %10688 = vmatmul.mubr.msk.f32.vlgmr.msra.gmra.mrb[88].mxu1 %vm2637_vm12, %v10684_v23 }
 0x59f   : > { %v10694_v20 = vpop.f32.mrb[90].mxu0  ;;  %10696 = vmatpush3.msra.mxu1 %v7863_v19 }
 0x5a0   : > { %v8848_v62 = vpop.f32.mrb[91].mxu0  ;;  %10705 = vmatprep.subr.mxu1 %v7863_v19 }
 0x5a1   : > { %10697 = vmatprep.mubr.msk.f32.mxu1 %vm2637_vm12, %v8848_v62 }
 0x5a2   : > { %10698 = vmatmul.mubr.msk.f32.vlgmr.msra.gmra.mrb[90].mxu1 %vm2637_vm12, %v10694_v20 }
 0x5a3   : > { %v10704_v0 = vpop.f32.mrb[92].mxu0  ;;  %10706 = vmatpush3.msra.mxu1 %v7863_v19 }
 0x5a4   : > { %v9047_v27 = vpop.f32.mrb[93].mxu0  ;;  %10715 = vmatprep.subr.mxu1 %v7863_v19 }
 0x5a5   : > { %10707 = vmatprep.mubr.msk.f32.mxu1 %vm2637_vm12, %v9047_v27 }
 0x5a6   : > { %10708 = vmatmul.mubr.msk.f32.vlgmr.msra.gmra.mrb[92].mxu1 %vm2637_vm12, %v10704_v0 }
 0x5a7   : > { %v10714_v53 = vpop.f32.mrb[94].mxu0  ;;  %10716 = vmatpush3.msra.mxu1 %v7863_v19 }
 0x5a8   : > { %v9246_v63 = vpop.f32.mrb[95].mxu0 }
 0x5a9   : > { %10717 = vmatprep.mubr.msk.f32.mxu1 %vm2637_vm12, %v9246_v63 }
 0x5aa   : > { %10718 = vmatmul.mubr.msk.f32.vlgmr.msra.gmra.mrb[94].mxu1 %vm2637_vm12, %v10714_v53 }
 0x661   : > { %v10649_v11 = vpop.f32.mrb[80].mxu1 }
 0x662   : > { %7946 = vst.msk [vmem:[%s13263_s7 + $0x8] sm:$0xff] %vm582_vm6, %v10649_v11  ;;  %v7936_v12 = vpop.f32.mrb[81].mxu1 }
 0x663   : > { %7945 = vst.msk [vmem:[%s13263_s7] sm:$0xff] %vm582_vm6, %v7936_v12 }
 0x665   : > { %v10659_v13 = vpop.f32.mrb[82].mxu1 }
 0x666   : > { %9739 = vst.msk [vmem:[%s13263_s7 + $0x18] sm:$0xff] %vm582_vm6, %v10659_v13  ;;  %v8134_v14 = vpop.f32.mrb[83].mxu1 }
 0x667   : > { %9738 = vst.msk [vmem:[%s13263_s7 + $0x10] sm:$0xff] %vm582_vm6, %v8134_v14 }
 0x669   : > { %v10669_v6 = vpop.f32.mrb[84].mxu1 }
 0x66a   : > { %9745 = vst.msk [vmem:[%s13263_s7 + $0x28] sm:$0xff] %vm582_vm6, %v10669_v6  ;;  %v8333_v18 = vpop.f32.mrb[85].mxu1 }
 0x66b   : > { %9744 = vst.msk [vmem:[%s13263_s7 + $0x20] sm:$0xff] %vm582_vm6, %v8333_v18 }
 0x66d   : > { %v10679_v39 = vpop.f32.mrb[86].mxu1 }
 0x66e   : > { %9751 = vst.msk [vmem:[%s13263_s7 + $0x38] sm:$0xff] %vm582_vm6, %v10679_v39  ;;  %v8532_v22 = vpop.f32.mrb[87].mxu1 }
 0x66f   : > { %9750 = vst.msk [vmem:[%s13263_s7 + $0x30] sm:$0xff] %vm582_vm6, %v8532_v22 }
 0x671   : > { %v10689_v24 = vpop.f32.mrb[88].mxu1 }
 0x672   : > { %9757 = vst.msk [vmem:[%s13263_s7 + $0x48] sm:$0xff] %vm582_vm6, %v10689_v24  ;;  %v8731_v25 = vpop.f32.mrb[89].mxu1 }
 0x673   : > { %9756 = vst.msk [vmem:[%s13263_s7 + $0x40] sm:$0xff] %vm582_vm6, %v8731_v25 }
 0x675   : > { %v10699_v28 = vpop.f32.mrb[90].mxu1 }
 0x676   : > { %9763 = vst.msk [vmem:[%s13263_s7 + $0x58] sm:$0xff] %vm582_vm6, %v10699_v28  ;;  %v8930_v30 = vpop.f32.mrb[91].mxu1 }
 0x677   : > { %9762 = vst.msk [vmem:[%s13263_s7 + $0x50] sm:$0xff] %vm582_vm6, %v8930_v30 }
 0x679   : > { %v10709_v32 = vpop.f32.mrb[92].mxu1 }
 0x67a   : > { %9769 = vst.msk [vmem:[%s13263_s7 + $0x68] sm:$0xff] %vm582_vm6, %v10709_v32  ;;  %v9129_v33 = vpop.f32.mrb[93].mxu1 }
 0x67b   : > { %9768 = vst.msk [vmem:[%s13263_s7 + $0x60] sm:$0xff] %vm582_vm6, %v9129_v33 }
 0x67d   : > { %v10719_v34 = vpop.f32.mrb[94].mxu1 }
 0x67e   : > { %9775 = vst.msk [vmem:[%s13263_s7 + $0x78] sm:$0xff] %vm582_vm6, %v10719_v34  ;;  %v9328_v2 = vpop.f32.mrb[95].mxu1 }
 0x67f   : > { %9774 = vst.msk [vmem:[%s13263_s7 + $0x70] sm:$0xff] %vm582_vm6, %v9328_v2 }
 0x680   : > { %11586 = shalt.err (!%p11583_p4)
}
 0x681   : > { %s11587_s8 = scalar_lea.hbm %s13301_s21, 2048  ;;  %s11591_s0 = scalar_lea.hbm %s13489_s6, 16384 }
 0x682   : > { %p11588_p6 = scmp.ne.s32.totalorder %s13301_s21, %s11587_s8  ;;  %p11592_p10 = scmp.lt.u32.totalorder %s13301_s21, %s13489_s6 }
 0x683   : > { %p11593_p7 = scmp.lt.u32.totalorder %s11591_s0, %s11587_s8  ;;  %p11595_p2 = scmp.lt.u32.totalorder %s11587_s8, %s13301_s21 }
 0x684   : > { %p11589_p5 = pnand %p11588_p6, %p13490_p12 }
 0x685   : > { %p11594_p1 = por %p11593_p7, %p11592_p10 }
 0x686   : > { %p11590_p13 = pneg %p11589_p5 }
 0x687   : > { %p11596_p9 = por %p11595_p2, %p11594_p1 }
 0x689   : > { %p11597_p11 = pnand %p11596_p9, %p11590_p13 }
 0x68b   : > { %11600 = shalt.err (!%p11597_p11)
}
 0x68c   : > { %s11726_s17 = smov 128   ;;  %s11727_s15 = smov 8  }
 0x68d   : > { %10989 = dma.vmem_to_hbm [thread:$0]  (%p13490_p12), %s13296_s28, 2048, %s13301_s21, %s9341_s1, %s11726_s17, %s11726_s17, %s11727_s15  }
 0x68e PF: > { %s13491_s23 = sld [smem:[#allocation23_spill]]  ;;  %s13492_s16 = sld [smem:[#allocation31_spill]] }
 0x68f   : > { %p11023_p3 = scmp.ge.s32.totalorder %s11707_s11, 2 }
 0x694   : > { %s9371_s30 = sand.u32 1, %s13491_s23   ;;  %p13493_p8 = scmp.ne.s32.totalorder %s13492_s16, 0 }
 0x695   : > { %s9372_s4 = scalar_lea.sflag [#allocation6], %s9371_s30 }
 0x696   : > { %p11015_p0 = pnand %p11023_p3, %p13493_p8 }
 0x698   : > { %11662 = dma.done.wait (!%p11015_p0), %s9372_s4, 2048  }
 0x699   : > { %11664 = vsyncadd (!%p11015_p0), %s9372_s4, 4294965248  ;;  %s30_s11 = sadd.s32 1, %s11707_s11   ;;  %s13494_s24 = sld [smem:[#allocation22_spill]] }
 0x69a   : > { %p27_p4 = scmp.ge.s32.totalorder %s30_s11, 10   ;;  %s13495_s27 = sld [smem:[#allocation24_spill]] }
 0x69b   : > { %s13496_s30 = sld [smem:[#allocation27_spill]]  ;;  %s13497_s22 = sld [smem:[#allocation36_spill]] }
 0x69c   : > { %s13498_s25 = smov %s11675_s26  ;;  %s13499_s26 = smov %s12060_s20 }
 0x69d   : > { %s13500_s28 = smov %s11687_s29  ;;  %s13501_s29 = smov %s12063_s9 }
 0x69e   : > { %s13502_s8 = smov %s11703_s10  ;;  %s13504_s10 = smov %s13510_s13 }
 0x69f   :  { %29 = sbr.rel (!%p27_p4) target bundleno = 22 (0x16), region = 180 }
 0x6a1   : > { %s13503_s9 = smov %s13497_s22 }
 0x6a6   :  { %9377 = vsyncpa [#allocation5], 1 }
 0x6a7   :  { %9379 = vsyncpa [#allocation5 + $0x1], 1 }
 0x6a8   :  { %9380 = vsyncpa [#allocation8], 1 }
 0x6a9   :  { %9382 = vsyncpa [#allocation8 + $0x1], 1 }
 0x6aa   :  { %9383 = vsyncpa [#allocation11], 1 }
 0x6ab   :  { %9385 = vsyncpa [#allocation11 + $0x1], 1 }
 0x6ac   :  { %9386 = vsyncpa [#allocation14], 1 }
 0x6ad   :  { %9387 = vsyncpa [#allocation6], 1 }
 0x6ae   :  { %9389 = vsyncpa [#allocation6 + $0x1], 1 }

</bundles_post_ra>
